<compile_context>
chip_gen: v5e
topology: v5e:2x2
jax: 0.10.0
libtpu: 0.0.40
codegen_flags: <defaults>
</compile_context>

<pallas_src>
import functools

import numpy as np
import jax
import jax.numpy as jnp
from jax.experimental import pallas as pl
from jax.experimental.pallas import tpu as pltpu

EPSILON = 1e-8

# ------------------------- scaled-down ISModel config -------------------------
NUM_SENTS = 2
MAX_SENT_LEN = 8
GLOVE_DIM = 32           # original 300
LM_SIZE = 16             # original 1024
LM_LAYERS = 3
CHAR_EMB_SIZE = 8
MAX_WORD_LEN = 8
CHAR_VOCAB = 20
FILTER_SIZE = 8          # original 50
FILTER_WIDTHS = (2, 3)
CTX_SIZE = 16            # original contextualization_size 200 (per direction)
FEATURE_SIZE = 8         # original 20
FEAT_EMB_SIZE = 6        # original 27 (dim of the `features` input)
HIDDEN = 32              # original hidden_layer_size 150
NUM_CLASSES = 4
MAX_SPAN_WIDTH = 4       # original 30
NUM_MENTIONS = 5

LSTM_EMB_SIZE = LM_SIZE + GLOVE_DIM + FILTER_SIZE
HEAD_EMB_SIZE = GLOVE_DIM + FILTER_SIZE
SPAN_EMB_DIM = CTX_SIZE * 4 + HEAD_EMB_SIZE + FEATURE_SIZE + FEAT_EMB_SIZE

_CHAR_VP = 32            # char vocab padded to 32 lanes for the one-hot matmul


# ------------------------- the single fused kernel -------------------------
def _ismodel_kernel(
        # runtime inputs
        char_idx_ref, glove_ctx_ref, glove_head_ref, lm2_ref,
        starts_ref, ends_ref, feat_ref,
        # prepared (host pre-laid-out) parameters
        rep_ref, vlane_ref, conv_w_ref, conv_b_ref,
        l0_wg_ref, l0_wc_ref, l0_wl_ref, l0_b_ref, fmask_ref,
        p_tm_ref, p_rev_ref, r_rev_ref,
        wih_f12_ref, wih_b12_ref, b12_ref, whh_ref,
        hw_w_ref, hw_b_ref,
        g_ctx_ref, g_head_ref,
        attn_w_ref, attn_b_ref, width_emb_ref,
        w1_ref, b1_ref, w2_ref, b2_ref, w3_ref, b3_ref,
        # outputs / scratch
        out_ref, seq_scr,
        *, num_sents, max_sent_len, ctx_size, max_span_width, filter_size):
    f32 = jnp.float32
    B, T, H, W = num_sents, max_sent_len, ctx_size, max_span_width
    nt = B * T

    # ---------------- char CNN: embedding gather + both conv widths in ONE matmul ----------------
    idx_f = char_idx_ref[...].astype(f32)                                    # [nt, MWL]
    idx_exp = jnp.dot(idx_f, rep_ref[...], preferred_element_type=f32)       # [nt, MWL*32]
    one_hot = jnp.where(jnp.abs(idx_exp - vlane_ref[...]) < 0.5, 1.0, 0.0)   # [nt, MWL*32]
    conv = jnp.dot(one_hot, conv_w_ref[...], preferred_element_type=f32) + conv_b_ref[...]
    conv = jnp.maximum(conv, 0.0)                                            # [nt, n_pos*F]
    nblk = conv.shape[1] // filter_size
    pooled = conv[:, 0:filter_size]
    for blk in range(1, nblk):                                               # grouped max-pool
        pooled = jnp.maximum(pooled, conv[:, blk * filter_size:(blk + 1) * filter_size])

    # ---------------- layer-0 input projection (glove/char/lm + LM-mix folded, bias included) ----
    xsm = (jnp.dot(glove_ctx_ref[...], l0_wg_ref[...], preferred_element_type=f32)
           + jnp.dot(pooled, l0_wc_ref[...], preferred_element_type=f32)
           + jnp.dot(lm2_ref[...], l0_wl_ref[...], preferred_element_type=f32)
           + l0_b_ref[...])                                                  # [nt, 8H] sentence-major
    fmask = fmask_ref[...]
    p_tm = p_tm_ref[...]
    p_rev = p_rev_ref[...]
    r_rev = r_rev_ref[...]
    # step-order input: fwd gate columns take time t, bwd gate columns take time T-1-t
    xcomb0 = (jnp.dot(p_tm, xsm * fmask, preferred_element_type=f32)
              + jnp.dot(p_rev, xsm * (1.0 - fmask), preferred_element_type=f32))

    lane2h = jax.lax.broadcasted_iota(jnp.int32, (nt, 2 * H), 1)

    def run_bilstm(xc, whh):
        # one [B,2H]x[2H,128] gate matmul per step covers BOTH directions (gate-interleaved cols)
        h_cat = jnp.zeros((B, 2 * H), f32)
        c_cat = jnp.zeros((B, 2 * H), f32)
        for step in range(T):
            xstep = xc[step * B:(step + 1) * B, :]
            g = xstep + jnp.dot(h_cat, whh, preferred_element_type=f32)      # [B, 8H]
            i_and_f = jax.nn.sigmoid(g[:, 0:4 * H])
            g_gate = jnp.tanh(g[:, 4 * H:6 * H])
            o_gate = jax.nn.sigmoid(g[:, 6 * H:8 * H])
            c_cat = i_and_f[:, 2 * H:4 * H] * c_cat + i_and_f[:, 0:2 * H] * g_gate
            h_cat = o_gate * jnp.tanh(c_cat)
            seq_scr[step * B:(step + 1) * B, :] = h_cat                      # full-lane [B,2H] store
        scr = seq_scr[...]                                                   # [nt, 2H] step-major
        scr_rev = jnp.dot(r_rev, scr, preferred_element_type=f32)
        # regroup to time-major [fwd | bwd] per time step
        return jnp.where(lane2h < H, scr, scr_rev)

    hw_w = hw_w_ref[...]
    hw_b = hw_b_ref[...]

    y = run_bilstm(xcomb0, whh_ref[0])                                       # layer 0 (no highway)
    for li in range(2):                                                      # layers 1, 2
        y_prev = y
        y_rev = jnp.dot(r_rev, y_prev, preferred_element_type=f32)
        xc = (jnp.dot(y_prev, wih_f12_ref[li], preferred_element_type=f32)
              + jnp.dot(y_rev, wih_b12_ref[li], preferred_element_type=f32)
              + b12_ref[li])
        y_raw = run_bilstm(xc, whh_ref[li + 1])
        # highway gate batched over all timesteps
        gate = jax.nn.sigmoid(jnp.dot(y_raw, hw_w, preferred_element_type=f32) + hw_b)
        y = gate * y_raw + (1.0 - gate) * y_prev

    # ---------------- flatten-by-sentence (zero padded) via a gather matmul ----------------
    ctx_flat = jnp.dot(g_ctx_ref[...], y, preferred_element_type=f32)        # [P, 2H]

    # ---------------- span representation + scorer, fully batched over mentions ----------------
    starts = starts_ref[...]                                                 # [M, 1] int32
    ends = ends_ref[...]
    m = starts.shape[0]
    p = ctx_flat.shape[0]
    h2d = 2 * H
    glove_d = glove_head_ref.shape[1]
    feat_d = width_emb_ref.shape[1]
    w1 = w1_ref[...]
    o2 = 2 * h2d
    o3 = o2 + feat_d
    o4 = o3 + glove_d
    o5 = o4 + filter_size

    iota_p = jax.lax.broadcasted_iota(jnp.int32, (m, p), 1)
    width = ends - starts + 1
    widx = jnp.minimum(width - 1, W - 1)
    iota_w = jax.lax.broadcasted_iota(jnp.int32, (m, W), 1)
    oh_wd = jnp.where(iota_w == widx, 1.0, 0.0)
    width_sel = jnp.dot(oh_wd, width_emb_ref[...], preferred_element_type=f32)   # [m, FEATURE]

    attn_w_row = attn_w_ref[...]                                             # [1, 2H]
    attn_b = attn_b_ref[...]                                                 # [1, 1]

    # head embedding ([glove | char]) projected through its W1 row-block, then flattened
    head_proj = (jnp.dot(glove_head_ref[...], w1[o3:o4], preferred_element_type=f32)
                 + jnp.dot(pooled, w1[o4:o5], preferred_element_type=f32))   # [nt, HIDDEN]
    head_flat_proj = jnp.dot(g_head_ref[...], head_proj, preferred_element_type=f32)  # [P, HIDDEN]

    # per-offset one-hot gathers of the window rows; streaming masked softmax over W positions
    oh_pos, sc_pos = [], []
    ctx_s = None
    for w in range(W):
        ohw = jnp.where(iota_p == (starts + w), 1.0, 0.0)                    # [m, P]
        cw = jnp.dot(ohw, ctx_flat, preferred_element_type=f32)              # [m, 2H]
        sw = jnp.sum(cw * attn_w_row, axis=-1, keepdims=True) + attn_b       # [m, 1]
        sw = jnp.where(width > w, sw, -1e30)
        if w == 0:
            ctx_s = cw                                                       # == ctx[starts]
        oh_pos.append(ohw)
        sc_pos.append(sw)
    oh_e = jnp.where(iota_p == ends, 1.0, 0.0)
    ctx_e = jnp.dot(oh_e, ctx_flat, preferred_element_type=f32)              # [m, 2H]

    mx = sc_pos[0]
    for w in range(1, W):
        mx = jnp.maximum(mx, sc_pos[w])
    ex = [jnp.exp(sc_pos[w] - mx) for w in range(W)]
    z = ex[0]
    for w in range(1, W):
        z = z + ex[w]
    inv_z = 1.0 / z
    amat = (ex[0] * inv_z) * oh_pos[0]
    for w in range(1, W):
        amat = amat + (ex[w] * inv_z) * oh_pos[w]                            # [m, P] attention scatter

    # scorer layer 1 as a sum of block matmuls against row-slices of W1 (no span_emb materialized)
    h1 = (jnp.dot(ctx_s, w1[0:h2d], preferred_element_type=f32)
          + jnp.dot(ctx_e, w1[h2d:o2], preferred_element_type=f32)
          + jnp.dot(width_sel, w1[o2:o3], preferred_element_type=f32)
          + jnp.dot(amat, head_flat_proj, preferred_element_type=f32)
          + jnp.dot(feat_ref[...], w1[o5:], preferred_element_type=f32)
          + b1_ref[...])
    h1 = jnp.maximum(h1, 0.0)
    h2 = jnp.maximum(jnp.dot(h1, w2_ref[...], preferred_element_type=f32) + b2_ref[...], 0.0)
    logits = jnp.dot(h2, w3_ref[...], preferred_element_type=f32) + b3_ref[...]
    logits = logits - jnp.max(logits, axis=-1, keepdims=True)
    el = jnp.exp(logits)
    out_ref[...] = el / jnp.sum(el, axis=-1, keepdims=True) + EPSILON


# ------------------------- one-time (outside-jit) parameter preparation -------------------------
def prepare_params(params, text_lens):
    f32 = np.float32
    lens = [int(v) for v in np.asarray(text_lens)]
    ns, msl = NUM_SENTS, MAX_SENT_LEN
    B, T, H = ns, msl, CTX_SIZE
    nt = ns * msl
    num_words = sum(lens)
    p_pad = max(8, ((num_words + 7) // 8) * 8)
    vp = _CHAR_VP

    # --- char CNN: fold embedding lookup + both conv widths into one [MWL*vp, n_cols] weight ---
    cc = params["char_cnn"]
    emb = np.asarray(cc["char_emb"], f32)
    e_pad = np.zeros((vp, CHAR_EMB_SIZE), f32)
    e_pad[:emb.shape[0]] = emb
    n_out = [CHAR_EMB_SIZE - kw + 1 for kw in FILTER_WIDTHS]
    n_cols = sum(n_out) * FILTER_SIZE
    m_w = np.zeros((MAX_WORD_LEN, vp, n_cols), f32)
    conv_b = np.zeros((1, n_cols), f32)
    col0 = 0
    for wi, kw in enumerate(FILTER_WIDTHS):
        wconv = np.asarray(cc["conv_w"][wi], f32)           # [F, MWL(c), kw(j)]
        bconv = np.asarray(cc["conv_b"][wi], f32)
        for l in range(CHAR_EMB_SIZE - kw + 1):
            for f in range(FILTER_SIZE):
                col = col0 + l * FILTER_SIZE + f
                conv_b[0, col] = bconv[f]
                for j in range(kw):
                    m_w[:, :, col] += wconv[f, :, j][:, None] * e_pad[:, l + j][None, :]
        col0 += n_out[wi] * FILTER_SIZE
    conv_w = m_w.reshape(MAX_WORD_LEN * vp, n_cols)

    rep = np.zeros((MAX_WORD_LEN, MAX_WORD_LEN * vp), f32)
    vlane = np.zeros((1, MAX_WORD_LEN * vp), f32)
    for c in range(MAX_WORD_LEN):
        rep[c, c * vp:(c + 1) * vp] = 1.0
        vlane[0, c * vp:(c + 1) * vp] = np.arange(vp)

    # --- ELMo-style LM mixing folded into the layer-0 lm block of the input projection ---
    w_lm = np.asarray(params["lm_weights"], f32) * float(np.asarray(params["lm_scaling"]))
    w_mix = np.zeros((LM_SIZE * LM_LAYERS, LM_SIZE), f32)
    for d in range(LM_SIZE):
        for k in range(LM_LAYERS):
            w_mix[d * LM_LAYERS + k, d] = w_lm[k]

    # --- BiLSTM weights: interleave fwd/bwd gate columns -> [i_f i_b f_f f_b g_f g_b o_f o_b] ---
    def interleave(wf, wb):
        out = np.zeros((wf.shape[0], 8 * H), f32)
        for gi in range(4):
            out[:, (2 * gi) * H:(2 * gi + 1) * H] = wf[:, gi * H:(gi + 1) * H]
            out[:, (2 * gi + 1) * H:(2 * gi + 2) * H] = wb[:, gi * H:(gi + 1) * H]
        return out

    enc = params["encoder"]
    lstm = enc["lstm"]
    zeros_h4 = np.zeros((H, 4 * H), f32)
    zeros_2h4 = np.zeros((2 * H, 4 * H), f32)

    l0 = lstm[0]
    wih0 = interleave(np.asarray(l0["wih_f"], f32), np.asarray(l0["wih_b"], f32))     # [56, 128]
    l0_b = interleave(np.asarray(l0["b_f"], f32)[None, :], np.asarray(l0["b_b"], f32)[None, :])
    l0_wg = wih0[0:GLOVE_DIM]
    l0_wc = wih0[GLOVE_DIM:GLOVE_DIM + FILTER_SIZE]
    l0_wl = w_mix @ wih0[GLOVE_DIM + FILTER_SIZE:]

    fmask = np.zeros((1, 8 * H), f32)
    for gi in range(4):
        fmask[0, (2 * gi) * H:(2 * gi + 1) * H] = 1.0

    wih_f12 = np.stack([interleave(np.asarray(lstm[l]["wih_f"], f32), zeros_2h4) for l in (1, 2)])
    wih_b12 = np.stack([interleave(zeros_2h4, np.asarray(lstm[l]["wih_b"], f32)) for l in (1, 2)])
    b12 = np.stack([interleave(np.asarray(lstm[l]["b_f"], f32)[None, :],
                               np.asarray(lstm[l]["b_b"], f32)[None, :]) for l in (1, 2)])
    whh = np.stack([np.concatenate(
        [interleave(np.asarray(lstm[l]["whh_f"], f32), zeros_h4),
         interleave(zeros_h4, np.asarray(lstm[l]["whh_b"], f32))], axis=0) for l in range(3)])

    # --- static permutation / flatten-by-sentence gather matrices (text_lens are static) ---
    p_tm = np.zeros((nt, nt), f32)     # sentence-major -> time-major
    p_rev = np.zeros((nt, nt), f32)    # sentence-major -> time-major, time reversed
    r_rev = np.zeros((nt, nt), f32)    # time reversal in time-major layout
    for s in range(ns):
        for t in range(T):
            p_tm[t * B + s, s * msl + t] = 1.0
            p_rev[t * B + s, s * msl + (T - 1 - t)] = 1.0
    for s in range(B):
        for t in range(T):
            r_rev[t * B + s, (T - 1 - t) * B + s] = 1.0

    g_ctx = np.zeros((p_pad, nt), f32)
    g_head = np.zeros((p_pad, nt), f32)
    off = 0
    for s in range(ns):
        for t in range(lens[s]):
            g_ctx[off + t, t * B + s] = 1.0
            g_head[off + t, s * msl + t] = 1.0
        off += lens[s]

    men = params["mention"]
    sc = params["scorer"]
    args = tuple(jnp.asarray(a) for a in (
        rep, vlane, conv_w, conv_b,
        l0_wg, l0_wc, l0_wl, l0_b, fmask,
        p_tm, p_rev, r_rev,
        wih_f12, wih_b12, b12, whh,
        np.asarray(enc["hw_w"], f32), np.asarray(enc["hw_b"], f32).reshape(1, -1),
        g_ctx, g_head,
        np.asarray(men["attn_w"], f32).reshape(1, -1), np.asarray(men["attn_b"], f32).reshape(1, 1),
        np.asarray(men["span_width_emb"], f32),
        np.asarray(sc["w1"], f32), np.asarray(sc["b1"], f32).reshape(1, -1),
        np.asarray(sc["w2"], f32), np.asarray(sc["b2"], f32).reshape(1, -1),
        np.asarray(sc["w3"], f32), np.asarray(sc["b3"], f32).reshape(1, -1),
    ))
    return {"args": args}


# ------------------------- jitted wrapper: metadata reshapes + ONE pallas_call -------------------------
def is_model_forward(prepared, context_word_emb, head_word_emb, lm_emb, char_index,
                     gold_starts, gold_ends, features):
    ns, msl = context_word_emb.shape[:2]
    nt = ns * msl
    m = features.shape[0]

    runtime = (
        char_index.reshape(nt, -1).astype(jnp.int32),
        context_word_emb.reshape(nt, -1).astype(jnp.float32),
        head_word_emb.reshape(nt, -1).astype(jnp.float32),
        lm_emb.reshape(nt, -1).astype(jnp.float32),
        gold_starts.reshape(m, 1).astype(jnp.int32),
        gold_ends.reshape(m, 1).astype(jnp.int32),
        features.astype(jnp.float32),
    )
    args = runtime + tuple(prepared["args"])

    kernel = functools.partial(
        _ismodel_kernel, num_sents=ns, max_sent_len=msl, ctx_size=CTX_SIZE,
        max_span_width=MAX_SPAN_WIDTH, filter_size=FILTER_SIZE)

    scores = pl.pallas_call(
        kernel,
        out_shape=jax.ShapeDtypeStruct((m, NUM_CLASSES), jnp.float32),
        in_specs=[pl.BlockSpec(memory_space=pltpu.MemorySpace.VMEM)] * len(args),
        out_specs=pl.BlockSpec(memory_space=pltpu.MemorySpace.VMEM),
        scratch_shapes=[pltpu.VMEM((nt, 2 * CTX_SIZE), jnp.float32)],
    )(*args)
    # TODO(synk): training branch (annotator-confusion loss) requires boolean-mask dynamic shapes
    # and dropout RNG; only the inference (is_training=False) path is implemented.
    return scores, None, None, None


# ------------------------- deterministic parameter init -------------------------
def init_params(key):
    ks = iter(jax.random.split(key, 64))

    def nrm(shape, scale=0.1):
        return scale * jax.random.normal(next(ks), shape, dtype=jnp.float32)

    char_emb = nrm((CHAR_VOCAB + 1, CHAR_EMB_SIZE)).at[0].set(0.0)   # padding_idx=0
    conv_w = [nrm((FILTER_SIZE, MAX_WORD_LEN, kw)) for kw in FILTER_WIDTHS]
    conv_b = [nrm((FILTER_SIZE,)) for _ in FILTER_WIDTHS]
    lstm_layers = []
    for layer in range(3):
        E = LSTM_EMB_SIZE if layer == 0 else 2 * CTX_SIZE
        lstm_layers.append(dict(
            wih_f=nrm((E, 4 * CTX_SIZE)), whh_f=nrm((CTX_SIZE, 4 * CTX_SIZE)), b_f=nrm((4 * CTX_SIZE,)),
            wih_b=nrm((E, 4 * CTX_SIZE)), whh_b=nrm((CTX_SIZE, 4 * CTX_SIZE)), b_b=nrm((4 * CTX_SIZE,)),
        ))
    return dict(
        char_cnn=dict(char_emb=char_emb, conv_w=conv_w, conv_b=conv_b),
        lm_weights=nrm((LM_LAYERS,)),
        lm_scaling=jnp.asarray(1.0, jnp.float32),
        encoder=dict(lstm=lstm_layers,
                     hw_w=nrm((2 * CTX_SIZE, 2 * CTX_SIZE)),
                     hw_b=nrm((2 * CTX_SIZE,))),
        mention=dict(span_width_emb=nrm((MAX_SPAN_WIDTH, FEATURE_SIZE)),
                     attn_w=nrm((2 * CTX_SIZE, 1)),
                     attn_b=nrm((1,))),
        scorer=dict(w1=nrm((SPAN_EMB_DIM, HIDDEN)), b1=nrm((HIDDEN,)),
                    w2=nrm((HIDDEN, HIDDEN)), b2=nrm((HIDDEN,)),
                    w3=nrm((HIDDEN, NUM_CLASSES)), b3=nrm((NUM_CLASSES,))),
    )


if __name__ == "__main__":
    key = jax.random.PRNGKey(0)
    kp, k1, k2, k3, k4, k5 = jax.random.split(key, 6)
    params = init_params(kp)

    context_word_emb = jax.random.normal(k1, (NUM_SENTS, MAX_SENT_LEN, GLOVE_DIM), dtype=jnp.float32)
    head_word_emb = jax.random.normal(k2, (NUM_SENTS, MAX_SENT_LEN, GLOVE_DIM), dtype=jnp.float32)
    lm_emb = jax.random.normal(k3, (NUM_SENTS, MAX_SENT_LEN, LM_SIZE, LM_LAYERS), dtype=jnp.float32)
    char_index = jax.random.randint(k4, (NUM_SENTS, MAX_SENT_LEN, MAX_WORD_LEN),
                                    0, CHAR_VOCAB + 1, dtype=jnp.int32)
    features = jax.random.normal(k5, (NUM_MENTIONS, FEAT_EMB_SIZE), dtype=jnp.float32)
    text_lens = np.array([8, 6], dtype=np.int32)      # static -> folded into host gather matrices
    gold_starts = jnp.array([0, 3, 5, 9, 12], dtype=jnp.int32)
    gold_ends = jnp.array([1, 3, 7, 11, 13], dtype=jnp.int32)

    prepared = prepare_params(params, text_lens)      # one-time, outside jit

    forward = jax.jit(is_model_forward)
    softmax_scores, _, _, _ = forward(prepared, context_word_emb, head_word_emb, lm_emb,
                                      char_index, gold_starts, gold_ends, features)
    softmax_scores = jax.block_until_ready(softmax_scores)

    assert softmax_scores.shape == (NUM_MENTIONS, NUM_CLASSES)
    assert bool(jnp.all(jnp.isfinite(softmax_scores)))
    print("KERNEL_OK")
</pallas_src>

<mosaic_0001>
module attributes {stable_mosaic.version = 11 : i64} {
  func.func @_ismodel_kernel(%arg0: memref<16x8xi32, #tpu.memory_space<vmem>>, %arg1: memref<16x32xf32, #tpu.memory_space<vmem>>, %arg2: memref<16x32xf32, #tpu.memory_space<vmem>>, %arg3: memref<16x48xf32, #tpu.memory_space<vmem>>, %arg4: memref<5x1xi32, #tpu.memory_space<vmem>>, %arg5: memref<5x1xi32, #tpu.memory_space<vmem>>, %arg6: memref<5x6xf32, #tpu.memory_space<vmem>>, %arg7: memref<8x256xf32, #tpu.memory_space<vmem>>, %arg8: memref<1x256xf32, #tpu.memory_space<vmem>>, %arg9: memref<256x104xf32, #tpu.memory_space<vmem>>, %arg10: memref<1x104xf32, #tpu.memory_space<vmem>>, %arg11: memref<32x128xf32, #tpu.memory_space<vmem>>, %arg12: memref<8x128xf32, #tpu.memory_space<vmem>>, %arg13: memref<48x128xf32, #tpu.memory_space<vmem>>, %arg14: memref<1x128xf32, #tpu.memory_space<vmem>>, %arg15: memref<1x128xf32, #tpu.memory_space<vmem>>, %arg16: memref<16x16xf32, #tpu.memory_space<vmem>>, %arg17: memref<16x16xf32, #tpu.memory_space<vmem>>, %arg18: memref<16x16xf32, #tpu.memory_space<vmem>>, %arg19: memref<2x32x128xf32, #tpu.memory_space<vmem>>, %arg20: memref<2x32x128xf32, #tpu.memory_space<vmem>>, %arg21: memref<2x1x128xf32, #tpu.memory_space<vmem>>, %arg22: memref<3x32x128xf32, #tpu.memory_space<vmem>>, %arg23: memref<32x32xf32, #tpu.memory_space<vmem>>, %arg24: memref<1x32xf32, #tpu.memory_space<vmem>>, %arg25: memref<16x16xf32, #tpu.memory_space<vmem>>, %arg26: memref<16x16xf32, #tpu.memory_space<vmem>>, %arg27: memref<1x32xf32, #tpu.memory_space<vmem>>, %arg28: memref<1x1xf32, #tpu.memory_space<vmem>>, %arg29: memref<4x8xf32, #tpu.memory_space<vmem>>, %arg30: memref<118x32xf32, #tpu.memory_space<vmem>>, %arg31: memref<1x32xf32, #tpu.memory_space<vmem>>, %arg32: memref<32x32xf32, #tpu.memory_space<vmem>>, %arg33: memref<1x32xf32, #tpu.memory_space<vmem>>, %arg34: memref<32x4xf32, #tpu.memory_space<vmem>>, %arg35: memref<1x4xf32, #tpu.memory_space<vmem>>, %arg36: memref<5x4xf32, #tpu.memory_space<vmem>>, %arg37: memref<16x32xf32, #tpu.memory_space<vmem>>) attributes {dimension_semantics = [], scalar_prefetch = 0 : i64, scratch_operands = 1 : i64, tpu.core_type = #tpu.core_type<tc>} {
    %c0 = arith.constant 0 : index
    %c0_0 = arith.constant 0 : index
    %0 = vector.load %arg0[%c0, %c0_0] : memref<16x8xi32, #tpu.memory_space<vmem>>, vector<16x8xi32>
    %1 = arith.sitofp %0 : vector<16x8xi32> to vector<16x8xf32>
    %c0_1 = arith.constant 0 : index
    %c0_2 = arith.constant 0 : index
    %2 = vector.load %arg7[%c0_1, %c0_2] : memref<8x256xf32, #tpu.memory_space<vmem>>, vector<8x256xf32>
    %cst = arith.constant dense<0.000000e+00> : vector<16x256xf32>
    %3 = tpu.matmul %1, %2, %cst {dimension_numbers = #tpu.dot_dimension_numbers<[1], [0], [0], [1], [0, 0, 1, 1], [], []>} : vector<16x8xf32>, vector<8x256xf32>, vector<16x256xf32> -> vector<16x256xf32>
    %c0_3 = arith.constant 0 : index
    %c0_4 = arith.constant 0 : index
    %4 = vector.load %arg8[%c0_3, %c0_4] : memref<1x256xf32, #tpu.memory_space<vmem>>, vector<1x256xf32>
    %5 = vector.broadcast %4 : vector<1x256xf32> to vector<16x256xf32>
    %6 = arith.subf %3, %5 : vector<16x256xf32>
    %7 = math.absf %6 : vector<16x256xf32>
    %cst_5 = arith.constant 5.000000e-01 : f32
    %8 = vector.broadcast %cst_5 : f32 to vector<16x256xf32>
    %9 = arith.cmpf olt, %7, %8 : vector<16x256xf32>
    %cst_6 = arith.constant 1.000000e+00 : f32
    %cst_7 = arith.constant 0.000000e+00 : f32
    %10 = vector.broadcast %cst_6 : f32 to vector<16x256xf32>
    %11 = vector.broadcast %cst_7 : f32 to vector<16x256xf32>
    %12 = arith.select %9, %10, %11 : vector<16x256xi1>, vector<16x256xf32>
    %c0_8 = arith.constant 0 : index
    %c0_9 = arith.constant 0 : index
    %13 = vector.load %arg9[%c0_8, %c0_9] : memref<256x104xf32, #tpu.memory_space<vmem>>, vector<256x104xf32>
    %cst_10 = arith.constant dense<0.000000e+00> : vector<16x104xf32>
    %14 = tpu.matmul %12, %13, %cst_10 {dimension_numbers = #tpu.dot_dimension_numbers<[1], [0], [0], [1], [0, 0, 1, 1], [], []>} : vector<16x256xf32>, vector<256x104xf32>, vector<16x104xf32> -> vector<16x104xf32>
    %c0_11 = arith.constant 0 : index
    %c0_12 = arith.constant 0 : index
    %15 = vector.load %arg10[%c0_11, %c0_12] : memref<1x104xf32, #tpu.memory_space<vmem>>, vector<1x104xf32>
    %16 = vector.broadcast %15 : vector<1x104xf32> to vector<16x104xf32>
    %17 = arith.addf %14, %16 : vector<16x104xf32>
    %cst_13 = arith.constant 0.000000e+00 : f32
    %18 = vector.broadcast %cst_13 : f32 to vector<16x104xf32>
    %19 = arith.maximumf %17, %18 : vector<16x104xf32>
    %20 = vector.extract_strided_slice %19 {offsets = [0, 0], sizes = [16, 8], strides = [1, 1]} : vector<16x104xf32> to vector<16x8xf32>
    %21 = vector.extract_strided_slice %19 {offsets = [0, 8], sizes = [16, 8], strides = [1, 1]} : vector<16x104xf32> to vector<16x8xf32>
    %22 = arith.maximumf %20, %21 : vector<16x8xf32>
    %23 = vector.extract_strided_slice %19 {offsets = [0, 16], sizes = [16, 8], strides = [1, 1]} : vector<16x104xf32> to vector<16x8xf32>
    %24 = arith.maximumf %22, %23 : vector<16x8xf32>
    %25 = vector.extract_strided_slice %19 {offsets = [0, 24], sizes = [16, 8], strides = [1, 1]} : vector<16x104xf32> to vector<16x8xf32>
    %26 = arith.maximumf %24, %25 : vector<16x8xf32>
    %27 = vector.extract_strided_slice %19 {offsets = [0, 32], sizes = [16, 8], strides = [1, 1]} : vector<16x104xf32> to vector<16x8xf32>
    %28 = arith.maximumf %26, %27 : vector<16x8xf32>
    %29 = vector.extract_strided_slice %19 {offsets = [0, 40], sizes = [16, 8], strides = [1, 1]} : vector<16x104xf32> to vector<16x8xf32>
    %30 = arith.maximumf %28, %29 : vector<16x8xf32>
    %31 = vector.extract_strided_slice %19 {offsets = [0, 48], sizes = [16, 8], strides = [1, 1]} : vector<16x104xf32> to vector<16x8xf32>
    %32 = arith.maximumf %30, %31 : vector<16x8xf32>
    %33 = vector.extract_strided_slice %19 {offsets = [0, 56], sizes = [16, 8], strides = [1, 1]} : vector<16x104xf32> to vector<16x8xf32>
    %34 = arith.maximumf %32, %33 : vector<16x8xf32>
    %35 = vector.extract_strided_slice %19 {offsets = [0, 64], sizes = [16, 8], strides = [1, 1]} : vector<16x104xf32> to vector<16x8xf32>
    %36 = arith.maximumf %34, %35 : vector<16x8xf32>
    %37 = vector.extract_strided_slice %19 {offsets = [0, 72], sizes = [16, 8], strides = [1, 1]} : vector<16x104xf32> to vector<16x8xf32>
    %38 = arith.maximumf %36, %37 : vector<16x8xf32>
    %39 = vector.extract_strided_slice %19 {offsets = [0, 80], sizes = [16, 8], strides = [1, 1]} : vector<16x104xf32> to vector<16x8xf32>
    %40 = arith.maximumf %38, %39 : vector<16x8xf32>
    %41 = vector.extract_strided_slice %19 {offsets = [0, 88], sizes = [16, 8], strides = [1, 1]} : vector<16x104xf32> to vector<16x8xf32>
    %42 = arith.maximumf %40, %41 : vector<16x8xf32>
    %43 = vector.extract_strided_slice %19 {offsets = [0, 96], sizes = [16, 8], strides = [1, 1]} : vector<16x104xf32> to vector<16x8xf32>
    %44 = arith.maximumf %42, %43 : vector<16x8xf32>
    %c0_14 = arith.constant 0 : index
    %c0_15 = arith.constant 0 : index
    %45 = vector.load %arg1[%c0_14, %c0_15] : memref<16x32xf32, #tpu.memory_space<vmem>>, vector<16x32xf32>
    %c0_16 = arith.constant 0 : index
    %c0_17 = arith.constant 0 : index
    %46 = vector.load %arg11[%c0_16, %c0_17] : memref<32x128xf32, #tpu.memory_space<vmem>>, vector<32x128xf32>
    %cst_18 = arith.constant dense<0.000000e+00> : vector<16x128xf32>
    %47 = tpu.matmul %45, %46, %cst_18 {dimension_numbers = #tpu.dot_dimension_numbers<[1], [0], [0], [1], [0, 0, 1, 1], [], []>} : vector<16x32xf32>, vector<32x128xf32>, vector<16x128xf32> -> vector<16x128xf32>
    %c0_19 = arith.constant 0 : index
    %c0_20 = arith.constant 0 : index
    %48 = vector.load %arg12[%c0_19, %c0_20] : memref<8x128xf32, #tpu.memory_space<vmem>>, vector<8x128xf32>
    %cst_21 = arith.constant dense<0.000000e+00> : vector<16x128xf32>
    %49 = tpu.matmul %44, %48, %cst_21 {dimension_numbers = #tpu.dot_dimension_numbers<[1], [0], [0], [1], [0, 0, 1, 1], [], []>} : vector<16x8xf32>, vector<8x128xf32>, vector<16x128xf32> -> vector<16x128xf32>
    %50 = arith.addf %47, %49 : vector<16x128xf32>
    %c0_22 = arith.constant 0 : index
    %c0_23 = arith.constant 0 : index
    %51 = vector.load %arg3[%c0_22, %c0_23] : memref<16x48xf32, #tpu.memory_space<vmem>>, vector<16x48xf32>
    %c0_24 = arith.constant 0 : index
    %c0_25 = arith.constant 0 : index
    %52 = vector.load %arg13[%c0_24, %c0_25] : memref<48x128xf32, #tpu.memory_space<vmem>>, vector<48x128xf32>
    %cst_26 = arith.constant dense<0.000000e+00> : vector<16x128xf32>
    %53 = tpu.matmul %51, %52, %cst_26 {dimension_numbers = #tpu.dot_dimension_numbers<[1], [0], [0], [1], [0, 0, 1, 1], [], []>} : vector<16x48xf32>, vector<48x128xf32>, vector<16x128xf32> -> vector<16x128xf32>
    %54 = arith.addf %50, %53 : vector<16x128xf32>
    %c0_27 = arith.constant 0 : index
    %c0_28 = arith.constant 0 : index
    %55 = vector.load %arg14[%c0_27, %c0_28] : memref<1x128xf32, #tpu.memory_space<vmem>>, vector<1x128xf32>
    %56 = vector.broadcast %55 : vector<1x128xf32> to vector<16x128xf32>
    %57 = arith.addf %54, %56 : vector<16x128xf32>
    %c0_29 = arith.constant 0 : index
    %c0_30 = arith.constant 0 : index
    %58 = vector.load %arg15[%c0_29, %c0_30] : memref<1x128xf32, #tpu.memory_space<vmem>>, vector<1x128xf32>
    %c0_31 = arith.constant 0 : index
    %c0_32 = arith.constant 0 : index
    %59 = vector.load %arg16[%c0_31, %c0_32] : memref<16x16xf32, #tpu.memory_space<vmem>>, vector<16x16xf32>
    %c0_33 = arith.constant 0 : index
    %c0_34 = arith.constant 0 : index
    %60 = vector.load %arg17[%c0_33, %c0_34] : memref<16x16xf32, #tpu.memory_space<vmem>>, vector<16x16xf32>
    %c0_35 = arith.constant 0 : index
    %c0_36 = arith.constant 0 : index
    %61 = vector.load %arg18[%c0_35, %c0_36] : memref<16x16xf32, #tpu.memory_space<vmem>>, vector<16x16xf32>
    %62 = vector.broadcast %58 : vector<1x128xf32> to vector<16x128xf32>
    %63 = arith.mulf %57, %62 : vector<16x128xf32>
    %cst_37 = arith.constant dense<0.000000e+00> : vector<16x128xf32>
    %64 = tpu.matmul %59, %63, %cst_37 {dimension_numbers = #tpu.dot_dimension_numbers<[1], [0], [0], [1], [0, 0, 1, 1], [], []>} : vector<16x16xf32>, vector<16x128xf32>, vector<16x128xf32> -> vector<16x128xf32>
    %cst_38 = arith.constant 1.000000e+00 : f32
    %65 = vector.broadcast %cst_38 : f32 to vector<1x128xf32>
    %66 = arith.subf %65, %58 : vector<1x128xf32>
    %67 = vector.broadcast %66 : vector<1x128xf32> to vector<16x128xf32>
    %68 = arith.mulf %57, %67 : vector<16x128xf32>
    %cst_39 = arith.constant dense<0.000000e+00> : vector<16x128xf32>
    %69 = tpu.matmul %60, %68, %cst_39 {dimension_numbers = #tpu.dot_dimension_numbers<[1], [0], [0], [1], [0, 0, 1, 1], [], []>} : vector<16x16xf32>, vector<16x128xf32>, vector<16x128xf32> -> vector<16x128xf32>
    %70 = arith.addf %64, %69 : vector<16x128xf32>
    %71 = tpu.iota {dimensions = array<i32: 1>} : vector<16x32xi32>
    %c0_40 = arith.constant 0 : index
    %c0_41 = arith.constant 0 : index
    %72 = vector.load %arg23[%c0_40, %c0_41] : memref<32x32xf32, #tpu.memory_space<vmem>>, vector<32x32xf32>
    %c0_42 = arith.constant 0 : index
    %c0_43 = arith.constant 0 : index
    %73 = vector.load %arg24[%c0_42, %c0_43] : memref<1x32xf32, #tpu.memory_space<vmem>>, vector<1x32xf32>
    %c0_44 = arith.constant 0 : index
    %c0_45 = arith.constant 0 : index
    %c0_46 = arith.constant 0 : index
    %74 = vector.load %arg22[%c0_44, %c0_45, %c0_46] : memref<3x32x128xf32, #tpu.memory_space<vmem>>, vector<1x32x128xf32>
    %75 = vector.shape_cast %74 : vector<1x32x128xf32> to vector<32x128xf32>
    %cst_47 = arith.constant 0.000000e+00 : f32
    %76 = vector.broadcast %cst_47 : f32 to vector<2x32xf32>
    %cst_48 = arith.constant 0.000000e+00 : f32
    %77 = vector.broadcast %cst_48 : f32 to vector<2x32xf32>
    %78 = vector.extract_strided_slice %70 {offsets = [0, 0], sizes = [2, 128], strides = [1, 1]} : vector<16x128xf32> to vector<2x128xf32>
    %cst_49 = arith.constant dense<0.000000e+00> : vector<2x128xf32>
    %79 = tpu.matmul %76, %75, %cst_49 {dimension_numbers = #tpu.dot_dimension_numbers<[1], [0], [0], [1], [0, 0, 1, 1], [], []>} : vector<2x32xf32>, vector<32x128xf32>, vector<2x128xf32> -> vector<2x128xf32>
    %80 = arith.addf %78, %79 : vector<2x128xf32>
    %81 = vector.extract_strided_slice %80 {offsets = [0, 0], sizes = [2, 64], strides = [1, 1]} : vector<2x128xf32> to vector<2x64xf32>
    %82 = arith.negf %81 : vector<2x64xf32>
    %83 = math.exp %82 : vector<2x64xf32>
    %cst_50 = arith.constant 1.000000e+00 : f32
    %84 = vector.broadcast %cst_50 : f32 to vector<2x64xf32>
    %85 = arith.addf %84, %83 : vector<2x64xf32>
    %86 = arith.divf %84, %85 : vector<2x64xf32>
    %87 = vector.extract_strided_slice %80 {offsets = [0, 64], sizes = [2, 32], strides = [1, 1]} : vector<2x128xf32> to vector<2x32xf32>
    %88 = math.tanh %87 : vector<2x32xf32>
    %89 = vector.extract_strided_slice %80 {offsets = [0, 96], sizes = [2, 32], strides = [1, 1]} : vector<2x128xf32> to vector<2x32xf32>
    %90 = arith.negf %89 : vector<2x32xf32>
    %91 = math.exp %90 : vector<2x32xf32>
    %cst_51 = arith.constant 1.000000e+00 : f32
    %92 = vector.broadcast %cst_51 : f32 to vector<2x32xf32>
    %93 = arith.addf %92, %91 : vector<2x32xf32>
    %94 = arith.divf %92, %93 : vector<2x32xf32>
    %95 = vector.extract_strided_slice %86 {offsets = [0, 32], sizes = [2, 32], strides = [1, 1]} : vector<2x64xf32> to vector<2x32xf32>
    %96 = arith.mulf %95, %77 : vector<2x32xf32>
    %97 = vector.extract_strided_slice %86 {offsets = [0, 0], sizes = [2, 32], strides = [1, 1]} : vector<2x64xf32> to vector<2x32xf32>
    %98 = arith.mulf %97, %88 : vector<2x32xf32>
    %99 = arith.addf %96, %98 : vector<2x32xf32>
    %100 = math.tanh %99 : vector<2x32xf32>
    %101 = arith.mulf %94, %100 : vector<2x32xf32>
    %c0_52 = arith.constant 0 : index
    %c0_53 = arith.constant 0 : index
    %102 = vector.load %arg37[%c0_52, %c0_53] : memref<16x32xf32, #tpu.memory_space<vmem>>, vector<2x32xf32>
    tpu.vector_store %arg37[%c0_52, %c0_53], %101 {strides = array<i32>} : memref<16x32xf32, #tpu.memory_space<vmem>>, vector<2x32xf32>,
    %103 = vector.extract_strided_slice %70 {offsets = [2, 0], sizes = [2, 128], strides = [1, 1]} : vector<16x128xf32> to vector<2x128xf32>
    %cst_54 = arith.constant dense<0.000000e+00> : vector<2x128xf32>
    %104 = tpu.matmul %101, %75, %cst_54 {dimension_numbers = #tpu.dot_dimension_numbers<[1], [0], [0], [1], [0, 0, 1, 1], [], []>} : vector<2x32xf32>, vector<32x128xf32>, vector<2x128xf32> -> vector<2x128xf32>
    %105 = arith.addf %103, %104 : vector<2x128xf32>
    %106 = vector.extract_strided_slice %105 {offsets = [0, 0], sizes = [2, 64], strides = [1, 1]} : vector<2x128xf32> to vector<2x64xf32>
    %107 = arith.negf %106 : vector<2x64xf32>
    %108 = math.exp %107 : vector<2x64xf32>
    %cst_55 = arith.constant 1.000000e+00 : f32
    %109 = vector.broadcast %cst_55 : f32 to vector<2x64xf32>
    %110 = arith.addf %109, %108 : vector<2x64xf32>
    %111 = arith.divf %109, %110 : vector<2x64xf32>
    %112 = vector.extract_strided_slice %105 {offsets = [0, 64], sizes = [2, 32], strides = [1, 1]} : vector<2x128xf32> to vector<2x32xf32>
    %113 = math.tanh %112 : vector<2x32xf32>
    %114 = vector.extract_strided_slice %105 {offsets = [0, 96], sizes = [2, 32], strides = [1, 1]} : vector<2x128xf32> to vector<2x32xf32>
    %115 = arith.negf %114 : vector<2x32xf32>
    %116 = math.exp %115 : vector<2x32xf32>
    %cst_56 = arith.constant 1.000000e+00 : f32
    %117 = vector.broadcast %cst_56 : f32 to vector<2x32xf32>
    %118 = arith.addf %117, %116 : vector<2x32xf32>
    %119 = arith.divf %117, %118 : vector<2x32xf32>
    %120 = vector.extract_strided_slice %111 {offsets = [0, 32], sizes = [2, 32], strides = [1, 1]} : vector<2x64xf32> to vector<2x32xf32>
    %121 = arith.mulf %120, %99 : vector<2x32xf32>
    %122 = vector.extract_strided_slice %111 {offsets = [0, 0], sizes = [2, 32], strides = [1, 1]} : vector<2x64xf32> to vector<2x32xf32>
    %123 = arith.mulf %122, %113 : vector<2x32xf32>
    %124 = arith.addf %121, %123 : vector<2x32xf32>
    %125 = math.tanh %124 : vector<2x32xf32>
    %126 = arith.mulf %119, %125 : vector<2x32xf32>
    %c2 = arith.constant 2 : index
    %c0_57 = arith.constant 0 : index
    %127 = vector.load %arg37[%c2, %c0_57] : memref<16x32xf32, #tpu.memory_space<vmem>>, vector<2x32xf32>
    tpu.vector_store %arg37[%c2, %c0_57], %126 {strides = array<i32>} : memref<16x32xf32, #tpu.memory_space<vmem>>, vector<2x32xf32>,
    %128 = vector.extract_strided_slice %70 {offsets = [4, 0], sizes = [2, 128], strides = [1, 1]} : vector<16x128xf32> to vector<2x128xf32>
    %cst_58 = arith.constant dense<0.000000e+00> : vector<2x128xf32>
    %129 = tpu.matmul %126, %75, %cst_58 {dimension_numbers = #tpu.dot_dimension_numbers<[1], [0], [0], [1], [0, 0, 1, 1], [], []>} : vector<2x32xf32>, vector<32x128xf32>, vector<2x128xf32> -> vector<2x128xf32>
    %130 = arith.addf %128, %129 : vector<2x128xf32>
    %131 = vector.extract_strided_slice %130 {offsets = [0, 0], sizes = [2, 64], strides = [1, 1]} : vector<2x128xf32> to vector<2x64xf32>
    %132 = arith.negf %131 : vector<2x64xf32>
    %133 = math.exp %132 : vector<2x64xf32>
    %cst_59 = arith.constant 1.000000e+00 : f32
    %134 = vector.broadcast %cst_59 : f32 to vector<2x64xf32>
    %135 = arith.addf %134, %133 : vector<2x64xf32>
    %136 = arith.divf %134, %135 : vector<2x64xf32>
    %137 = vector.extract_strided_slice %130 {offsets = [0, 64], sizes = [2, 32], strides = [1, 1]} : vector<2x128xf32> to vector<2x32xf32>
    %138 = math.tanh %137 : vector<2x32xf32>
    %139 = vector.extract_strided_slice %130 {offsets = [0, 96], sizes = [2, 32], strides = [1, 1]} : vector<2x128xf32> to vector<2x32xf32>
    %140 = arith.negf %139 : vector<2x32xf32>
    %141 = math.exp %140 : vector<2x32xf32>
    %cst_60 = arith.constant 1.000000e+00 : f32
    %142 = vector.broadcast %cst_60 : f32 to vector<2x32xf32>
    %143 = arith.addf %142, %141 : vector<2x32xf32>
    %144 = arith.divf %142, %143 : vector<2x32xf32>
    %145 = vector.extract_strided_slice %136 {offsets = [0, 32], sizes = [2, 32], strides = [1, 1]} : vector<2x64xf32> to vector<2x32xf32>
    %146 = arith.mulf %145, %124 : vector<2x32xf32>
    %147 = vector.extract_strided_slice %136 {offsets = [0, 0], sizes = [2, 32], strides = [1, 1]} : vector<2x64xf32> to vector<2x32xf32>
    %148 = arith.mulf %147, %138 : vector<2x32xf32>
    %149 = arith.addf %146, %148 : vector<2x32xf32>
    %150 = math.tanh %149 : vector<2x32xf32>
    %151 = arith.mulf %144, %150 : vector<2x32xf32>
    %c4 = arith.constant 4 : index
    %c0_61 = arith.constant 0 : index
    %152 = vector.load %arg37[%c4, %c0_61] : memref<16x32xf32, #tpu.memory_space<vmem>>, vector<2x32xf32>
    tpu.vector_store %arg37[%c4, %c0_61], %151 {strides = array<i32>} : memref<16x32xf32, #tpu.memory_space<vmem>>, vector<2x32xf32>,
    %153 = vector.extract_strided_slice %70 {offsets = [6, 0], sizes = [2, 128], strides = [1, 1]} : vector<16x128xf32> to vector<2x128xf32>
    %cst_62 = arith.constant dense<0.000000e+00> : vector<2x128xf32>
    %154 = tpu.matmul %151, %75, %cst_62 {dimension_numbers = #tpu.dot_dimension_numbers<[1], [0], [0], [1], [0, 0, 1, 1], [], []>} : vector<2x32xf32>, vector<32x128xf32>, vector<2x128xf32> -> vector<2x128xf32>
    %155 = arith.addf %153, %154 : vector<2x128xf32>
    %156 = vector.extract_strided_slice %155 {offsets = [0, 0], sizes = [2, 64], strides = [1, 1]} : vector<2x128xf32> to vector<2x64xf32>
    %157 = arith.negf %156 : vector<2x64xf32>
    %158 = math.exp %157 : vector<2x64xf32>
    %cst_63 = arith.constant 1.000000e+00 : f32
    %159 = vector.broadcast %cst_63 : f32 to vector<2x64xf32>
    %160 = arith.addf %159, %158 : vector<2x64xf32>
    %161 = arith.divf %159, %160 : vector<2x64xf32>
    %162 = vector.extract_strided_slice %155 {offsets = [0, 64], sizes = [2, 32], strides = [1, 1]} : vector<2x128xf32> to vector<2x32xf32>
    %163 = math.tanh %162 : vector<2x32xf32>
    %164 = vector.extract_strided_slice %155 {offsets = [0, 96], sizes = [2, 32], strides = [1, 1]} : vector<2x128xf32> to vector<2x32xf32>
    %165 = arith.negf %164 : vector<2x32xf32>
    %166 = math.exp %165 : vector<2x32xf32>
    %cst_64 = arith.constant 1.000000e+00 : f32
    %167 = vector.broadcast %cst_64 : f32 to vector<2x32xf32>
    %168 = arith.addf %167, %166 : vector<2x32xf32>
    %169 = arith.divf %167, %168 : vector<2x32xf32>
    %170 = vector.extract_strided_slice %161 {offsets = [0, 32], sizes = [2, 32], strides = [1, 1]} : vector<2x64xf32> to vector<2x32xf32>
    %171 = arith.mulf %170, %149 : vector<2x32xf32>
    %172 = vector.extract_strided_slice %161 {offsets = [0, 0], sizes = [2, 32], strides = [1, 1]} : vector<2x64xf32> to vector<2x32xf32>
    %173 = arith.mulf %172, %163 : vector<2x32xf32>
    %174 = arith.addf %171, %173 : vector<2x32xf32>
    %175 = math.tanh %174 : vector<2x32xf32>
    %176 = arith.mulf %169, %175 : vector<2x32xf32>
    %c6 = arith.constant 6 : index
    %c0_65 = arith.constant 0 : index
    %177 = vector.load %arg37[%c6, %c0_65] : memref<16x32xf32, #tpu.memory_space<vmem>>, vector<2x32xf32>
    tpu.vector_store %arg37[%c6, %c0_65], %176 {strides = array<i32>} : memref<16x32xf32, #tpu.memory_space<vmem>>, vector<2x32xf32>,
    %178 = vector.extract_strided_slice %70 {offsets = [8, 0], sizes = [2, 128], strides = [1, 1]} : vector<16x128xf32> to vector<2x128xf32>
    %cst_66 = arith.constant dense<0.000000e+00> : vector<2x128xf32>
    %179 = tpu.matmul %176, %75, %cst_66 {dimension_numbers = #tpu.dot_dimension_numbers<[1], [0], [0], [1], [0, 0, 1, 1], [], []>} : vector<2x32xf32>, vector<32x128xf32>, vector<2x128xf32> -> vector<2x128xf32>
    %180 = arith.addf %178, %179 : vector<2x128xf32>
    %181 = vector.extract_strided_slice %180 {offsets = [0, 0], sizes = [2, 64], strides = [1, 1]} : vector<2x128xf32> to vector<2x64xf32>
    %182 = arith.negf %181 : vector<2x64xf32>
    %183 = math.exp %182 : vector<2x64xf32>
    %cst_67 = arith.constant 1.000000e+00 : f32
    %184 = vector.broadcast %cst_67 : f32 to vector<2x64xf32>
    %185 = arith.addf %184, %183 : vector<2x64xf32>
    %186 = arith.divf %184, %185 : vector<2x64xf32>
    %187 = vector.extract_strided_slice %180 {offsets = [0, 64], sizes = [2, 32], strides = [1, 1]} : vector<2x128xf32> to vector<2x32xf32>
    %188 = math.tanh %187 : vector<2x32xf32>
    %189 = vector.extract_strided_slice %180 {offsets = [0, 96], sizes = [2, 32], strides = [1, 1]} : vector<2x128xf32> to vector<2x32xf32>
    %190 = arith.negf %189 : vector<2x32xf32>
    %191 = math.exp %190 : vector<2x32xf32>
    %cst_68 = arith.constant 1.000000e+00 : f32
    %192 = vector.broadcast %cst_68 : f32 to vector<2x32xf32>
    %193 = arith.addf %192, %191 : vector<2x32xf32>
    %194 = arith.divf %192, %193 : vector<2x32xf32>
    %195 = vector.extract_strided_slice %186 {offsets = [0, 32], sizes = [2, 32], strides = [1, 1]} : vector<2x64xf32> to vector<2x32xf32>
    %196 = arith.mulf %195, %174 : vector<2x32xf32>
    %197 = vector.extract_strided_slice %186 {offsets = [0, 0], sizes = [2, 32], strides = [1, 1]} : vector<2x64xf32> to vector<2x32xf32>
    %198 = arith.mulf %197, %188 : vector<2x32xf32>
    %199 = arith.addf %196, %198 : vector<2x32xf32>
    %200 = math.tanh %199 : vector<2x32xf32>
    %201 = arith.mulf %194, %200 : vector<2x32xf32>
    %c8 = arith.constant 8 : index
    %c0_69 = arith.constant 0 : index
    %202 = vector.load %arg37[%c8, %c0_69] : memref<16x32xf32, #tpu.memory_space<vmem>>, vector<2x32xf32>
    tpu.vector_store %arg37[%c8, %c0_69], %201 {strides = array<i32>} : memref<16x32xf32, #tpu.memory_space<vmem>>, vector<2x32xf32>,
    %203 = vector.extract_strided_slice %70 {offsets = [10, 0], sizes = [2, 128], strides = [1, 1]} : vector<16x128xf32> to vector<2x128xf32>
    %cst_70 = arith.constant dense<0.000000e+00> : vector<2x128xf32>
    %204 = tpu.matmul %201, %75, %cst_70 {dimension_numbers = #tpu.dot_dimension_numbers<[1], [0], [0], [1], [0, 0, 1, 1], [], []>} : vector<2x32xf32>, vector<32x128xf32>, vector<2x128xf32> -> vector<2x128xf32>
    %205 = arith.addf %203, %204 : vector<2x128xf32>
    %206 = vector.extract_strided_slice %205 {offsets = [0, 0], sizes = [2, 64], strides = [1, 1]} : vector<2x128xf32> to vector<2x64xf32>
    %207 = arith.negf %206 : vector<2x64xf32>
    %208 = math.exp %207 : vector<2x64xf32>
    %cst_71 = arith.constant 1.000000e+00 : f32
    %209 = vector.broadcast %cst_71 : f32 to vector<2x64xf32>
    %210 = arith.addf %209, %208 : vector<2x64xf32>
    %211 = arith.divf %209, %210 : vector<2x64xf32>
    %212 = vector.extract_strided_slice %205 {offsets = [0, 64], sizes = [2, 32], strides = [1, 1]} : vector<2x128xf32> to vector<2x32xf32>
    %213 = math.tanh %212 : vector<2x32xf32>
    %214 = vector.extract_strided_slice %205 {offsets = [0, 96], sizes = [2, 32], strides = [1, 1]} : vector<2x128xf32> to vector<2x32xf32>
    %215 = arith.negf %214 : vector<2x32xf32>
    %216 = math.exp %215 : vector<2x32xf32>
    %cst_72 = arith.constant 1.000000e+00 : f32
    %217 = vector.broadcast %cst_72 : f32 to vector<2x32xf32>
    %218 = arith.addf %217, %216 : vector<2x32xf32>
    %219 = arith.divf %217, %218 : vector<2x32xf32>
    %220 = vector.extract_strided_slice %211 {offsets = [0, 32], sizes = [2, 32], strides = [1, 1]} : vector<2x64xf32> to vector<2x32xf32>
    %221 = arith.mulf %220, %199 : vector<2x32xf32>
    %222 = vector.extract_strided_slice %211 {offsets = [0, 0], sizes = [2, 32], strides = [1, 1]} : vector<2x64xf32> to vector<2x32xf32>
    %223 = arith.mulf %222, %213 : vector<2x32xf32>
    %224 = arith.addf %221, %223 : vector<2x32xf32>
    %225 = math.tanh %224 : vector<2x32xf32>
    %226 = arith.mulf %219, %225 : vector<2x32xf32>
    %c10 = arith.constant 10 : index
    %c0_73 = arith.constant 0 : index
    %227 = vector.load %arg37[%c10, %c0_73] : memref<16x32xf32, #tpu.memory_space<vmem>>, vector<2x32xf32>
    tpu.vector_store %arg37[%c10, %c0_73], %226 {strides = array<i32>} : memref<16x32xf32, #tpu.memory_space<vmem>>, vector<2x32xf32>,
    %228 = vector.extract_strided_slice %70 {offsets = [12, 0], sizes = [2, 128], strides = [1, 1]} : vector<16x128xf32> to vector<2x128xf32>
    %cst_74 = arith.constant dense<0.000000e+00> : vector<2x128xf32>
    %229 = tpu.matmul %226, %75, %cst_74 {dimension_numbers = #tpu.dot_dimension_numbers<[1], [0], [0], [1], [0, 0, 1, 1], [], []>} : vector<2x32xf32>, vector<32x128xf32>, vector<2x128xf32> -> vector<2x128xf32>
    %230 = arith.addf %228, %229 : vector<2x128xf32>
    %231 = vector.extract_strided_slice %230 {offsets = [0, 0], sizes = [2, 64], strides = [1, 1]} : vector<2x128xf32> to vector<2x64xf32>
    %232 = arith.negf %231 : vector<2x64xf32>
    %233 = math.exp %232 : vector<2x64xf32>
    %cst_75 = arith.constant 1.000000e+00 : f32
    %234 = vector.broadcast %cst_75 : f32 to vector<2x64xf32>
    %235 = arith.addf %234, %233 : vector<2x64xf32>
    %236 = arith.divf %234, %235 : vector<2x64xf32>
    %237 = vector.extract_strided_slice %230 {offsets = [0, 64], sizes = [2, 32], strides = [1, 1]} : vector<2x128xf32> to vector<2x32xf32>
    %238 = math.tanh %237 : vector<2x32xf32>
    %239 = vector.extract_strided_slice %230 {offsets = [0, 96], sizes = [2, 32], strides = [1, 1]} : vector<2x128xf32> to vector<2x32xf32>
    %240 = arith.negf %239 : vector<2x32xf32>
    %241 = math.exp %240 : vector<2x32xf32>
    %cst_76 = arith.constant 1.000000e+00 : f32
    %242 = vector.broadcast %cst_76 : f32 to vector<2x32xf32>
    %243 = arith.addf %242, %241 : vector<2x32xf32>
    %244 = arith.divf %242, %243 : vector<2x32xf32>
    %245 = vector.extract_strided_slice %236 {offsets = [0, 32], sizes = [2, 32], strides = [1, 1]} : vector<2x64xf32> to vector<2x32xf32>
    %246 = arith.mulf %245, %224 : vector<2x32xf32>
    %247 = vector.extract_strided_slice %236 {offsets = [0, 0], sizes = [2, 32], strides = [1, 1]} : vector<2x64xf32> to vector<2x32xf32>
    %248 = arith.mulf %247, %238 : vector<2x32xf32>
    %249 = arith.addf %246, %248 : vector<2x32xf32>
    %250 = math.tanh %249 : vector<2x32xf32>
    %251 = arith.mulf %244, %250 : vector<2x32xf32>
    %c12 = arith.constant 12 : index
    %c0_77 = arith.constant 0 : index
    %252 = vector.load %arg37[%c12, %c0_77] : memref<16x32xf32, #tpu.memory_space<vmem>>, vector<2x32xf32>
    tpu.vector_store %arg37[%c12, %c0_77], %251 {strides = array<i32>} : memref<16x32xf32, #tpu.memory_space<vmem>>, vector<2x32xf32>,
    %253 = vector.extract_strided_slice %70 {offsets = [14, 0], sizes = [2, 128], strides = [1, 1]} : vector<16x128xf32> to vector<2x128xf32>
    %cst_78 = arith.constant dense<0.000000e+00> : vector<2x128xf32>
    %254 = tpu.matmul %251, %75, %cst_78 {dimension_numbers = #tpu.dot_dimension_numbers<[1], [0], [0], [1], [0, 0, 1, 1], [], []>} : vector<2x32xf32>, vector<32x128xf32>, vector<2x128xf32> -> vector<2x128xf32>
    %255 = arith.addf %253, %254 : vector<2x128xf32>
    %256 = vector.extract_strided_slice %255 {offsets = [0, 0], sizes = [2, 64], strides = [1, 1]} : vector<2x128xf32> to vector<2x64xf32>
    %257 = arith.negf %256 : vector<2x64xf32>
    %258 = math.exp %257 : vector<2x64xf32>
    %cst_79 = arith.constant 1.000000e+00 : f32
    %259 = vector.broadcast %cst_79 : f32 to vector<2x64xf32>
    %260 = arith.addf %259, %258 : vector<2x64xf32>
    %261 = arith.divf %259, %260 : vector<2x64xf32>
    %262 = vector.extract_strided_slice %255 {offsets = [0, 64], sizes = [2, 32], strides = [1, 1]} : vector<2x128xf32> to vector<2x32xf32>
    %263 = math.tanh %262 : vector<2x32xf32>
    %264 = vector.extract_strided_slice %255 {offsets = [0, 96], sizes = [2, 32], strides = [1, 1]} : vector<2x128xf32> to vector<2x32xf32>
    %265 = arith.negf %264 : vector<2x32xf32>
    %266 = math.exp %265 : vector<2x32xf32>
    %cst_80 = arith.constant 1.000000e+00 : f32
    %267 = vector.broadcast %cst_80 : f32 to vector<2x32xf32>
    %268 = arith.addf %267, %266 : vector<2x32xf32>
    %269 = arith.divf %267, %268 : vector<2x32xf32>
    %270 = vector.extract_strided_slice %261 {offsets = [0, 32], sizes = [2, 32], strides = [1, 1]} : vector<2x64xf32> to vector<2x32xf32>
    %271 = arith.mulf %270, %249 : vector<2x32xf32>
    %272 = vector.extract_strided_slice %261 {offsets = [0, 0], sizes = [2, 32], strides = [1, 1]} : vector<2x64xf32> to vector<2x32xf32>
    %273 = arith.mulf %272, %263 : vector<2x32xf32>
    %274 = arith.addf %271, %273 : vector<2x32xf32>
    %275 = math.tanh %274 : vector<2x32xf32>
    %276 = arith.mulf %269, %275 : vector<2x32xf32>
    %c14 = arith.constant 14 : index
    %c0_81 = arith.constant 0 : index
    %277 = vector.load %arg37[%c14, %c0_81] : memref<16x32xf32, #tpu.memory_space<vmem>>, vector<2x32xf32>
    tpu.vector_store %arg37[%c14, %c0_81], %276 {strides = array<i32>} : memref<16x32xf32, #tpu.memory_space<vmem>>, vector<2x32xf32>,
    %c0_82 = arith.constant 0 : index
    %c0_83 = arith.constant 0 : index
    %278 = vector.load %arg37[%c0_82, %c0_83] : memref<16x32xf32, #tpu.memory_space<vmem>>, vector<16x32xf32>
    %cst_84 = arith.constant dense<0.000000e+00> : vector<16x32xf32>
    %279 = tpu.matmul %61, %278, %cst_84 {dimension_numbers = #tpu.dot_dimension_numbers<[1], [0], [0], [1], [0, 0, 1, 1], [], []>} : vector<16x16xf32>, vector<16x32xf32>, vector<16x32xf32> -> vector<16x32xf32>
    %c16_i32 = arith.constant 16 : i32
    %280 = vector.broadcast %c16_i32 : i32 to vector<16x32xi32>
    %281 = arith.cmpi slt, %71, %280 : vector<16x32xi32>
    %282 = arith.select %281, %278, %279 : vector<16x32xi1>, vector<16x32xf32>
    %cst_85 = arith.constant dense<0.000000e+00> : vector<16x32xf32>
    %283 = tpu.matmul %61, %282, %cst_85 {dimension_numbers = #tpu.dot_dimension_numbers<[1], [0], [0], [1], [0, 0, 1, 1], [], []>} : vector<16x16xf32>, vector<16x32xf32>, vector<16x32xf32> -> vector<16x32xf32>
    %c0_86 = arith.constant 0 : index
    %c0_87 = arith.constant 0 : index
    %c0_88 = arith.constant 0 : index
    %284 = vector.load %arg19[%c0_86, %c0_87, %c0_88] : memref<2x32x128xf32, #tpu.memory_space<vmem>>, vector<1x32x128xf32>
    %285 = vector.shape_cast %284 : vector<1x32x128xf32> to vector<32x128xf32>
    %cst_89 = arith.constant dense<0.000000e+00> : vector<16x128xf32>
    %286 = tpu.matmul %282, %285, %cst_89 {dimension_numbers = #tpu.dot_dimension_numbers<[1], [0], [0], [1], [0, 0, 1, 1], [], []>} : vector<16x32xf32>, vector<32x128xf32>, vector<16x128xf32> -> vector<16x128xf32>
    %c0_90 = arith.constant 0 : index
    %c0_91 = arith.constant 0 : index
    %c0_92 = arith.constant 0 : index
    %287 = vector.load %arg20[%c0_90, %c0_91, %c0_92] : memref<2x32x128xf32, #tpu.memory_space<vmem>>, vector<1x32x128xf32>
    %288 = vector.shape_cast %287 : vector<1x32x128xf32> to vector<32x128xf32>
    %cst_93 = arith.constant dense<0.000000e+00> : vector<16x128xf32>
    %289 = tpu.matmul %283, %288, %cst_93 {dimension_numbers = #tpu.dot_dimension_numbers<[1], [0], [0], [1], [0, 0, 1, 1], [], []>} : vector<16x32xf32>, vector<32x128xf32>, vector<16x128xf32> -> vector<16x128xf32>
    %290 = arith.addf %286, %289 : vector<16x128xf32>
    %c0_94 = arith.constant 0 : index
    %c0_95 = arith.constant 0 : index
    %c0_96 = arith.constant 0 : index
    %291 = vector.load %arg21[%c0_94, %c0_95, %c0_96] : memref<2x1x128xf32, #tpu.memory_space<vmem>>, vector<1x1x128xf32>
    %292 = vector.shape_cast %291 : vector<1x1x128xf32> to vector<1x128xf32>
    %293 = vector.broadcast %292 : vector<1x128xf32> to vector<16x128xf32>
    %294 = arith.addf %290, %293 : vector<16x128xf32>
    %c1 = arith.constant 1 : index
    %c0_97 = arith.constant 0 : index
    %c0_98 = arith.constant 0 : index
    %295 = vector.load %arg22[%c1, %c0_97, %c0_98] : memref<3x32x128xf32, #tpu.memory_space<vmem>>, vector<1x32x128xf32>
    %296 = vector.shape_cast %295 : vector<1x32x128xf32> to vector<32x128xf32>
    %cst_99 = arith.constant 0.000000e+00 : f32
    %297 = vector.broadcast %cst_99 : f32 to vector<2x32xf32>
    %cst_100 = arith.constant 0.000000e+00 : f32
    %298 = vector.broadcast %cst_100 : f32 to vector<2x32xf32>
    %299 = vector.extract_strided_slice %294 {offsets = [0, 0], sizes = [2, 128], strides = [1, 1]} : vector<16x128xf32> to vector<2x128xf32>
    %cst_101 = arith.constant dense<0.000000e+00> : vector<2x128xf32>
    %300 = tpu.matmul %297, %296, %cst_101 {dimension_numbers = #tpu.dot_dimension_numbers<[1], [0], [0], [1], [0, 0, 1, 1], [], []>} : vector<2x32xf32>, vector<32x128xf32>, vector<2x128xf32> -> vector<2x128xf32>
    %301 = arith.addf %299, %300 : vector<2x128xf32>
    %302 = vector.extract_strided_slice %301 {offsets = [0, 0], sizes = [2, 64], strides = [1, 1]} : vector<2x128xf32> to vector<2x64xf32>
    %303 = arith.negf %302 : vector<2x64xf32>
    %304 = math.exp %303 : vector<2x64xf32>
    %cst_102 = arith.constant 1.000000e+00 : f32
    %305 = vector.broadcast %cst_102 : f32 to vector<2x64xf32>
    %306 = arith.addf %305, %304 : vector<2x64xf32>
    %307 = arith.divf %305, %306 : vector<2x64xf32>
    %308 = vector.extract_strided_slice %301 {offsets = [0, 64], sizes = [2, 32], strides = [1, 1]} : vector<2x128xf32> to vector<2x32xf32>
    %309 = math.tanh %308 : vector<2x32xf32>
    %310 = vector.extract_strided_slice %301 {offsets = [0, 96], sizes = [2, 32], strides = [1, 1]} : vector<2x128xf32> to vector<2x32xf32>
    %311 = arith.negf %310 : vector<2x32xf32>
    %312 = math.exp %311 : vector<2x32xf32>
    %cst_103 = arith.constant 1.000000e+00 : f32
    %313 = vector.broadcast %cst_103 : f32 to vector<2x32xf32>
    %314 = arith.addf %313, %312 : vector<2x32xf32>
    %315 = arith.divf %313, %314 : vector<2x32xf32>
    %316 = vector.extract_strided_slice %307 {offsets = [0, 32], sizes = [2, 32], strides = [1, 1]} : vector<2x64xf32> to vector<2x32xf32>
    %317 = arith.mulf %316, %298 : vector<2x32xf32>
    %318 = vector.extract_strided_slice %307 {offsets = [0, 0], sizes = [2, 32], strides = [1, 1]} : vector<2x64xf32> to vector<2x32xf32>
    %319 = arith.mulf %318, %309 : vector<2x32xf32>
    %320 = arith.addf %317, %319 : vector<2x32xf32>
    %321 = math.tanh %320 : vector<2x32xf32>
    %322 = arith.mulf %315, %321 : vector<2x32xf32>
    %c0_104 = arith.constant 0 : index
    %c0_105 = arith.constant 0 : index
    %323 = vector.load %arg37[%c0_104, %c0_105] : memref<16x32xf32, #tpu.memory_space<vmem>>, vector<2x32xf32>
    tpu.vector_store %arg37[%c0_104, %c0_105], %322 {strides = array<i32>} : memref<16x32xf32, #tpu.memory_space<vmem>>, vector<2x32xf32>,
    %324 = vector.extract_strided_slice %294 {offsets = [2, 0], sizes = [2, 128], strides = [1, 1]} : vector<16x128xf32> to vector<2x128xf32>
    %cst_106 = arith.constant dense<0.000000e+00> : vector<2x128xf32>
    %325 = tpu.matmul %322, %296, %cst_106 {dimension_numbers = #tpu.dot_dimension_numbers<[1], [0], [0], [1], [0, 0, 1, 1], [], []>} : vector<2x32xf32>, vector<32x128xf32>, vector<2x128xf32> -> vector<2x128xf32>
    %326 = arith.addf %324, %325 : vector<2x128xf32>
    %327 = vector.extract_strided_slice %326 {offsets = [0, 0], sizes = [2, 64], strides = [1, 1]} : vector<2x128xf32> to vector<2x64xf32>
    %328 = arith.negf %327 : vector<2x64xf32>
    %329 = math.exp %328 : vector<2x64xf32>
    %cst_107 = arith.constant 1.000000e+00 : f32
    %330 = vector.broadcast %cst_107 : f32 to vector<2x64xf32>
    %331 = arith.addf %330, %329 : vector<2x64xf32>
    %332 = arith.divf %330, %331 : vector<2x64xf32>
    %333 = vector.extract_strided_slice %326 {offsets = [0, 64], sizes = [2, 32], strides = [1, 1]} : vector<2x128xf32> to vector<2x32xf32>
    %334 = math.tanh %333 : vector<2x32xf32>
    %335 = vector.extract_strided_slice %326 {offsets = [0, 96], sizes = [2, 32], strides = [1, 1]} : vector<2x128xf32> to vector<2x32xf32>
    %336 = arith.negf %335 : vector<2x32xf32>
    %337 = math.exp %336 : vector<2x32xf32>
    %cst_108 = arith.constant 1.000000e+00 : f32
    %338 = vector.broadcast %cst_108 : f32 to vector<2x32xf32>
    %339 = arith.addf %338, %337 : vector<2x32xf32>
    %340 = arith.divf %338, %339 : vector<2x32xf32>
    %341 = vector.extract_strided_slice %332 {offsets = [0, 32], sizes = [2, 32], strides = [1, 1]} : vector<2x64xf32> to vector<2x32xf32>
    %342 = arith.mulf %341, %320 : vector<2x32xf32>
    %343 = vector.extract_strided_slice %332 {offsets = [0, 0], sizes = [2, 32], strides = [1, 1]} : vector<2x64xf32> to vector<2x32xf32>
    %344 = arith.mulf %343, %334 : vector<2x32xf32>
    %345 = arith.addf %342, %344 : vector<2x32xf32>
    %346 = math.tanh %345 : vector<2x32xf32>
    %347 = arith.mulf %340, %346 : vector<2x32xf32>
    %c2_109 = arith.constant 2 : index
    %c0_110 = arith.constant 0 : index
    %348 = vector.load %arg37[%c2_109, %c0_110] : memref<16x32xf32, #tpu.memory_space<vmem>>, vector<2x32xf32>
    tpu.vector_store %arg37[%c2_109, %c0_110], %347 {strides = array<i32>} : memref<16x32xf32, #tpu.memory_space<vmem>>, vector<2x32xf32>,
    %349 = vector.extract_strided_slice %294 {offsets = [4, 0], sizes = [2, 128], strides = [1, 1]} : vector<16x128xf32> to vector<2x128xf32>
    %cst_111 = arith.constant dense<0.000000e+00> : vector<2x128xf32>
    %350 = tpu.matmul %347, %296, %cst_111 {dimension_numbers = #tpu.dot_dimension_numbers<[1], [0], [0], [1], [0, 0, 1, 1], [], []>} : vector<2x32xf32>, vector<32x128xf32>, vector<2x128xf32> -> vector<2x128xf32>
    %351 = arith.addf %349, %350 : vector<2x128xf32>
    %352 = vector.extract_strided_slice %351 {offsets = [0, 0], sizes = [2, 64], strides = [1, 1]} : vector<2x128xf32> to vector<2x64xf32>
    %353 = arith.negf %352 : vector<2x64xf32>
    %354 = math.exp %353 : vector<2x64xf32>
    %cst_112 = arith.constant 1.000000e+00 : f32
    %355 = vector.broadcast %cst_112 : f32 to vector<2x64xf32>
    %356 = arith.addf %355, %354 : vector<2x64xf32>
    %357 = arith.divf %355, %356 : vector<2x64xf32>
    %358 = vector.extract_strided_slice %351 {offsets = [0, 64], sizes = [2, 32], strides = [1, 1]} : vector<2x128xf32> to vector<2x32xf32>
    %359 = math.tanh %358 : vector<2x32xf32>
    %360 = vector.extract_strided_slice %351 {offsets = [0, 96], sizes = [2, 32], strides = [1, 1]} : vector<2x128xf32> to vector<2x32xf32>
    %361 = arith.negf %360 : vector<2x32xf32>
    %362 = math.exp %361 : vector<2x32xf32>
    %cst_113 = arith.constant 1.000000e+00 : f32
    %363 = vector.broadcast %cst_113 : f32 to vector<2x32xf32>
    %364 = arith.addf %363, %362 : vector<2x32xf32>
    %365 = arith.divf %363, %364 : vector<2x32xf32>
    %366 = vector.extract_strided_slice %357 {offsets = [0, 32], sizes = [2, 32], strides = [1, 1]} : vector<2x64xf32> to vector<2x32xf32>
    %367 = arith.mulf %366, %345 : vector<2x32xf32>
    %368 = vector.extract_strided_slice %357 {offsets = [0, 0], sizes = [2, 32], strides = [1, 1]} : vector<2x64xf32> to vector<2x32xf32>
    %369 = arith.mulf %368, %359 : vector<2x32xf32>
    %370 = arith.addf %367, %369 : vector<2x32xf32>
    %371 = math.tanh %370 : vector<2x32xf32>
    %372 = arith.mulf %365, %371 : vector<2x32xf32>
    %c4_114 = arith.constant 4 : index
    %c0_115 = arith.constant 0 : index
    %373 = vector.load %arg37[%c4_114, %c0_115] : memref<16x32xf32, #tpu.memory_space<vmem>>, vector<2x32xf32>
    tpu.vector_store %arg37[%c4_114, %c0_115], %372 {strides = array<i32>} : memref<16x32xf32, #tpu.memory_space<vmem>>, vector<2x32xf32>,
    %374 = vector.extract_strided_slice %294 {offsets = [6, 0], sizes = [2, 128], strides = [1, 1]} : vector<16x128xf32> to vector<2x128xf32>
    %cst_116 = arith.constant dense<0.000000e+00> : vector<2x128xf32>
    %375 = tpu.matmul %372, %296, %cst_116 {dimension_numbers = #tpu.dot_dimension_numbers<[1], [0], [0], [1], [0, 0, 1, 1], [], []>} : vector<2x32xf32>, vector<32x128xf32>, vector<2x128xf32> -> vector<2x128xf32>
    %376 = arith.addf %374, %375 : vector<2x128xf32>
    %377 = vector.extract_strided_slice %376 {offsets = [0, 0], sizes = [2, 64], strides = [1, 1]} : vector<2x128xf32> to vector<2x64xf32>
    %378 = arith.negf %377 : vector<2x64xf32>
    %379 = math.exp %378 : vector<2x64xf32>
    %cst_117 = arith.constant 1.000000e+00 : f32
    %380 = vector.broadcast %cst_117 : f32 to vector<2x64xf32>
    %381 = arith.addf %380, %379 : vector<2x64xf32>
    %382 = arith.divf %380, %381 : vector<2x64xf32>
    %383 = vector.extract_strided_slice %376 {offsets = [0, 64], sizes = [2, 32], strides = [1, 1]} : vector<2x128xf32> to vector<2x32xf32>
    %384 = math.tanh %383 : vector<2x32xf32>
    %385 = vector.extract_strided_slice %376 {offsets = [0, 96], sizes = [2, 32], strides = [1, 1]} : vector<2x128xf32> to vector<2x32xf32>
    %386 = arith.negf %385 : vector<2x32xf32>
    %387 = math.exp %386 : vector<2x32xf32>
    %cst_118 = arith.constant 1.000000e+00 : f32
    %388 = vector.broadcast %cst_118 : f32 to vector<2x32xf32>
    %389 = arith.addf %388, %387 : vector<2x32xf32>
    %390 = arith.divf %388, %389 : vector<2x32xf32>
    %391 = vector.extract_strided_slice %382 {offsets = [0, 32], sizes = [2, 32], strides = [1, 1]} : vector<2x64xf32> to vector<2x32xf32>
    %392 = arith.mulf %391, %370 : vector<2x32xf32>
    %393 = vector.extract_strided_slice %382 {offsets = [0, 0], sizes = [2, 32], strides = [1, 1]} : vector<2x64xf32> to vector<2x32xf32>
    %394 = arith.mulf %393, %384 : vector<2x32xf32>
    %395 = arith.addf %392, %394 : vector<2x32xf32>
    %396 = math.tanh %395 : vector<2x32xf32>
    %397 = arith.mulf %390, %396 : vector<2x32xf32>
    %c6_119 = arith.constant 6 : index
    %c0_120 = arith.constant 0 : index
    %398 = vector.load %arg37[%c6_119, %c0_120] : memref<16x32xf32, #tpu.memory_space<vmem>>, vector<2x32xf32>
    tpu.vector_store %arg37[%c6_119, %c0_120], %397 {strides = array<i32>} : memref<16x32xf32, #tpu.memory_space<vmem>>, vector<2x32xf32>,
    %399 = vector.extract_strided_slice %294 {offsets = [8, 0], sizes = [2, 128], strides = [1, 1]} : vector<16x128xf32> to vector<2x128xf32>
    %cst_121 = arith.constant dense<0.000000e+00> : vector<2x128xf32>
    %400 = tpu.matmul %397, %296, %cst_121 {dimension_numbers = #tpu.dot_dimension_numbers<[1], [0], [0], [1], [0, 0, 1, 1], [], []>} : vector<2x32xf32>, vector<32x128xf32>, vector<2x128xf32> -> vector<2x128xf32>
    %401 = arith.addf %399, %400 : vector<2x128xf32>
    %402 = vector.extract_strided_slice %401 {offsets = [0, 0], sizes = [2, 64], strides = [1, 1]} : vector<2x128xf32> to vector<2x64xf32>
    %403 = arith.negf %402 : vector<2x64xf32>
    %404 = math.exp %403 : vector<2x64xf32>
    %cst_122 = arith.constant 1.000000e+00 : f32
    %405 = vector.broadcast %cst_122 : f32 to vector<2x64xf32>
    %406 = arith.addf %405, %404 : vector<2x64xf32>
    %407 = arith.divf %405, %406 : vector<2x64xf32>
    %408 = vector.extract_strided_slice %401 {offsets = [0, 64], sizes = [2, 32], strides = [1, 1]} : vector<2x128xf32> to vector<2x32xf32>
    %409 = math.tanh %408 : vector<2x32xf32>
    %410 = vector.extract_strided_slice %401 {offsets = [0, 96], sizes = [2, 32], strides = [1, 1]} : vector<2x128xf32> to vector<2x32xf32>
    %411 = arith.negf %410 : vector<2x32xf32>
    %412 = math.exp %411 : vector<2x32xf32>
    %cst_123 = arith.constant 1.000000e+00 : f32
    %413 = vector.broadcast %cst_123 : f32 to vector<2x32xf32>
    %414 = arith.addf %413, %412 : vector<2x32xf32>
    %415 = arith.divf %413, %414 : vector<2x32xf32>
    %416 = vector.extract_strided_slice %407 {offsets = [0, 32], sizes = [2, 32], strides = [1, 1]} : vector<2x64xf32> to vector<2x32xf32>
    %417 = arith.mulf %416, %395 : vector<2x32xf32>
    %418 = vector.extract_strided_slice %407 {offsets = [0, 0], sizes = [2, 32], strides = [1, 1]} : vector<2x64xf32> to vector<2x32xf32>
    %419 = arith.mulf %418, %409 : vector<2x32xf32>
    %420 = arith.addf %417, %419 : vector<2x32xf32>
    %421 = math.tanh %420 : vector<2x32xf32>
    %422 = arith.mulf %415, %421 : vector<2x32xf32>
    %c8_124 = arith.constant 8 : index
    %c0_125 = arith.constant 0 : index
    %423 = vector.load %arg37[%c8_124, %c0_125] : memref<16x32xf32, #tpu.memory_space<vmem>>, vector<2x32xf32>
    tpu.vector_store %arg37[%c8_124, %c0_125], %422 {strides = array<i32>} : memref<16x32xf32, #tpu.memory_space<vmem>>, vector<2x32xf32>,
    %424 = vector.extract_strided_slice %294 {offsets = [10, 0], sizes = [2, 128], strides = [1, 1]} : vector<16x128xf32> to vector<2x128xf32>
    %cst_126 = arith.constant dense<0.000000e+00> : vector<2x128xf32>
    %425 = tpu.matmul %422, %296, %cst_126 {dimension_numbers = #tpu.dot_dimension_numbers<[1], [0], [0], [1], [0, 0, 1, 1], [], []>} : vector<2x32xf32>, vector<32x128xf32>, vector<2x128xf32> -> vector<2x128xf32>
    %426 = arith.addf %424, %425 : vector<2x128xf32>
    %427 = vector.extract_strided_slice %426 {offsets = [0, 0], sizes = [2, 64], strides = [1, 1]} : vector<2x128xf32> to vector<2x64xf32>
    %428 = arith.negf %427 : vector<2x64xf32>
    %429 = math.exp %428 : vector<2x64xf32>
    %cst_127 = arith.constant 1.000000e+00 : f32
    %430 = vector.broadcast %cst_127 : f32 to vector<2x64xf32>
    %431 = arith.addf %430, %429 : vector<2x64xf32>
    %432 = arith.divf %430, %431 : vector<2x64xf32>
    %433 = vector.extract_strided_slice %426 {offsets = [0, 64], sizes = [2, 32], strides = [1, 1]} : vector<2x128xf32> to vector<2x32xf32>
    %434 = math.tanh %433 : vector<2x32xf32>
    %435 = vector.extract_strided_slice %426 {offsets = [0, 96], sizes = [2, 32], strides = [1, 1]} : vector<2x128xf32> to vector<2x32xf32>
    %436 = arith.negf %435 : vector<2x32xf32>
    %437 = math.exp %436 : vector<2x32xf32>
    %cst_128 = arith.constant 1.000000e+00 : f32
    %438 = vector.broadcast %cst_128 : f32 to vector<2x32xf32>
    %439 = arith.addf %438, %437 : vector<2x32xf32>
    %440 = arith.divf %438, %439 : vector<2x32xf32>
    %441 = vector.extract_strided_slice %432 {offsets = [0, 32], sizes = [2, 32], strides = [1, 1]} : vector<2x64xf32> to vector<2x32xf32>
    %442 = arith.mulf %441, %420 : vector<2x32xf32>
    %443 = vector.extract_strided_slice %432 {offsets = [0, 0], sizes = [2, 32], strides = [1, 1]} : vector<2x64xf32> to vector<2x32xf32>
    %444 = arith.mulf %443, %434 : vector<2x32xf32>
    %445 = arith.addf %442, %444 : vector<2x32xf32>
    %446 = math.tanh %445 : vector<2x32xf32>
    %447 = arith.mulf %440, %446 : vector<2x32xf32>
    %c10_129 = arith.constant 10 : index
    %c0_130 = arith.constant 0 : index
    %448 = vector.load %arg37[%c10_129, %c0_130] : memref<16x32xf32, #tpu.memory_space<vmem>>, vector<2x32xf32>
    tpu.vector_store %arg37[%c10_129, %c0_130], %447 {strides = array<i32>} : memref<16x32xf32, #tpu.memory_space<vmem>>, vector<2x32xf32>,
    %449 = vector.extract_strided_slice %294 {offsets = [12, 0], sizes = [2, 128], strides = [1, 1]} : vector<16x128xf32> to vector<2x128xf32>
    %cst_131 = arith.constant dense<0.000000e+00> : vector<2x128xf32>
    %450 = tpu.matmul %447, %296, %cst_131 {dimension_numbers = #tpu.dot_dimension_numbers<[1], [0], [0], [1], [0, 0, 1, 1], [], []>} : vector<2x32xf32>, vector<32x128xf32>, vector<2x128xf32> -> vector<2x128xf32>
    %451 = arith.addf %449, %450 : vector<2x128xf32>
    %452 = vector.extract_strided_slice %451 {offsets = [0, 0], sizes = [2, 64], strides = [1, 1]} : vector<2x128xf32> to vector<2x64xf32>
    %453 = arith.negf %452 : vector<2x64xf32>
    %454 = math.exp %453 : vector<2x64xf32>
    %cst_132 = arith.constant 1.000000e+00 : f32
    %455 = vector.broadcast %cst_132 : f32 to vector<2x64xf32>
    %456 = arith.addf %455, %454 : vector<2x64xf32>
    %457 = arith.divf %455, %456 : vector<2x64xf32>
    %458 = vector.extract_strided_slice %451 {offsets = [0, 64], sizes = [2, 32], strides = [1, 1]} : vector<2x128xf32> to vector<2x32xf32>
    %459 = math.tanh %458 : vector<2x32xf32>
    %460 = vector.extract_strided_slice %451 {offsets = [0, 96], sizes = [2, 32], strides = [1, 1]} : vector<2x128xf32> to vector<2x32xf32>
    %461 = arith.negf %460 : vector<2x32xf32>
    %462 = math.exp %461 : vector<2x32xf32>
    %cst_133 = arith.constant 1.000000e+00 : f32
    %463 = vector.broadcast %cst_133 : f32 to vector<2x32xf32>
    %464 = arith.addf %463, %462 : vector<2x32xf32>
    %465 = arith.divf %463, %464 : vector<2x32xf32>
    %466 = vector.extract_strided_slice %457 {offsets = [0, 32], sizes = [2, 32], strides = [1, 1]} : vector<2x64xf32> to vector<2x32xf32>
    %467 = arith.mulf %466, %445 : vector<2x32xf32>
    %468 = vector.extract_strided_slice %457 {offsets = [0, 0], sizes = [2, 32], strides = [1, 1]} : vector<2x64xf32> to vector<2x32xf32>
    %469 = arith.mulf %468, %459 : vector<2x32xf32>
    %470 = arith.addf %467, %469 : vector<2x32xf32>
    %471 = math.tanh %470 : vector<2x32xf32>
    %472 = arith.mulf %465, %471 : vector<2x32xf32>
    %c12_134 = arith.constant 12 : index
    %c0_135 = arith.constant 0 : index
    %473 = vector.load %arg37[%c12_134, %c0_135] : memref<16x32xf32, #tpu.memory_space<vmem>>, vector<2x32xf32>
    tpu.vector_store %arg37[%c12_134, %c0_135], %472 {strides = array<i32>} : memref<16x32xf32, #tpu.memory_space<vmem>>, vector<2x32xf32>,
    %474 = vector.extract_strided_slice %294 {offsets = [14, 0], sizes = [2, 128], strides = [1, 1]} : vector<16x128xf32> to vector<2x128xf32>
    %cst_136 = arith.constant dense<0.000000e+00> : vector<2x128xf32>
    %475 = tpu.matmul %472, %296, %cst_136 {dimension_numbers = #tpu.dot_dimension_numbers<[1], [0], [0], [1], [0, 0, 1, 1], [], []>} : vector<2x32xf32>, vector<32x128xf32>, vector<2x128xf32> -> vector<2x128xf32>
    %476 = arith.addf %474, %475 : vector<2x128xf32>
    %477 = vector.extract_strided_slice %476 {offsets = [0, 0], sizes = [2, 64], strides = [1, 1]} : vector<2x128xf32> to vector<2x64xf32>
    %478 = arith.negf %477 : vector<2x64xf32>
    %479 = math.exp %478 : vector<2x64xf32>
    %cst_137 = arith.constant 1.000000e+00 : f32
    %480 = vector.broadcast %cst_137 : f32 to vector<2x64xf32>
    %481 = arith.addf %480, %479 : vector<2x64xf32>
    %482 = arith.divf %480, %481 : vector<2x64xf32>
    %483 = vector.extract_strided_slice %476 {offsets = [0, 64], sizes = [2, 32], strides = [1, 1]} : vector<2x128xf32> to vector<2x32xf32>
    %484 = math.tanh %483 : vector<2x32xf32>
    %485 = vector.extract_strided_slice %476 {offsets = [0, 96], sizes = [2, 32], strides = [1, 1]} : vector<2x128xf32> to vector<2x32xf32>
    %486 = arith.negf %485 : vector<2x32xf32>
    %487 = math.exp %486 : vector<2x32xf32>
    %cst_138 = arith.constant 1.000000e+00 : f32
    %488 = vector.broadcast %cst_138 : f32 to vector<2x32xf32>
    %489 = arith.addf %488, %487 : vector<2x32xf32>
    %490 = arith.divf %488, %489 : vector<2x32xf32>
    %491 = vector.extract_strided_slice %482 {offsets = [0, 32], sizes = [2, 32], strides = [1, 1]} : vector<2x64xf32> to vector<2x32xf32>
    %492 = arith.mulf %491, %470 : vector<2x32xf32>
    %493 = vector.extract_strided_slice %482 {offsets = [0, 0], sizes = [2, 32], strides = [1, 1]} : vector<2x64xf32> to vector<2x32xf32>
    %494 = arith.mulf %493, %484 : vector<2x32xf32>
    %495 = arith.addf %492, %494 : vector<2x32xf32>
    %496 = math.tanh %495 : vector<2x32xf32>
    %497 = arith.mulf %490, %496 : vector<2x32xf32>
    %c14_139 = arith.constant 14 : index
    %c0_140 = arith.constant 0 : index
    %498 = vector.load %arg37[%c14_139, %c0_140] : memref<16x32xf32, #tpu.memory_space<vmem>>, vector<2x32xf32>
    tpu.vector_store %arg37[%c14_139, %c0_140], %497 {strides = array<i32>} : memref<16x32xf32, #tpu.memory_space<vmem>>, vector<2x32xf32>,
    %c0_141 = arith.constant 0 : index
    %c0_142 = arith.constant 0 : index
    %499 = vector.load %arg37[%c0_141, %c0_142] : memref<16x32xf32, #tpu.memory_space<vmem>>, vector<16x32xf32>
    %cst_143 = arith.constant dense<0.000000e+00> : vector<16x32xf32>
    %500 = tpu.matmul %61, %499, %cst_143 {dimension_numbers = #tpu.dot_dimension_numbers<[1], [0], [0], [1], [0, 0, 1, 1], [], []>} : vector<16x16xf32>, vector<16x32xf32>, vector<16x32xf32> -> vector<16x32xf32>
    %c16_i32_144 = arith.constant 16 : i32
    %501 = vector.broadcast %c16_i32_144 : i32 to vector<16x32xi32>
    %502 = arith.cmpi slt, %71, %501 : vector<16x32xi32>
    %503 = arith.select %502, %499, %500 : vector<16x32xi1>, vector<16x32xf32>
    %cst_145 = arith.constant dense<0.000000e+00> : vector<16x32xf32>
    %504 = tpu.matmul %503, %72, %cst_145 {dimension_numbers = #tpu.dot_dimension_numbers<[1], [0], [0], [1], [0, 0, 1, 1], [], []>} : vector<16x32xf32>, vector<32x32xf32>, vector<16x32xf32> -> vector<16x32xf32>
    %505 = vector.broadcast %73 : vector<1x32xf32> to vector<16x32xf32>
    %506 = arith.addf %504, %505 : vector<16x32xf32>
    %507 = arith.negf %506 : vector<16x32xf32>
    %508 = math.exp %507 : vector<16x32xf32>
    %cst_146 = arith.constant 1.000000e+00 : f32
    %509 = vector.broadcast %cst_146 : f32 to vector<16x32xf32>
    %510 = arith.addf %509, %508 : vector<16x32xf32>
    %511 = arith.divf %509, %510 : vector<16x32xf32>
    %512 = arith.mulf %511, %503 : vector<16x32xf32>
    %cst_147 = arith.constant 1.000000e+00 : f32
    %513 = vector.broadcast %cst_147 : f32 to vector<16x32xf32>
    %514 = arith.subf %513, %511 : vector<16x32xf32>
    %515 = arith.mulf %514, %282 : vector<16x32xf32>
    %516 = arith.addf %512, %515 : vector<16x32xf32>
    %cst_148 = arith.constant dense<0.000000e+00> : vector<16x32xf32>
    %517 = tpu.matmul %61, %516, %cst_148 {dimension_numbers = #tpu.dot_dimension_numbers<[1], [0], [0], [1], [0, 0, 1, 1], [], []>} : vector<16x16xf32>, vector<16x32xf32>, vector<16x32xf32> -> vector<16x32xf32>
    %c1_149 = arith.constant 1 : index
    %c0_150 = arith.constant 0 : index
    %c0_151 = arith.constant 0 : index
    %518 = vector.load %arg19[%c1_149, %c0_150, %c0_151] : memref<2x32x128xf32, #tpu.memory_space<vmem>>, vector<1x32x128xf32>
    %519 = vector.shape_cast %518 : vector<1x32x128xf32> to vector<32x128xf32>
    %cst_152 = arith.constant dense<0.000000e+00> : vector<16x128xf32>
    %520 = tpu.matmul %516, %519, %cst_152 {dimension_numbers = #tpu.dot_dimension_numbers<[1], [0], [0], [1], [0, 0, 1, 1], [], []>} : vector<16x32xf32>, vector<32x128xf32>, vector<16x128xf32> -> vector<16x128xf32>
    %c1_153 = arith.constant 1 : index
    %c0_154 = arith.constant 0 : index
    %c0_155 = arith.constant 0 : index
    %521 = vector.load %arg20[%c1_153, %c0_154, %c0_155] : memref<2x32x128xf32, #tpu.memory_space<vmem>>, vector<1x32x128xf32>
    %522 = vector.shape_cast %521 : vector<1x32x128xf32> to vector<32x128xf32>
    %cst_156 = arith.constant dense<0.000000e+00> : vector<16x128xf32>
    %523 = tpu.matmul %517, %522, %cst_156 {dimension_numbers = #tpu.dot_dimension_numbers<[1], [0], [0], [1], [0, 0, 1, 1], [], []>} : vector<16x32xf32>, vector<32x128xf32>, vector<16x128xf32> -> vector<16x128xf32>
    %524 = arith.addf %520, %523 : vector<16x128xf32>
    %c1_157 = arith.constant 1 : index
    %c0_158 = arith.constant 0 : index
    %c0_159 = arith.constant 0 : index
    %525 = vector.load %arg21[%c1_157, %c0_158, %c0_159] : memref<2x1x128xf32, #tpu.memory_space<vmem>>, vector<1x1x128xf32>
    %526 = vector.shape_cast %525 : vector<1x1x128xf32> to vector<1x128xf32>
    %527 = vector.broadcast %526 : vector<1x128xf32> to vector<16x128xf32>
    %528 = arith.addf %524, %527 : vector<16x128xf32>
    %c2_160 = arith.constant 2 : index
    %c0_161 = arith.constant 0 : index
    %c0_162 = arith.constant 0 : index
    %529 = vector.load %arg22[%c2_160, %c0_161, %c0_162] : memref<3x32x128xf32, #tpu.memory_space<vmem>>, vector<1x32x128xf32>
    %530 = vector.shape_cast %529 : vector<1x32x128xf32> to vector<32x128xf32>
    %cst_163 = arith.constant 0.000000e+00 : f32
    %531 = vector.broadcast %cst_163 : f32 to vector<2x32xf32>
    %cst_164 = arith.constant 0.000000e+00 : f32
    %532 = vector.broadcast %cst_164 : f32 to vector<2x32xf32>
    %533 = vector.extract_strided_slice %528 {offsets = [0, 0], sizes = [2, 128], strides = [1, 1]} : vector<16x128xf32> to vector<2x128xf32>
    %cst_165 = arith.constant dense<0.000000e+00> : vector<2x128xf32>
    %534 = tpu.matmul %531, %530, %cst_165 {dimension_numbers = #tpu.dot_dimension_numbers<[1], [0], [0], [1], [0, 0, 1, 1], [], []>} : vector<2x32xf32>, vector<32x128xf32>, vector<2x128xf32> -> vector<2x128xf32>
    %535 = arith.addf %533, %534 : vector<2x128xf32>
    %536 = vector.extract_strided_slice %535 {offsets = [0, 0], sizes = [2, 64], strides = [1, 1]} : vector<2x128xf32> to vector<2x64xf32>
    %537 = arith.negf %536 : vector<2x64xf32>
    %538 = math.exp %537 : vector<2x64xf32>
    %cst_166 = arith.constant 1.000000e+00 : f32
    %539 = vector.broadcast %cst_166 : f32 to vector<2x64xf32>
    %540 = arith.addf %539, %538 : vector<2x64xf32>
    %541 = arith.divf %539, %540 : vector<2x64xf32>
    %542 = vector.extract_strided_slice %535 {offsets = [0, 64], sizes = [2, 32], strides = [1, 1]} : vector<2x128xf32> to vector<2x32xf32>
    %543 = math.tanh %542 : vector<2x32xf32>
    %544 = vector.extract_strided_slice %535 {offsets = [0, 96], sizes = [2, 32], strides = [1, 1]} : vector<2x128xf32> to vector<2x32xf32>
    %545 = arith.negf %544 : vector<2x32xf32>
    %546 = math.exp %545 : vector<2x32xf32>
    %cst_167 = arith.constant 1.000000e+00 : f32
    %547 = vector.broadcast %cst_167 : f32 to vector<2x32xf32>
    %548 = arith.addf %547, %546 : vector<2x32xf32>
    %549 = arith.divf %547, %548 : vector<2x32xf32>
    %550 = vector.extract_strided_slice %541 {offsets = [0, 32], sizes = [2, 32], strides = [1, 1]} : vector<2x64xf32> to vector<2x32xf32>
    %551 = arith.mulf %550, %532 : vector<2x32xf32>
    %552 = vector.extract_strided_slice %541 {offsets = [0, 0], sizes = [2, 32], strides = [1, 1]} : vector<2x64xf32> to vector<2x32xf32>
    %553 = arith.mulf %552, %543 : vector<2x32xf32>
    %554 = arith.addf %551, %553 : vector<2x32xf32>
    %555 = math.tanh %554 : vector<2x32xf32>
    %556 = arith.mulf %549, %555 : vector<2x32xf32>
    %c0_168 = arith.constant 0 : index
    %c0_169 = arith.constant 0 : index
    %557 = vector.load %arg37[%c0_168, %c0_169] : memref<16x32xf32, #tpu.memory_space<vmem>>, vector<2x32xf32>
    tpu.vector_store %arg37[%c0_168, %c0_169], %556 {strides = array<i32>} : memref<16x32xf32, #tpu.memory_space<vmem>>, vector<2x32xf32>,
    %558 = vector.extract_strided_slice %528 {offsets = [2, 0], sizes = [2, 128], strides = [1, 1]} : vector<16x128xf32> to vector<2x128xf32>
    %cst_170 = arith.constant dense<0.000000e+00> : vector<2x128xf32>
    %559 = tpu.matmul %556, %530, %cst_170 {dimension_numbers = #tpu.dot_dimension_numbers<[1], [0], [0], [1], [0, 0, 1, 1], [], []>} : vector<2x32xf32>, vector<32x128xf32>, vector<2x128xf32> -> vector<2x128xf32>
    %560 = arith.addf %558, %559 : vector<2x128xf32>
    %561 = vector.extract_strided_slice %560 {offsets = [0, 0], sizes = [2, 64], strides = [1, 1]} : vector<2x128xf32> to vector<2x64xf32>
    %562 = arith.negf %561 : vector<2x64xf32>
    %563 = math.exp %562 : vector<2x64xf32>
    %cst_171 = arith.constant 1.000000e+00 : f32
    %564 = vector.broadcast %cst_171 : f32 to vector<2x64xf32>
    %565 = arith.addf %564, %563 : vector<2x64xf32>
    %566 = arith.divf %564, %565 : vector<2x64xf32>
    %567 = vector.extract_strided_slice %560 {offsets = [0, 64], sizes = [2, 32], strides = [1, 1]} : vector<2x128xf32> to vector<2x32xf32>
    %568 = math.tanh %567 : vector<2x32xf32>
    %569 = vector.extract_strided_slice %560 {offsets = [0, 96], sizes = [2, 32], strides = [1, 1]} : vector<2x128xf32> to vector<2x32xf32>
    %570 = arith.negf %569 : vector<2x32xf32>
    %571 = math.exp %570 : vector<2x32xf32>
    %cst_172 = arith.constant 1.000000e+00 : f32
    %572 = vector.broadcast %cst_172 : f32 to vector<2x32xf32>
    %573 = arith.addf %572, %571 : vector<2x32xf32>
    %574 = arith.divf %572, %573 : vector<2x32xf32>
    %575 = vector.extract_strided_slice %566 {offsets = [0, 32], sizes = [2, 32], strides = [1, 1]} : vector<2x64xf32> to vector<2x32xf32>
    %576 = arith.mulf %575, %554 : vector<2x32xf32>
    %577 = vector.extract_strided_slice %566 {offsets = [0, 0], sizes = [2, 32], strides = [1, 1]} : vector<2x64xf32> to vector<2x32xf32>
    %578 = arith.mulf %577, %568 : vector<2x32xf32>
    %579 = arith.addf %576, %578 : vector<2x32xf32>
    %580 = math.tanh %579 : vector<2x32xf32>
    %581 = arith.mulf %574, %580 : vector<2x32xf32>
    %c2_173 = arith.constant 2 : index
    %c0_174 = arith.constant 0 : index
    %582 = vector.load %arg37[%c2_173, %c0_174] : memref<16x32xf32, #tpu.memory_space<vmem>>, vector<2x32xf32>
    tpu.vector_store %arg37[%c2_173, %c0_174], %581 {strides = array<i32>} : memref<16x32xf32, #tpu.memory_space<vmem>>, vector<2x32xf32>,
    %583 = vector.extract_strided_slice %528 {offsets = [4, 0], sizes = [2, 128], strides = [1, 1]} : vector<16x128xf32> to vector<2x128xf32>
    %cst_175 = arith.constant dense<0.000000e+00> : vector<2x128xf32>
    %584 = tpu.matmul %581, %530, %cst_175 {dimension_numbers = #tpu.dot_dimension_numbers<[1], [0], [0], [1], [0, 0, 1, 1], [], []>} : vector<2x32xf32>, vector<32x128xf32>, vector<2x128xf32> -> vector<2x128xf32>
    %585 = arith.addf %583, %584 : vector<2x128xf32>
    %586 = vector.extract_strided_slice %585 {offsets = [0, 0], sizes = [2, 64], strides = [1, 1]} : vector<2x128xf32> to vector<2x64xf32>
    %587 = arith.negf %586 : vector<2x64xf32>
    %588 = math.exp %587 : vector<2x64xf32>
    %cst_176 = arith.constant 1.000000e+00 : f32
    %589 = vector.broadcast %cst_176 : f32 to vector<2x64xf32>
    %590 = arith.addf %589, %588 : vector<2x64xf32>
    %591 = arith.divf %589, %590 : vector<2x64xf32>
    %592 = vector.extract_strided_slice %585 {offsets = [0, 64], sizes = [2, 32], strides = [1, 1]} : vector<2x128xf32> to vector<2x32xf32>
    %593 = math.tanh %592 : vector<2x32xf32>
    %594 = vector.extract_strided_slice %585 {offsets = [0, 96], sizes = [2, 32], strides = [1, 1]} : vector<2x128xf32> to vector<2x32xf32>
    %595 = arith.negf %594 : vector<2x32xf32>
    %596 = math.exp %595 : vector<2x32xf32>
    %cst_177 = arith.constant 1.000000e+00 : f32
    %597 = vector.broadcast %cst_177 : f32 to vector<2x32xf32>
    %598 = arith.addf %597, %596 : vector<2x32xf32>
    %599 = arith.divf %597, %598 : vector<2x32xf32>
    %600 = vector.extract_strided_slice %591 {offsets = [0, 32], sizes = [2, 32], strides = [1, 1]} : vector<2x64xf32> to vector<2x32xf32>
    %601 = arith.mulf %600, %579 : vector<2x32xf32>
    %602 = vector.extract_strided_slice %591 {offsets = [0, 0], sizes = [2, 32], strides = [1, 1]} : vector<2x64xf32> to vector<2x32xf32>
    %603 = arith.mulf %602, %593 : vector<2x32xf32>
    %604 = arith.addf %601, %603 : vector<2x32xf32>
    %605 = math.tanh %604 : vector<2x32xf32>
    %606 = arith.mulf %599, %605 : vector<2x32xf32>
    %c4_178 = arith.constant 4 : index
    %c0_179 = arith.constant 0 : index
    %607 = vector.load %arg37[%c4_178, %c0_179] : memref<16x32xf32, #tpu.memory_space<vmem>>, vector<2x32xf32>
    tpu.vector_store %arg37[%c4_178, %c0_179], %606 {strides = array<i32>} : memref<16x32xf32, #tpu.memory_space<vmem>>, vector<2x32xf32>,
    %608 = vector.extract_strided_slice %528 {offsets = [6, 0], sizes = [2, 128], strides = [1, 1]} : vector<16x128xf32> to vector<2x128xf32>
    %cst_180 = arith.constant dense<0.000000e+00> : vector<2x128xf32>
    %609 = tpu.matmul %606, %530, %cst_180 {dimension_numbers = #tpu.dot_dimension_numbers<[1], [0], [0], [1], [0, 0, 1, 1], [], []>} : vector<2x32xf32>, vector<32x128xf32>, vector<2x128xf32> -> vector<2x128xf32>
    %610 = arith.addf %608, %609 : vector<2x128xf32>
    %611 = vector.extract_strided_slice %610 {offsets = [0, 0], sizes = [2, 64], strides = [1, 1]} : vector<2x128xf32> to vector<2x64xf32>
    %612 = arith.negf %611 : vector<2x64xf32>
    %613 = math.exp %612 : vector<2x64xf32>
    %cst_181 = arith.constant 1.000000e+00 : f32
    %614 = vector.broadcast %cst_181 : f32 to vector<2x64xf32>
    %615 = arith.addf %614, %613 : vector<2x64xf32>
    %616 = arith.divf %614, %615 : vector<2x64xf32>
    %617 = vector.extract_strided_slice %610 {offsets = [0, 64], sizes = [2, 32], strides = [1, 1]} : vector<2x128xf32> to vector<2x32xf32>
    %618 = math.tanh %617 : vector<2x32xf32>
    %619 = vector.extract_strided_slice %610 {offsets = [0, 96], sizes = [2, 32], strides = [1, 1]} : vector<2x128xf32> to vector<2x32xf32>
    %620 = arith.negf %619 : vector<2x32xf32>
    %621 = math.exp %620 : vector<2x32xf32>
    %cst_182 = arith.constant 1.000000e+00 : f32
    %622 = vector.broadcast %cst_182 : f32 to vector<2x32xf32>
    %623 = arith.addf %622, %621 : vector<2x32xf32>
    %624 = arith.divf %622, %623 : vector<2x32xf32>
    %625 = vector.extract_strided_slice %616 {offsets = [0, 32], sizes = [2, 32], strides = [1, 1]} : vector<2x64xf32> to vector<2x32xf32>
    %626 = arith.mulf %625, %604 : vector<2x32xf32>
    %627 = vector.extract_strided_slice %616 {offsets = [0, 0], sizes = [2, 32], strides = [1, 1]} : vector<2x64xf32> to vector<2x32xf32>
    %628 = arith.mulf %627, %618 : vector<2x32xf32>
    %629 = arith.addf %626, %628 : vector<2x32xf32>
    %630 = math.tanh %629 : vector<2x32xf32>
    %631 = arith.mulf %624, %630 : vector<2x32xf32>
    %c6_183 = arith.constant 6 : index
    %c0_184 = arith.constant 0 : index
    %632 = vector.load %arg37[%c6_183, %c0_184] : memref<16x32xf32, #tpu.memory_space<vmem>>, vector<2x32xf32>
    tpu.vector_store %arg37[%c6_183, %c0_184], %631 {strides = array<i32>} : memref<16x32xf32, #tpu.memory_space<vmem>>, vector<2x32xf32>,
    %633 = vector.extract_strided_slice %528 {offsets = [8, 0], sizes = [2, 128], strides = [1, 1]} : vector<16x128xf32> to vector<2x128xf32>
    %cst_185 = arith.constant dense<0.000000e+00> : vector<2x128xf32>
    %634 = tpu.matmul %631, %530, %cst_185 {dimension_numbers = #tpu.dot_dimension_numbers<[1], [0], [0], [1], [0, 0, 1, 1], [], []>} : vector<2x32xf32>, vector<32x128xf32>, vector<2x128xf32> -> vector<2x128xf32>
    %635 = arith.addf %633, %634 : vector<2x128xf32>
    %636 = vector.extract_strided_slice %635 {offsets = [0, 0], sizes = [2, 64], strides = [1, 1]} : vector<2x128xf32> to vector<2x64xf32>
    %637 = arith.negf %636 : vector<2x64xf32>
    %638 = math.exp %637 : vector<2x64xf32>
    %cst_186 = arith.constant 1.000000e+00 : f32
    %639 = vector.broadcast %cst_186 : f32 to vector<2x64xf32>
    %640 = arith.addf %639, %638 : vector<2x64xf32>
    %641 = arith.divf %639, %640 : vector<2x64xf32>
    %642 = vector.extract_strided_slice %635 {offsets = [0, 64], sizes = [2, 32], strides = [1, 1]} : vector<2x128xf32> to vector<2x32xf32>
    %643 = math.tanh %642 : vector<2x32xf32>
    %644 = vector.extract_strided_slice %635 {offsets = [0, 96], sizes = [2, 32], strides = [1, 1]} : vector<2x128xf32> to vector<2x32xf32>
    %645 = arith.negf %644 : vector<2x32xf32>
    %646 = math.exp %645 : vector<2x32xf32>
    %cst_187 = arith.constant 1.000000e+00 : f32
    %647 = vector.broadcast %cst_187 : f32 to vector<2x32xf32>
    %648 = arith.addf %647, %646 : vector<2x32xf32>
    %649 = arith.divf %647, %648 : vector<2x32xf32>
    %650 = vector.extract_strided_slice %641 {offsets = [0, 32], sizes = [2, 32], strides = [1, 1]} : vector<2x64xf32> to vector<2x32xf32>
    %651 = arith.mulf %650, %629 : vector<2x32xf32>
    %652 = vector.extract_strided_slice %641 {offsets = [0, 0], sizes = [2, 32], strides = [1, 1]} : vector<2x64xf32> to vector<2x32xf32>
    %653 = arith.mulf %652, %643 : vector<2x32xf32>
    %654 = arith.addf %651, %653 : vector<2x32xf32>
    %655 = math.tanh %654 : vector<2x32xf32>
    %656 = arith.mulf %649, %655 : vector<2x32xf32>
    %c8_188 = arith.constant 8 : index
    %c0_189 = arith.constant 0 : index
    %657 = vector.load %arg37[%c8_188, %c0_189] : memref<16x32xf32, #tpu.memory_space<vmem>>, vector<2x32xf32>
    tpu.vector_store %arg37[%c8_188, %c0_189], %656 {strides = array<i32>} : memref<16x32xf32, #tpu.memory_space<vmem>>, vector<2x32xf32>,
    %658 = vector.extract_strided_slice %528 {offsets = [10, 0], sizes = [2, 128], strides = [1, 1]} : vector<16x128xf32> to vector<2x128xf32>
    %cst_190 = arith.constant dense<0.000000e+00> : vector<2x128xf32>
    %659 = tpu.matmul %656, %530, %cst_190 {dimension_numbers = #tpu.dot_dimension_numbers<[1], [0], [0], [1], [0, 0, 1, 1], [], []>} : vector<2x32xf32>, vector<32x128xf32>, vector<2x128xf32> -> vector<2x128xf32>
    %660 = arith.addf %658, %659 : vector<2x128xf32>
    %661 = vector.extract_strided_slice %660 {offsets = [0, 0], sizes = [2, 64], strides = [1, 1]} : vector<2x128xf32> to vector<2x64xf32>
    %662 = arith.negf %661 : vector<2x64xf32>
    %663 = math.exp %662 : vector<2x64xf32>
    %cst_191 = arith.constant 1.000000e+00 : f32
    %664 = vector.broadcast %cst_191 : f32 to vector<2x64xf32>
    %665 = arith.addf %664, %663 : vector<2x64xf32>
    %666 = arith.divf %664, %665 : vector<2x64xf32>
    %667 = vector.extract_strided_slice %660 {offsets = [0, 64], sizes = [2, 32], strides = [1, 1]} : vector<2x128xf32> to vector<2x32xf32>
    %668 = math.tanh %667 : vector<2x32xf32>
    %669 = vector.extract_strided_slice %660 {offsets = [0, 96], sizes = [2, 32], strides = [1, 1]} : vector<2x128xf32> to vector<2x32xf32>
    %670 = arith.negf %669 : vector<2x32xf32>
    %671 = math.exp %670 : vector<2x32xf32>
    %cst_192 = arith.constant 1.000000e+00 : f32
    %672 = vector.broadcast %cst_192 : f32 to vector<2x32xf32>
    %673 = arith.addf %672, %671 : vector<2x32xf32>
    %674 = arith.divf %672, %673 : vector<2x32xf32>
    %675 = vector.extract_strided_slice %666 {offsets = [0, 32], sizes = [2, 32], strides = [1, 1]} : vector<2x64xf32> to vector<2x32xf32>
    %676 = arith.mulf %675, %654 : vector<2x32xf32>
    %677 = vector.extract_strided_slice %666 {offsets = [0, 0], sizes = [2, 32], strides = [1, 1]} : vector<2x64xf32> to vector<2x32xf32>
    %678 = arith.mulf %677, %668 : vector<2x32xf32>
    %679 = arith.addf %676, %678 : vector<2x32xf32>
    %680 = math.tanh %679 : vector<2x32xf32>
    %681 = arith.mulf %674, %680 : vector<2x32xf32>
    %c10_193 = arith.constant 10 : index
    %c0_194 = arith.constant 0 : index
    %682 = vector.load %arg37[%c10_193, %c0_194] : memref<16x32xf32, #tpu.memory_space<vmem>>, vector<2x32xf32>
    tpu.vector_store %arg37[%c10_193, %c0_194], %681 {strides = array<i32>} : memref<16x32xf32, #tpu.memory_space<vmem>>, vector<2x32xf32>,
    %683 = vector.extract_strided_slice %528 {offsets = [12, 0], sizes = [2, 128], strides = [1, 1]} : vector<16x128xf32> to vector<2x128xf32>
    %cst_195 = arith.constant dense<0.000000e+00> : vector<2x128xf32>
    %684 = tpu.matmul %681, %530, %cst_195 {dimension_numbers = #tpu.dot_dimension_numbers<[1], [0], [0], [1], [0, 0, 1, 1], [], []>} : vector<2x32xf32>, vector<32x128xf32>, vector<2x128xf32> -> vector<2x128xf32>
    %685 = arith.addf %683, %684 : vector<2x128xf32>
    %686 = vector.extract_strided_slice %685 {offsets = [0, 0], sizes = [2, 64], strides = [1, 1]} : vector<2x128xf32> to vector<2x64xf32>
    %687 = arith.negf %686 : vector<2x64xf32>
    %688 = math.exp %687 : vector<2x64xf32>
    %cst_196 = arith.constant 1.000000e+00 : f32
    %689 = vector.broadcast %cst_196 : f32 to vector<2x64xf32>
    %690 = arith.addf %689, %688 : vector<2x64xf32>
    %691 = arith.divf %689, %690 : vector<2x64xf32>
    %692 = vector.extract_strided_slice %685 {offsets = [0, 64], sizes = [2, 32], strides = [1, 1]} : vector<2x128xf32> to vector<2x32xf32>
    %693 = math.tanh %692 : vector<2x32xf32>
    %694 = vector.extract_strided_slice %685 {offsets = [0, 96], sizes = [2, 32], strides = [1, 1]} : vector<2x128xf32> to vector<2x32xf32>
    %695 = arith.negf %694 : vector<2x32xf32>
    %696 = math.exp %695 : vector<2x32xf32>
    %cst_197 = arith.constant 1.000000e+00 : f32
    %697 = vector.broadcast %cst_197 : f32 to vector<2x32xf32>
    %698 = arith.addf %697, %696 : vector<2x32xf32>
    %699 = arith.divf %697, %698 : vector<2x32xf32>
    %700 = vector.extract_strided_slice %691 {offsets = [0, 32], sizes = [2, 32], strides = [1, 1]} : vector<2x64xf32> to vector<2x32xf32>
    %701 = arith.mulf %700, %679 : vector<2x32xf32>
    %702 = vector.extract_strided_slice %691 {offsets = [0, 0], sizes = [2, 32], strides = [1, 1]} : vector<2x64xf32> to vector<2x32xf32>
    %703 = arith.mulf %702, %693 : vector<2x32xf32>
    %704 = arith.addf %701, %703 : vector<2x32xf32>
    %705 = math.tanh %704 : vector<2x32xf32>
    %706 = arith.mulf %699, %705 : vector<2x32xf32>
    %c12_198 = arith.constant 12 : index
    %c0_199 = arith.constant 0 : index
    %707 = vector.load %arg37[%c12_198, %c0_199] : memref<16x32xf32, #tpu.memory_space<vmem>>, vector<2x32xf32>
    tpu.vector_store %arg37[%c12_198, %c0_199], %706 {strides = array<i32>} : memref<16x32xf32, #tpu.memory_space<vmem>>, vector<2x32xf32>,
    %708 = vector.extract_strided_slice %528 {offsets = [14, 0], sizes = [2, 128], strides = [1, 1]} : vector<16x128xf32> to vector<2x128xf32>
    %cst_200 = arith.constant dense<0.000000e+00> : vector<2x128xf32>
    %709 = tpu.matmul %706, %530, %cst_200 {dimension_numbers = #tpu.dot_dimension_numbers<[1], [0], [0], [1], [0, 0, 1, 1], [], []>} : vector<2x32xf32>, vector<32x128xf32>, vector<2x128xf32> -> vector<2x128xf32>
    %710 = arith.addf %708, %709 : vector<2x128xf32>
    %711 = vector.extract_strided_slice %710 {offsets = [0, 0], sizes = [2, 64], strides = [1, 1]} : vector<2x128xf32> to vector<2x64xf32>
    %712 = arith.negf %711 : vector<2x64xf32>
    %713 = math.exp %712 : vector<2x64xf32>
    %cst_201 = arith.constant 1.000000e+00 : f32
    %714 = vector.broadcast %cst_201 : f32 to vector<2x64xf32>
    %715 = arith.addf %714, %713 : vector<2x64xf32>
    %716 = arith.divf %714, %715 : vector<2x64xf32>
    %717 = vector.extract_strided_slice %710 {offsets = [0, 64], sizes = [2, 32], strides = [1, 1]} : vector<2x128xf32> to vector<2x32xf32>
    %718 = math.tanh %717 : vector<2x32xf32>
    %719 = vector.extract_strided_slice %710 {offsets = [0, 96], sizes = [2, 32], strides = [1, 1]} : vector<2x128xf32> to vector<2x32xf32>
    %720 = arith.negf %719 : vector<2x32xf32>
    %721 = math.exp %720 : vector<2x32xf32>
    %cst_202 = arith.constant 1.000000e+00 : f32
    %722 = vector.broadcast %cst_202 : f32 to vector<2x32xf32>
    %723 = arith.addf %722, %721 : vector<2x32xf32>
    %724 = arith.divf %722, %723 : vector<2x32xf32>
    %725 = vector.extract_strided_slice %716 {offsets = [0, 32], sizes = [2, 32], strides = [1, 1]} : vector<2x64xf32> to vector<2x32xf32>
    %726 = arith.mulf %725, %704 : vector<2x32xf32>
    %727 = vector.extract_strided_slice %716 {offsets = [0, 0], sizes = [2, 32], strides = [1, 1]} : vector<2x64xf32> to vector<2x32xf32>
    %728 = arith.mulf %727, %718 : vector<2x32xf32>
    %729 = arith.addf %726, %728 : vector<2x32xf32>
    %730 = math.tanh %729 : vector<2x32xf32>
    %731 = arith.mulf %724, %730 : vector<2x32xf32>
    %c14_203 = arith.constant 14 : index
    %c0_204 = arith.constant 0 : index
    %732 = vector.load %arg37[%c14_203, %c0_204] : memref<16x32xf32, #tpu.memory_space<vmem>>, vector<2x32xf32>
    tpu.vector_store %arg37[%c14_203, %c0_204], %731 {strides = array<i32>} : memref<16x32xf32, #tpu.memory_space<vmem>>, vector<2x32xf32>,
    %c0_205 = arith.constant 0 : index
    %c0_206 = arith.constant 0 : index
    %733 = vector.load %arg37[%c0_205, %c0_206] : memref<16x32xf32, #tpu.memory_space<vmem>>, vector<16x32xf32>
    %cst_207 = arith.constant dense<0.000000e+00> : vector<16x32xf32>
    %734 = tpu.matmul %61, %733, %cst_207 {dimension_numbers = #tpu.dot_dimension_numbers<[1], [0], [0], [1], [0, 0, 1, 1], [], []>} : vector<16x16xf32>, vector<16x32xf32>, vector<16x32xf32> -> vector<16x32xf32>
    %c16_i32_208 = arith.constant 16 : i32
    %735 = vector.broadcast %c16_i32_208 : i32 to vector<16x32xi32>
    %736 = arith.cmpi slt, %71, %735 : vector<16x32xi32>
    %737 = arith.select %736, %733, %734 : vector<16x32xi1>, vector<16x32xf32>
    %cst_209 = arith.constant dense<0.000000e+00> : vector<16x32xf32>
    %738 = tpu.matmul %737, %72, %cst_209 {dimension_numbers = #tpu.dot_dimension_numbers<[1], [0], [0], [1], [0, 0, 1, 1], [], []>} : vector<16x32xf32>, vector<32x32xf32>, vector<16x32xf32> -> vector<16x32xf32>
    %739 = vector.broadcast %73 : vector<1x32xf32> to vector<16x32xf32>
    %740 = arith.addf %738, %739 : vector<16x32xf32>
    %741 = arith.negf %740 : vector<16x32xf32>
    %742 = math.exp %741 : vector<16x32xf32>
    %cst_210 = arith.constant 1.000000e+00 : f32
    %743 = vector.broadcast %cst_210 : f32 to vector<16x32xf32>
    %744 = arith.addf %743, %742 : vector<16x32xf32>
    %745 = arith.divf %743, %744 : vector<16x32xf32>
    %746 = arith.mulf %745, %737 : vector<16x32xf32>
    %cst_211 = arith.constant 1.000000e+00 : f32
    %747 = vector.broadcast %cst_211 : f32 to vector<16x32xf32>
    %748 = arith.subf %747, %745 : vector<16x32xf32>
    %749 = arith.mulf %748, %516 : vector<16x32xf32>
    %750 = arith.addf %746, %749 : vector<16x32xf32>
    %c0_212 = arith.constant 0 : index
    %c0_213 = arith.constant 0 : index
    %751 = vector.load %arg25[%c0_212, %c0_213] : memref<16x16xf32, #tpu.memory_space<vmem>>, vector<16x16xf32>
    %cst_214 = arith.constant dense<0.000000e+00> : vector<16x32xf32>
    %752 = tpu.matmul %751, %750, %cst_214 {dimension_numbers = #tpu.dot_dimension_numbers<[1], [0], [0], [1], [0, 0, 1, 1], [], []>} : vector<16x16xf32>, vector<16x32xf32>, vector<16x32xf32> -> vector<16x32xf32>
    %c0_215 = arith.constant 0 : index
    %c0_216 = arith.constant 0 : index
    %753 = vector.load %arg4[%c0_215, %c0_216] : memref<5x1xi32, #tpu.memory_space<vmem>>, vector<5x1xi32>
    %c0_217 = arith.constant 0 : index
    %c0_218 = arith.constant 0 : index
    %754 = vector.load %arg5[%c0_217, %c0_218] : memref<5x1xi32, #tpu.memory_space<vmem>>, vector<5x1xi32>
    %c0_219 = arith.constant 0 : index
    %c0_220 = arith.constant 0 : index
    %755 = vector.load %arg30[%c0_219, %c0_220] : memref<118x32xf32, #tpu.memory_space<vmem>>, vector<118x32xf32>
    %756 = tpu.iota {dimensions = array<i32: 1>} : vector<5x16xi32>
    %757 = arith.subi %754, %753 : vector<5x1xi32>
    %c1_i32 = arith.constant 1 : i32
    %758 = vector.broadcast %c1_i32 : i32 to vector<5x1xi32>
    %759 = arith.addi %757, %758 : vector<5x1xi32>
    %c1_i32_221 = arith.constant 1 : i32
    %760 = vector.broadcast %c1_i32_221 : i32 to vector<5x1xi32>
    %761 = arith.subi %759, %760 : vector<5x1xi32>
    %c3_i32 = arith.constant 3 : i32
    %762 = vector.broadcast %c3_i32 : i32 to vector<5x1xi32>
    %763 = arith.minsi %761, %762 : vector<5x1xi32>
    %764 = tpu.iota {dimensions = array<i32: 1>} : vector<5x4xi32>
    %765 = vector.broadcast %763 : vector<5x1xi32> to vector<5x4xi32>
    %766 = arith.cmpi eq, %764, %765 : vector<5x4xi32>
    %cst_222 = arith.constant 1.000000e+00 : f32
    %cst_223 = arith.constant 0.000000e+00 : f32
    %767 = vector.broadcast %cst_222 : f32 to vector<5x4xf32>
    %768 = vector.broadcast %cst_223 : f32 to vector<5x4xf32>
    %769 = arith.select %766, %767, %768 : vector<5x4xi1>, vector<5x4xf32>
    %c0_224 = arith.constant 0 : index
    %c0_225 = arith.constant 0 : index
    %770 = vector.load %arg29[%c0_224, %c0_225] : memref<4x8xf32, #tpu.memory_space<vmem>>, vector<4x8xf32>
    %cst_226 = arith.constant dense<0.000000e+00> : vector<5x8xf32>
    %771 = tpu.matmul %769, %770, %cst_226 {dimension_numbers = #tpu.dot_dimension_numbers<[1], [0], [0], [1], [0, 0, 1, 1], [], []>} : vector<5x4xf32>, vector<4x8xf32>, vector<5x8xf32> -> vector<5x8xf32>
    %c0_227 = arith.constant 0 : index
    %c0_228 = arith.constant 0 : index
    %772 = vector.load %arg27[%c0_227, %c0_228] : memref<1x32xf32, #tpu.memory_space<vmem>>, vector<1x32xf32>
    %c0_229 = arith.constant 0 : index
    %c0_230 = arith.constant 0 : index
    %773 = vector.load %arg28[%c0_229, %c0_230] : memref<1x1xf32, #tpu.memory_space<vmem>>, vector<1x1xf32>
    %c0_231 = arith.constant 0 : index
    %c0_232 = arith.constant 0 : index
    %774 = vector.load %arg2[%c0_231, %c0_232] : memref<16x32xf32, #tpu.memory_space<vmem>>, vector<16x32xf32>
    %775 = vector.extract_strided_slice %755 {offsets = [72, 0], sizes = [32, 32], strides = [1, 1]} : vector<118x32xf32> to vector<32x32xf32>
    %cst_233 = arith.constant dense<0.000000e+00> : vector<16x32xf32>
    %776 = tpu.matmul %774, %775, %cst_233 {dimension_numbers = #tpu.dot_dimension_numbers<[1], [0], [0], [1], [0, 0, 1, 1], [], []>} : vector<16x32xf32>, vector<32x32xf32>, vector<16x32xf32> -> vector<16x32xf32>
    %777 = vector.extract_strided_slice %755 {offsets = [104, 0], sizes = [8, 32], strides = [1, 1]} : vector<118x32xf32> to vector<8x32xf32>
    %cst_234 = arith.constant dense<0.000000e+00> : vector<16x32xf32>
    %778 = tpu.matmul %44, %777, %cst_234 {dimension_numbers = #tpu.dot_dimension_numbers<[1], [0], [0], [1], [0, 0, 1, 1], [], []>} : vector<16x8xf32>, vector<8x32xf32>, vector<16x32xf32> -> vector<16x32xf32>
    %779 = arith.addf %776, %778 : vector<16x32xf32>
    %c0_235 = arith.constant 0 : index
    %c0_236 = arith.constant 0 : index
    %780 = vector.load %arg26[%c0_235, %c0_236] : memref<16x16xf32, #tpu.memory_space<vmem>>, vector<16x16xf32>
    %cst_237 = arith.constant dense<0.000000e+00> : vector<16x32xf32>
    %781 = tpu.matmul %780, %779, %cst_237 {dimension_numbers = #tpu.dot_dimension_numbers<[1], [0], [0], [1], [0, 0, 1, 1], [], []>} : vector<16x16xf32>, vector<16x32xf32>, vector<16x32xf32> -> vector<16x32xf32>
    %c0_i32 = arith.constant 0 : i32
    %782 = vector.broadcast %c0_i32 : i32 to vector<5x1xi32>
    %783 = arith.addi %753, %782 : vector<5x1xi32>
    %784 = vector.broadcast %783 : vector<5x1xi32> to vector<5x16xi32>
    %785 = arith.cmpi eq, %756, %784 : vector<5x16xi32>
    %cst_238 = arith.constant 1.000000e+00 : f32
    %cst_239 = arith.constant 0.000000e+00 : f32
    %786 = vector.broadcast %cst_238 : f32 to vector<5x16xf32>
    %787 = vector.broadcast %cst_239 : f32 to vector<5x16xf32>
    %788 = arith.select %785, %786, %787 : vector<5x16xi1>, vector<5x16xf32>
    %cst_240 = arith.constant dense<0.000000e+00> : vector<5x32xf32>
    %789 = tpu.matmul %788, %752, %cst_240 {dimension_numbers = #tpu.dot_dimension_numbers<[1], [0], [0], [1], [0, 0, 1, 1], [], []>} : vector<5x16xf32>, vector<16x32xf32>, vector<5x32xf32> -> vector<5x32xf32>
    %790 = vector.broadcast %772 : vector<1x32xf32> to vector<5x32xf32>
    %791 = arith.mulf %789, %790 : vector<5x32xf32>
    %cst_241 = arith.constant dense<0.000000e+00> : vector<5xf32>
    %792 = vector.multi_reduction <add>, %791, %cst_241 [1] : vector<5x32xf32> to vector<5xf32>
    %793 = vector.shape_cast %792 : vector<5xf32> to vector<5x1xf32>
    %794 = vector.broadcast %773 : vector<1x1xf32> to vector<5x1xf32>
    %795 = arith.addf %793, %794 : vector<5x1xf32>
    %c0_i32_242 = arith.constant 0 : i32
    %796 = vector.broadcast %c0_i32_242 : i32 to vector<5x1xi32>
    %797 = arith.cmpi sgt, %759, %796 : vector<5x1xi32>
    %cst_243 = arith.constant -1.000000e+30 : f32
    %798 = vector.broadcast %cst_243 : f32 to vector<5x1xf32>
    %799 = arith.select %797, %795, %798 : vector<5x1xi1>, vector<5x1xf32>
    %c1_i32_244 = arith.constant 1 : i32
    %800 = vector.broadcast %c1_i32_244 : i32 to vector<5x1xi32>
    %801 = arith.addi %753, %800 : vector<5x1xi32>
    %802 = vector.broadcast %801 : vector<5x1xi32> to vector<5x16xi32>
    %803 = arith.cmpi eq, %756, %802 : vector<5x16xi32>
    %cst_245 = arith.constant 1.000000e+00 : f32
    %cst_246 = arith.constant 0.000000e+00 : f32
    %804 = vector.broadcast %cst_245 : f32 to vector<5x16xf32>
    %805 = vector.broadcast %cst_246 : f32 to vector<5x16xf32>
    %806 = arith.select %803, %804, %805 : vector<5x16xi1>, vector<5x16xf32>
    %cst_247 = arith.constant dense<0.000000e+00> : vector<5x32xf32>
    %807 = tpu.matmul %806, %752, %cst_247 {dimension_numbers = #tpu.dot_dimension_numbers<[1], [0], [0], [1], [0, 0, 1, 1], [], []>} : vector<5x16xf32>, vector<16x32xf32>, vector<5x32xf32> -> vector<5x32xf32>
    %808 = vector.broadcast %772 : vector<1x32xf32> to vector<5x32xf32>
    %809 = arith.mulf %807, %808 : vector<5x32xf32>
    %cst_248 = arith.constant dense<0.000000e+00> : vector<5xf32>
    %810 = vector.multi_reduction <add>, %809, %cst_248 [1] : vector<5x32xf32> to vector<5xf32>
    %811 = vector.shape_cast %810 : vector<5xf32> to vector<5x1xf32>
    %812 = vector.broadcast %773 : vector<1x1xf32> to vector<5x1xf32>
    %813 = arith.addf %811, %812 : vector<5x1xf32>
    %c1_i32_249 = arith.constant 1 : i32
    %814 = vector.broadcast %c1_i32_249 : i32 to vector<5x1xi32>
    %815 = arith.cmpi sgt, %759, %814 : vector<5x1xi32>
    %cst_250 = arith.constant -1.000000e+30 : f32
    %816 = vector.broadcast %cst_250 : f32 to vector<5x1xf32>
    %817 = arith.select %815, %813, %816 : vector<5x1xi1>, vector<5x1xf32>
    %c2_i32 = arith.constant 2 : i32
    %818 = vector.broadcast %c2_i32 : i32 to vector<5x1xi32>
    %819 = arith.addi %753, %818 : vector<5x1xi32>
    %820 = vector.broadcast %819 : vector<5x1xi32> to vector<5x16xi32>
    %821 = arith.cmpi eq, %756, %820 : vector<5x16xi32>
    %cst_251 = arith.constant 1.000000e+00 : f32
    %cst_252 = arith.constant 0.000000e+00 : f32
    %822 = vector.broadcast %cst_251 : f32 to vector<5x16xf32>
    %823 = vector.broadcast %cst_252 : f32 to vector<5x16xf32>
    %824 = arith.select %821, %822, %823 : vector<5x16xi1>, vector<5x16xf32>
    %cst_253 = arith.constant dense<0.000000e+00> : vector<5x32xf32>
    %825 = tpu.matmul %824, %752, %cst_253 {dimension_numbers = #tpu.dot_dimension_numbers<[1], [0], [0], [1], [0, 0, 1, 1], [], []>} : vector<5x16xf32>, vector<16x32xf32>, vector<5x32xf32> -> vector<5x32xf32>
    %826 = vector.broadcast %772 : vector<1x32xf32> to vector<5x32xf32>
    %827 = arith.mulf %825, %826 : vector<5x32xf32>
    %cst_254 = arith.constant dense<0.000000e+00> : vector<5xf32>
    %828 = vector.multi_reduction <add>, %827, %cst_254 [1] : vector<5x32xf32> to vector<5xf32>
    %829 = vector.shape_cast %828 : vector<5xf32> to vector<5x1xf32>
    %830 = vector.broadcast %773 : vector<1x1xf32> to vector<5x1xf32>
    %831 = arith.addf %829, %830 : vector<5x1xf32>
    %c2_i32_255 = arith.constant 2 : i32
    %832 = vector.broadcast %c2_i32_255 : i32 to vector<5x1xi32>
    %833 = arith.cmpi sgt, %759, %832 : vector<5x1xi32>
    %cst_256 = arith.constant -1.000000e+30 : f32
    %834 = vector.broadcast %cst_256 : f32 to vector<5x1xf32>
    %835 = arith.select %833, %831, %834 : vector<5x1xi1>, vector<5x1xf32>
    %c3_i32_257 = arith.constant 3 : i32
    %836 = vector.broadcast %c3_i32_257 : i32 to vector<5x1xi32>
    %837 = arith.addi %753, %836 : vector<5x1xi32>
    %838 = vector.broadcast %837 : vector<5x1xi32> to vector<5x16xi32>
    %839 = arith.cmpi eq, %756, %838 : vector<5x16xi32>
    %cst_258 = arith.constant 1.000000e+00 : f32
    %cst_259 = arith.constant 0.000000e+00 : f32
    %840 = vector.broadcast %cst_258 : f32 to vector<5x16xf32>
    %841 = vector.broadcast %cst_259 : f32 to vector<5x16xf32>
    %842 = arith.select %839, %840, %841 : vector<5x16xi1>, vector<5x16xf32>
    %cst_260 = arith.constant dense<0.000000e+00> : vector<5x32xf32>
    %843 = tpu.matmul %842, %752, %cst_260 {dimension_numbers = #tpu.dot_dimension_numbers<[1], [0], [0], [1], [0, 0, 1, 1], [], []>} : vector<5x16xf32>, vector<16x32xf32>, vector<5x32xf32> -> vector<5x32xf32>
    %844 = vector.broadcast %772 : vector<1x32xf32> to vector<5x32xf32>
    %845 = arith.mulf %843, %844 : vector<5x32xf32>
    %cst_261 = arith.constant dense<0.000000e+00> : vector<5xf32>
    %846 = vector.multi_reduction <add>, %845, %cst_261 [1] : vector<5x32xf32> to vector<5xf32>
    %847 = vector.shape_cast %846 : vector<5xf32> to vector<5x1xf32>
    %848 = vector.broadcast %773 : vector<1x1xf32> to vector<5x1xf32>
    %849 = arith.addf %847, %848 : vector<5x1xf32>
    %c3_i32_262 = arith.constant 3 : i32
    %850 = vector.broadcast %c3_i32_262 : i32 to vector<5x1xi32>
    %851 = arith.cmpi sgt, %759, %850 : vector<5x1xi32>
    %cst_263 = arith.constant -1.000000e+30 : f32
    %852 = vector.broadcast %cst_263 : f32 to vector<5x1xf32>
    %853 = arith.select %851, %849, %852 : vector<5x1xi1>, vector<5x1xf32>
    %854 = vector.broadcast %754 : vector<5x1xi32> to vector<5x16xi32>
    %855 = arith.cmpi eq, %756, %854 : vector<5x16xi32>
    %cst_264 = arith.constant 1.000000e+00 : f32
    %cst_265 = arith.constant 0.000000e+00 : f32
    %856 = vector.broadcast %cst_264 : f32 to vector<5x16xf32>
    %857 = vector.broadcast %cst_265 : f32 to vector<5x16xf32>
    %858 = arith.select %855, %856, %857 : vector<5x16xi1>, vector<5x16xf32>
    %cst_266 = arith.constant dense<0.000000e+00> : vector<5x32xf32>
    %859 = tpu.matmul %858, %752, %cst_266 {dimension_numbers = #tpu.dot_dimension_numbers<[1], [0], [0], [1], [0, 0, 1, 1], [], []>} : vector<5x16xf32>, vector<16x32xf32>, vector<5x32xf32> -> vector<5x32xf32>
    %860 = arith.maximumf %799, %817 : vector<5x1xf32>
    %861 = arith.maximumf %860, %835 : vector<5x1xf32>
    %862 = arith.maximumf %861, %853 : vector<5x1xf32>
    %863 = arith.subf %799, %862 : vector<5x1xf32>
    %864 = math.exp %863 : vector<5x1xf32>
    %865 = arith.subf %817, %862 : vector<5x1xf32>
    %866 = math.exp %865 : vector<5x1xf32>
    %867 = arith.subf %835, %862 : vector<5x1xf32>
    %868 = math.exp %867 : vector<5x1xf32>
    %869 = arith.subf %853, %862 : vector<5x1xf32>
    %870 = math.exp %869 : vector<5x1xf32>
    %871 = arith.addf %864, %866 : vector<5x1xf32>
    %872 = arith.addf %871, %868 : vector<5x1xf32>
    %873 = arith.addf %872, %870 : vector<5x1xf32>
    %cst_267 = arith.constant 1.000000e+00 : f32
    %874 = vector.broadcast %cst_267 : f32 to vector<5x1xf32>
    %875 = arith.divf %874, %873 : vector<5x1xf32>
    %876 = arith.mulf %864, %875 : vector<5x1xf32>
    %877 = vector.broadcast %876 : vector<5x1xf32> to vector<5x16xf32>
    %878 = arith.mulf %877, %788 : vector<5x16xf32>
    %879 = arith.mulf %866, %875 : vector<5x1xf32>
    %880 = vector.broadcast %879 : vector<5x1xf32> to vector<5x16xf32>
    %881 = arith.mulf %880, %806 : vector<5x16xf32>
    %882 = arith.addf %878, %881 : vector<5x16xf32>
    %883 = arith.mulf %868, %875 : vector<5x1xf32>
    %884 = vector.broadcast %883 : vector<5x1xf32> to vector<5x16xf32>
    %885 = arith.mulf %884, %824 : vector<5x16xf32>
    %886 = arith.addf %882, %885 : vector<5x16xf32>
    %887 = arith.mulf %870, %875 : vector<5x1xf32>
    %888 = vector.broadcast %887 : vector<5x1xf32> to vector<5x16xf32>
    %889 = arith.mulf %888, %842 : vector<5x16xf32>
    %890 = arith.addf %886, %889 : vector<5x16xf32>
    %891 = vector.extract_strided_slice %755 {offsets = [0, 0], sizes = [32, 32], strides = [1, 1]} : vector<118x32xf32> to vector<32x32xf32>
    %cst_268 = arith.constant dense<0.000000e+00> : vector<5x32xf32>
    %892 = tpu.matmul %789, %891, %cst_268 {dimension_numbers = #tpu.dot_dimension_numbers<[1], [0], [0], [1], [0, 0, 1, 1], [], []>} : vector<5x32xf32>, vector<32x32xf32>, vector<5x32xf32> -> vector<5x32xf32>
    %893 = vector.extract_strided_slice %755 {offsets = [32, 0], sizes = [32, 32], strides = [1, 1]} : vector<118x32xf32> to vector<32x32xf32>
    %cst_269 = arith.constant dense<0.000000e+00> : vector<5x32xf32>
    %894 = tpu.matmul %859, %893, %cst_269 {dimension_numbers = #tpu.dot_dimension_numbers<[1], [0], [0], [1], [0, 0, 1, 1], [], []>} : vector<5x32xf32>, vector<32x32xf32>, vector<5x32xf32> -> vector<5x32xf32>
    %895 = arith.addf %892, %894 : vector<5x32xf32>
    %896 = vector.extract_strided_slice %755 {offsets = [64, 0], sizes = [8, 32], strides = [1, 1]} : vector<118x32xf32> to vector<8x32xf32>
    %cst_270 = arith.constant dense<0.000000e+00> : vector<5x32xf32>
    %897 = tpu.matmul %771, %896, %cst_270 {dimension_numbers = #tpu.dot_dimension_numbers<[1], [0], [0], [1], [0, 0, 1, 1], [], []>} : vector<5x8xf32>, vector<8x32xf32>, vector<5x32xf32> -> vector<5x32xf32>
    %898 = arith.addf %895, %897 : vector<5x32xf32>
    %cst_271 = arith.constant dense<0.000000e+00> : vector<5x32xf32>
    %899 = tpu.matmul %890, %781, %cst_271 {dimension_numbers = #tpu.dot_dimension_numbers<[1], [0], [0], [1], [0, 0, 1, 1], [], []>} : vector<5x16xf32>, vector<16x32xf32>, vector<5x32xf32> -> vector<5x32xf32>
    %900 = arith.addf %898, %899 : vector<5x32xf32>
    %c0_272 = arith.constant 0 : index
    %c0_273 = arith.constant 0 : index
    %901 = vector.load %arg6[%c0_272, %c0_273] : memref<5x6xf32, #tpu.memory_space<vmem>>, vector<5x6xf32>
    %902 = vector.extract_strided_slice %755 {offsets = [112, 0], sizes = [6, 32], strides = [1, 1]} : vector<118x32xf32> to vector<6x32xf32>
    %cst_274 = arith.constant dense<0.000000e+00> : vector<5x32xf32>
    %903 = tpu.matmul %901, %902, %cst_274 {dimension_numbers = #tpu.dot_dimension_numbers<[1], [0], [0], [1], [0, 0, 1, 1], [], []>} : vector<5x6xf32>, vector<6x32xf32>, vector<5x32xf32> -> vector<5x32xf32>
    %904 = arith.addf %900, %903 : vector<5x32xf32>
    %c0_275 = arith.constant 0 : index
    %c0_276 = arith.constant 0 : index
    %905 = vector.load %arg31[%c0_275, %c0_276] : memref<1x32xf32, #tpu.memory_space<vmem>>, vector<1x32xf32>
    %906 = vector.broadcast %905 : vector<1x32xf32> to vector<5x32xf32>
    %907 = arith.addf %904, %906 : vector<5x32xf32>
    %cst_277 = arith.constant 0.000000e+00 : f32
    %908 = vector.broadcast %cst_277 : f32 to vector<5x32xf32>
    %909 = arith.maximumf %907, %908 : vector<5x32xf32>
    %c0_278 = arith.constant 0 : index
    %c0_279 = arith.constant 0 : index
    %910 = vector.load %arg32[%c0_278, %c0_279] : memref<32x32xf32, #tpu.memory_space<vmem>>, vector<32x32xf32>
    %cst_280 = arith.constant dense<0.000000e+00> : vector<5x32xf32>
    %911 = tpu.matmul %909, %910, %cst_280 {dimension_numbers = #tpu.dot_dimension_numbers<[1], [0], [0], [1], [0, 0, 1, 1], [], []>} : vector<5x32xf32>, vector<32x32xf32>, vector<5x32xf32> -> vector<5x32xf32>
    %c0_281 = arith.constant 0 : index
    %c0_282 = arith.constant 0 : index
    %912 = vector.load %arg33[%c0_281, %c0_282] : memref<1x32xf32, #tpu.memory_space<vmem>>, vector<1x32xf32>
    %913 = vector.broadcast %912 : vector<1x32xf32> to vector<5x32xf32>
    %914 = arith.addf %911, %913 : vector<5x32xf32>
    %cst_283 = arith.constant 0.000000e+00 : f32
    %915 = vector.broadcast %cst_283 : f32 to vector<5x32xf32>
    %916 = arith.maximumf %914, %915 : vector<5x32xf32>
    %c0_284 = arith.constant 0 : index
    %c0_285 = arith.constant 0 : index
    %917 = vector.load %arg34[%c0_284, %c0_285] : memref<32x4xf32, #tpu.memory_space<vmem>>, vector<32x4xf32>
    %cst_286 = arith.constant dense<0.000000e+00> : vector<5x4xf32>
    %918 = tpu.matmul %916, %917, %cst_286 {dimension_numbers = #tpu.dot_dimension_numbers<[1], [0], [0], [1], [0, 0, 1, 1], [], []>} : vector<5x32xf32>, vector<32x4xf32>, vector<5x4xf32> -> vector<5x4xf32>
    %c0_287 = arith.constant 0 : index
    %c0_288 = arith.constant 0 : index
    %919 = vector.load %arg35[%c0_287, %c0_288] : memref<1x4xf32, #tpu.memory_space<vmem>>, vector<1x4xf32>
    %920 = vector.broadcast %919 : vector<1x4xf32> to vector<5x4xf32>
    %921 = arith.addf %918, %920 : vector<5x4xf32>
    %cst_289 = arith.constant dense<0xFF800000> : vector<5xf32>
    %922 = vector.multi_reduction <maximumf>, %921, %cst_289 [1] : vector<5x4xf32> to vector<5xf32>
    %923 = vector.shape_cast %922 : vector<5xf32> to vector<5x1xf32>
    %924 = vector.broadcast %923 : vector<5x1xf32> to vector<5x4xf32>
    %925 = arith.subf %921, %924 : vector<5x4xf32>
    %926 = math.exp %925 : vector<5x4xf32>
    %cst_290 = arith.constant dense<0.000000e+00> : vector<5xf32>
    %927 = vector.multi_reduction <add>, %926, %cst_290 [1] : vector<5x4xf32> to vector<5xf32>
    %928 = vector.shape_cast %927 : vector<5xf32> to vector<5x1xf32>
    %929 = vector.broadcast %928 : vector<5x1xf32> to vector<5x4xf32>
    %930 = arith.divf %926, %929 : vector<5x4xf32>
    %cst_291 = arith.constant 9.99999993E-9 : f32
    %931 = vector.broadcast %cst_291 : f32 to vector<5x4xf32>
    %932 = arith.addf %930, %931 : vector<5x4xf32>
    %c0_292 = arith.constant 0 : index
    %c0_293 = arith.constant 0 : index
    %933 = vector.load %arg36[%c0_292, %c0_293] : memref<5x4xf32, #tpu.memory_space<vmem>>, vector<5x4xf32>
    tpu.vector_store %arg36[%c0_292, %c0_293], %932 {strides = array<i32>} : memref<5x4xf32, #tpu.memory_space<vmem>>, vector<5x4xf32>,
    return
  }
}

</mosaic_0001>

<bundles_post_ra>
// kernel: is_model_forward.1
= control target key start
LH: loop header
LB: loop body
LE: loop exit
PB: predicated region body
PF: predicated region fallthrough
CT: control target
= control target key end

     0   :  { %s3875_s3 = smov 7   ;;  %s3876_s10 = smov 9   ;;  %vm158_vm0 = vcmask 64512   ;;  %v3879_v47 = vmov 1.0   ;;  %vm451_vm5 = vcmask 261120   ;;  %vm489_vm6 = vcmask 392192   ;;  %s4672_s0 = inlined_call_operand.smem [shape: u32[37], index: -1, kind: input, shape index: {}] }
   0x1   :  { %s3427_s6 = sld [smem:[%s4672_s0 + %s3875_s3]]   ;;  %s3877_s14 = smov 10   ;;  %vm545_vm7 = vcmask 130048   ;;  %vm680_vm12 = vcmask 254976  }
   0x2   :  { %s1_s9 = sld [smem:[%s4672_s0]]   ;;  %s3878_s18 = smov 8  }
   0x3   :  { %s3939_s13 = sld [smem:[%s4672_s0 + %s3876_s10]]   ;;  %s3880_s22 = smov 88  }
   0x4   :  { %s3966_s17 = sld [smem:[%s4672_s0 + %s3877_s14]]   ;;  %s3881_s23 = smov 104  }
   0x5   :  { %s3428_s21 = sld [smem:[%s4672_s0 + %s3878_s18]]   ;;  %s3882_s24 = smov 120  }
   0x6   :  { %s3883_s25 = smov 64   ;;  %s3884_s26 = smov 96  }
   0x7   :  { %v156_v0 = vld [vmem:[%s3427_s6] sm:$0xff]  ;;  %v157_v1 = vld [vmem:[%s3427_s6 + $0x8] sm:$0xff]  ;;  %s3885_s27 = smov 112   ;;  %s3886_s28 = smov 40  }
   0x8   :  { %180 = vmatpush.msra.mxu0 %v156_v0  ;;  %v152_v2 = vld [vmem:[%s1_s9] sm:$0xff]  ;;  %203 = vmatpush.msra.mxu1 %v157_v1  ;;  %v153_v10 = vld [vmem:[%s1_s9 + $0x8] sm:$0xff]  ;;  %s3887_s29 = smov 80   ;;  %s3888_s30 = smov 72  }
   0x9   :  { %v154_v3 = vcvt.s32.f32 %v152_v2  ;;  %v248_v4 = vld [vmem:[%s3939_s13 + $0x78] sm:$0xff]  ;;  %v247_v5 = vld [vmem:[%s3939_s13 + $0x70] sm:$0xff]  ;;  %v246_v8 = vld [vmem:[%s3939_s13 + $0x68] sm:$0xff]  ;;  %v155_v13 = vcvt.s32.f32 %v153_v10  ;;  %s3889_s1 = smov 56   ;;  %s3890_s2 = smov 48  }
   0xa   :  { %v264_v6 = vld [vmem:[%s3939_s13 + $0xf8] sm:$0xff]  ;;  %269 = vmatpush.msra.mxu2 %v248_v4  ;;  %v263_v7 = vld [vmem:[%s3939_s13 + $0xf0] sm:$0xff]  ;;  %v262_v9 = vld [vmem:[%s3939_s13 + $0xe8] sm:$0xff]  ;;  %s3891_s3 = smov 32   ;;  %s3892_s4 = smov 11  }
   0xb   :  { %292 = vmatpush.msra.mxu3 %v264_v6  ;;  %3457 = vmatmul.msk.f32.vlgmr.msra.gmra.mxu0 %vm158_vm0, %v154_v3  ;;  %v245_v11 = vld [vmem:[%s3939_s13 + $0x60] sm:$0xff]  ;;  %v244_v14 = vld [vmem:[%s3939_s13 + $0x58] sm:$0xff]  ;;  %v243_v16 = vld [vmem:[%s3939_s13 + $0x50] sm:$0xff]  ;;  %s3431_s7 = sld [smem:[%s4672_s0 + %s3892_s4]]   ;;  %s3893_s8 = smov 12  }
   0xc   :  { %3459 = vmatmul.msk.f32.vlgmr.msra.gmra.mxu1 %vm158_vm0, %v154_v3  ;;  %270 = vmatpush.msra.mxu2 %v247_v5  ;;  %v261_v12 = vld [vmem:[%s3939_s13 + $0xe0] sm:$0xff]  ;;  %v260_v15 = vld [vmem:[%s3939_s13 + $0xd8] sm:$0xff]  ;;  %v259_v17 = vld [vmem:[%s3939_s13 + $0xd0] sm:$0xff]  ;;  %s3432_s11 = sld [smem:[%s4672_s0 + %s3893_s8]]   ;;  %s3894_s12 = smov 1  }
   0xd   :  { %293 = vmatpush.msra.mxu3 %v263_v7  ;;  %v242_v18 = vld [vmem:[%s3939_s13 + $0x48] sm:$0xff]  ;;  %v241_v20 = vld [vmem:[%s3939_s13 + $0x40] sm:$0xff]  ;;  %v240_v22 = vld [vmem:[%s3939_s13 + $0x38] sm:$0xff]  ;;  %s4029_s15 = sld [smem:[%s4672_s0 + %s3894_s12]]   ;;  %s3895_s16 = smov 13  }
   0xe   :  { %271 = vmatpush.msra.mxu2 %v246_v8  ;;  %v258_v19 = vld [vmem:[%s3939_s13 + $0xc8] sm:$0xff]  ;;  %v257_v21 = vld [vmem:[%s3939_s13 + $0xc0] sm:$0xff]  ;;  %v256_v23 = vld [vmem:[%s3939_s13 + $0xb8] sm:$0xff]  ;;  %s3433_s19 = sld [smem:[%s4672_s0 + %s3895_s16]]   ;;  %s3896_s20 = smov 3  }
   0xf   :  { %294 = vmatpush.msra.mxu3 %v262_v9  ;;  %v239_v24 = vld [vmem:[%s3939_s13 + $0x30] sm:$0xff]  ;;  %v238_v26 = vld [vmem:[%s3939_s13 + $0x28] sm:$0xff]  ;;  %v237_v28 = vld [vmem:[%s3939_s13 + $0x20] sm:$0xff]  ;;  %s3900_s4 = smov 15   ;;  %s3901_s8 = smov 16  }
  0x10   :  { %272 = vmatpush.msra.mxu2 %v245_v11  ;;  %v255_v25 = vld [vmem:[%s3939_s13 + $0xb0] sm:$0xff]  ;;  %v254_v27 = vld [vmem:[%s3939_s13 + $0xa8] sm:$0xff]  ;;  %v253_v29 = vld [vmem:[%s3939_s13 + $0xa0] sm:$0xff]  ;;  %s3902_s12 = smov 17   ;;  %s3903_s16 = smov 19  }
  0x11   :  { %295 = vmatpush.msra.mxu3 %v261_v12  ;;  %v236_v30 = vld [vmem:[%s3939_s13 + $0x18] sm:$0xff]  ;;  %v235_v31 = vld [vmem:[%s3939_s13 + $0x10] sm:$0xff]  ;;  %v234_v33 = vld [vmem:[%s3939_s13 + $0x8] sm:$0xff]  ;;  %s3907_s5 = smov 23   ;;  %s3908_s9 = smov 24  }
  0x12   :  { %273 = vmatpush.msra.mxu2 %v244_v14  ;;  %v252_v32 = vld [vmem:[%s3939_s13 + $0x98] sm:$0xff]  ;;  %v251_v34 = vld [vmem:[%s3939_s13 + $0x90] sm:$0xff]  ;;  %v233_v35 = vld [vmem:[%s3939_s13] sm:$0xff]  ;;  %s3922_s6 = smov 34  }
  0x13   :  { %296 = vmatpush.msra.mxu3 %v260_v15  ;;  %3458 = vmatmul.msk.f32.gmra.mxu0 %vm158_vm0, %v155_v13  ;;  %v250_v36 = vld [vmem:[%s3939_s13 + $0x88] sm:$0xff]  ;;  %v249_v37 = vld [vmem:[%s3939_s13 + $0x80] sm:$0xff]  ;;  %v420_v2 = vld [vmem:[%s3431_s7 + $0x18] sm:$0xff] }
  0x14   :  { %3460 = vmatmul.msk.f32.gmra.mxu1 %vm158_vm0, %v155_v13  ;;  %274 = vmatpush.msra.mxu2 %v243_v16  ;;  %v211_v38 = vld [vmem:[%s3428_s21] sm:$0x3]  ;;  %v419_v3 = vld [vmem:[%s3431_s7 + $0x10] sm:$0xff]  ;;  %v418_v4 = vld [vmem:[%s3431_s7 + $0x8] sm:$0xff] }
  0x15   :  { %297 = vmatpush.msra.mxu3 %v259_v17  ;;  %v213_v39 = vperm.slane %v211_v38, 0  ;;  %v214_v40 = vperm.slane %v211_v38, 1  ;;  %v3639_v54 = vld [vmem:[%s3966_s17] ss:$0 sm:$0xff]  ;;  %470 = vmatpush.msrb.mxu1 %v420_v2 }
  0x16   :  { %275 = vmatpush.msra.mxu2 %v242_v18  ;;  %v421_v8 = vld [vmem:[%s3432_s11] sm:$0xff]  ;;  %s4093_s11 = sld [smem:[%s4672_s0 + %s3901_s8]]  }
  0x17   :  { %298 = vmatpush.msra.mxu3 %v258_v19  ;;  %471 = vmatpush.msrb.mxu1 %v419_v3  ;;  %v417_v9 = vld [vmem:[%s3431_s7] sm:$0xff]  ;;  %s3435_s7 = sld [smem:[%s4672_s0 + %s3900_s4]]  }
  0x18   :  { %276 = vmatpush.msra.mxu2 %v241_v20  ;;  %443 = vmatpush.msrb.mxu0 %v421_v8  ;;  %v415_v10 = vld [vmem:[%s4029_s15] sm:$0xff]  ;;  %s3443_s8 = sld [smem:[%s4672_s0 + %s3907_s5]]  }
  0x19   :  { %299 = vmatpush.msra.mxu3 %v257_v21  ;;  %472 = vmatpush.msrb.mxu1 %v418_v4  ;;  %s3452_s5 = sld [smem:[%s4672_s0 + %s3891_s3]]  }
  0x1a   :  { %277 = vmatpush.msra.mxu2 %v240_v22 }
  0x1b   :  { %300 = vmatpush.msra.mxu3 %v256_v23  ;;  %473 = vmatpush.msrb.mxu1 %v417_v9 }
  0x1c   :  { %278 = vmatpush.msra.mxu2 %v239_v24  ;;  %3467 = vmatmul.msk.f32.vlgmr.msrb.gmra.mxu1 %vm451_vm5, %v415_v10 }
  0x1d   :  { %301 = vmatpush.msra.mxu3 %v255_v25  ;;  %v527_v10 = vld [vmem:[%s3435_s7] sm:$0x1] }
  0x1e   :  { %279 = vmatpush.msra.mxu2 %v238_v26 }
  0x1f   :  { %302 = vmatpush.msra.mxu3 %v254_v27 }
  0x20   :  { %280 = vmatpush.msra.mxu2 %v237_v28 }
  0x21   :  { %303 = vmatpush.msra.mxu3 %v253_v29  ;;  %v488_v29 = vld [vmem:[%s3433_s19 + $0x28] sm:$0xff] }
  0x22   :  { %281 = vmatpush.msra.mxu2 %v236_v30  ;;  %v487_v30 = vld [vmem:[%s3433_s19 + $0x20] sm:$0xff]  ;;  %506 = vmatpush.msra.mxu0 %v488_v29 }
  0x23   :  { %304 = vmatpush.msra.mxu3 %v252_v32 }
  0x24   :  { %282 = vmatpush.msra.mxu2 %v235_v31  ;;  %507 = vmatpush.msra.mxu0 %v487_v30 }
  0x25   :  { %305 = vmatpush.msra.mxu3 %v251_v34 }
  0x26   :  { %283 = vmatpush.msra.mxu2 %v234_v33  ;;  %v416_v33 = vld [vmem:[%s4029_s15 + $0x8] sm:$0xff]  ;;  %s4099_s15 = sld [smem:[%s4672_s0 + %s3902_s12]]  }
  0x27   :  { %306 = vmatpush.msra.mxu3 %v250_v36  ;;  %3468 = vmatmul.msk.f32.gmra.mxu1 %vm451_vm5, %v416_v33  ;;  %s4366_s12 = sld [smem:[%s4672_s0 + %s3908_s9]]  }
  0x28   :  { %284 = vmatpush.msra.mxu2 %v233_v35  ;;  %v486_v35 = vld [vmem:[%s3433_s19 + $0x18] sm:$0xff]  ;;  %s3454_s9 = sld [smem:[%s4672_s0 + %s3922_s6]]  }
  0x29   :  { %307 = vmatpush.msra.mxu3 %v249_v37  ;;  %508 = vmatpush.msra.mxu0 %v486_v35 }
  0x88   :  { %v182_v41 = vpop.f32.mrf.mxu0 }
  0x89   :  { %v205_v42 = vpop.f32.mrf.mxu1  ;;  %v217_v43 = vsub.f32 %v182_v41, %v213_v39  ;;  %v484_v41 = vld [vmem:[%s3433_s19 + $0x8] sm:$0xff] }
  0x8a   :  { %v218_v44 = vsub.f32 %v205_v42, %v214_v40  ;;  %v483_v42 = vld [vmem:[%s3433_s19] sm:$0xff] }
  0x8b   :  { %v221_v45 = vand.u32 2147483647, %v217_v43 }
  0x8c   :  { %v222_v46 = vand.u32 2147483647, %v218_v44 }
  0x8d   :  { %vm225_vm1 = vcmp.lt.f32.partialorder %v221_v45, 0.5 }
  0x8e   :  { %vm226_vm2 = vcmp.lt.f32.partialorder %v222_v46, 0.5  ;;  %3461 = vmatmul.msk.f32.vlgmr.msra.gmra.mxu2 %vm225_vm1, %v3879_v47 }
  0x8f   :  { %3463 = vmatmul.msk.f32.vlgmr.msra.gmra.mxu3 %vm226_vm2, %v3879_v47 }
  0x90   :  { %v185_v48 = vpop.f32.mrf.mxu0 }
  0x91   :  { %v208_v49 = vpop.f32.mrf.mxu1  ;;  %v219_v50 = vsub.f32 %v185_v48, %v213_v39  ;;  %v485_v39 = vld [vmem:[%s3433_s19 + $0x10] sm:$0xff]  ;;  %s4198_s19 = sld [smem:[%s4672_s0 + %s3903_s16]]   ;;  %s3911_s16 = smov 5  }
  0x92   :  { %v220_v51 = vsub.f32 %v208_v49, %v214_v40  ;;  %509 = vmatpush.msra.mxu0 %v485_v39 }
  0x93   :  { %v223_v52 = vand.u32 2147483647, %v219_v50 }
  0x94   :  { %v224_v53 = vand.u32 2147483647, %v220_v51  ;;  %510 = vmatpush.msra.mxu0 %v484_v41 }
  0x95   :  { %vm227_vm3 = vcmp.lt.f32.partialorder %v223_v52, 0.5 }
  0x96   :  { %vm228_vm4 = vcmp.lt.f32.partialorder %v224_v53, 0.5  ;;  %3462 = vmatmul.msk.f32.gmra.mxu2 %vm227_vm3, %v3879_v47  ;;  %511 = vmatpush.msra.mxu0 %v483_v42 }
  0x97   :  { %3464 = vmatmul.msk.f32.gmra.mxu3 %vm228_vm4, %v3879_v47 }
 0x111   :  { %v286_v55 = vpop.f32.mrf.mxu2 }
 0x112   :  { %v309_v56 = vpop.f32.mrf.mxu3  ;;  %v287_v57 = vadd.f32 %v3639_v54, %v286_v55 }
 0x114   :  { %v310_v58 = vadd.f32 %v309_v56, %v287_v57 }
 0x116   :  { %v3986_v59 = vmax.f32 %v310_v58, 0.0 }
 0x118   :  { %351 = vrot.lane.b32.xlu2 %v3986_v59, %s3880_s22  ;;  %335 = vrot.lane.b32.xlu1 %v3986_v59, %s3881_s23 }
 0x119   :  { %319 = vrot.lane.b32.xlu0 %v3986_v59, %s3882_s24  ;;  %v289_v60 = vpop.f32.mrf.mxu2 }
 0x11a   :  { %v290_v61 = vadd.f32 %v3639_v54, %v289_v60  ;;  %v312_v62 = vpop.f32.mrf.mxu3 }
 0x11c   :  { %v313_v63 = vadd.f32 %v312_v62, %v290_v61 }
 0x11e   :  { %v3999_v0 = vmax.f32 %v313_v63, 0.0 }
 0x120   :  { %375 = vrot.lane.b32.xlu2 %v3986_v59, %s3883_s25  ;;  %343 = vrot.lane.b32.xlu1 %v3986_v59, %s3884_s26 }
 0x121   :  { %327 = vrot.lane.b32.xlu0 %v3986_v59, %s3885_s27 }
 0x128   :  { %399 = vrot.lane.b32.xlu2 %v3986_v59, %s3886_s28  ;;  %359 = vrot.lane.b32.xlu1 %v3986_v59, %s3887_s29 }
 0x129   :  { %367 = vrot.lane.b32.xlu0 %v3986_v59, %s3888_s30 }
 0x130   :  { %383 = vrot.lane.b32.xlu1 %v3986_v59, %s3889_s1  ;;  %321 = vrot.lane.b32.xlu2 %v3999_v0, %s3882_s24  ;;  %s3897_s24 = smov 14  }
 0x131   :  { %391 = vrot.lane.b32.xlu0 %v3986_v59, %s3890_s2 }
 0x138   :  { %407 = vrot.lane.b32.xlu1 %v3986_v59, %s3891_s3  ;;  %337 = vrot.lane.b32.xlu2 %v3999_v0, %s3881_s23  ;;  %s3423_s23 = sld [smem:[%s4672_s0 + %s3896_s20]]   ;;  %s3904_s20 = smov 18  }
 0x139   :  { %329 = vrot.lane.b32.xlu0 %v3999_v0, %s3885_s27 }
 0x13e   :  { %v481_v62 = vld [vmem:[%s3423_s23] sm:$0xff]  ;;  %v482_v63 = vld [vmem:[%s3423_s23 + $0x8] sm:$0xff]  ;;  %s4207_s23 = sld [smem:[%s4672_s0 + %s3904_s20]]   ;;  %s3912_s20 = smov 29  }
 0x140   :  { %345 = vrot.lane.b32.xlu1 %v3999_v0, %s3884_s26  ;;  %361 = vrot.lane.b32.xlu2 %v3999_v0, %s3887_s29  ;;  %s3898_s29 = smov 22   ;;  %s3913_s26 = smov 30  }
 0x141   :  { %353 = vrot.lane.b32.xlu0 %v3999_v0, %s3880_s22 }
 0x148   :  { %369 = vrot.lane.b32.xlu1 %v3999_v0, %s3888_s30  ;;  %385 = vrot.lane.b32.xlu2 %v3999_v0, %s3889_s1 }
 0x149   :  { %377 = vrot.lane.b32.xlu0 %v3999_v0, %s3883_s25 }
 0x150   :  { %401 = vrot.lane.b32.xlu1 %v3999_v0, %s3886_s28  ;;  %409 = vrot.lane.b32.xlu2 %v3999_v0, %s3891_s3  ;;  %s4052_s28 = sld [smem:[%s4672_s0 + %s3897_s24]]   ;;  %s3905_s24 = smov 20  }
 0x151   :  { %393 = vrot.lane.b32.xlu0 %v3999_v0, %s3890_s2  ;;  %s4059_s2 = sld [smem:[%s4672_s0 + %s3898_s29]]   ;;  %s3906_s29 = smov 21  }
 0x152   :  { %s4249_s4 = sld [smem:[%s4672_s0 + %s3906_s29]]  }
 0x153   :  { %s4508_s29 = sld [smem:[%s4672_s0 + %s3913_s26]]  }
 0x157   :  { %v4072_v3 = vld [vmem:[%s4059_s2 + $0x8] sm:$0xff]  ;;  %v611_v4 = vld [vmem:[%s4059_s2] sm:$0xff] }
 0x172   :  { %v352_v1 = vpop.permute.xlu2 %351 }
 0x17a   :  { %v376_v6 = vpop.permute.xlu2 %375 }
 0x182   :  { %v400_v15 = vpop.permute.xlu2 %399 }
 0x18a   :  { %v336_v5 = vpop.permute.xlu1 %335  ;;  %v322_v23 = vpop.permute.xlu2 %321 }
 0x18b   :  { %v320_v7 = vpop.permute.xlu0 %319  ;;  %v326_v36 = vmax.f32 %v3999_v0, %v322_v23  ;;  %v4062_v0 = vld [vmem:[%s4059_s2 + $0x18] sm:$0xff] }
 0x18c   :  { %v325_v11 = vmax.f32 %v3986_v59, %v320_v7  ;;  %630 = vmatpush.msrb.mxu3 %v4062_v0  ;;  %v475_v7 = vpop.f32.mrf.mxu1 }
 0x192   :  { %v344_v12 = vpop.permute.xlu1 %343  ;;  %v338_v31 = vpop.permute.xlu2 %337 }
 0x193   :  { %v328_v13 = vpop.permute.xlu0 %327 }
 0x194   :  { %v333_v14 = vmax.f32 %v325_v11, %v328_v13  ;;  %v478_v9 = vpop.f32.mrf.mxu1 }
 0x196   :  { %v341_v16 = vmax.f32 %v333_v14, %v336_v5  ;;  %v3899_v5 = vmov 0.0   ;;  %v3640_v14 = vld [vmem:[%s4052_s28] ss:$0 sm:$0xff]  ;;  %s4224_s28 = sld [smem:[%s4672_s0 + %s3905_s24]]  }
 0x197   :  { %s3449_s24 = sld [smem:[%s4672_s0 + %s3912_s20]]  }
 0x198   :  { %v349_v17 = vmax.f32 %v341_v16, %v344_v12 }
 0x19a   :  { %v360_v18 = vpop.permute.xlu1 %359  ;;  %v357_v19 = vmax.f32 %v349_v17, %v352_v1  ;;  %v362_v45 = vpop.permute.xlu2 %361  ;;  %v4067_v1 = vld [vmem:[%s4059_s2 + $0x10] sm:$0xff] }
 0x19b   :  { %v368_v20 = vpop.permute.xlu0 %367  ;;  %631 = vmatpush.msrb.mxu3 %v4067_v1 }
 0x19c   :  { %v365_v21 = vmax.f32 %v357_v19, %v360_v18 }
 0x19d   :  { %632 = vmatpush.msrb.mxu3 %v4072_v3 }
 0x19e   :  { %v373_v22 = vmax.f32 %v365_v21, %v368_v20  ;;  %v3641_v21 = vld [vmem:[%s3435_s7] ss:$0 sm:$0xff] }
 0x19f   :  { %633 = vmatpush.msrb.mxu3 %v611_v4 }
 0x1a0   :  { %v381_v24 = vmax.f32 %v373_v22, %v376_v6  ;;  %634 = vmatmul.f32.vlgmr.msrb.gmra.mxu3 %v3899_v5 }
 0x1a1   :  { %846 = vmatpush.msra.mxu3 %v4062_v0 }
 0x1a2   :  { %v384_v25 = vpop.permute.xlu1 %383  ;;  %v386_v53 = vpop.permute.xlu2 %385 }
 0x1a3   :  { %v389_v26 = vmax.f32 %v381_v24, %v384_v25  ;;  %v392_v27 = vpop.permute.xlu0 %391  ;;  %847 = vmatpush.msra.mxu3 %v4067_v1 }
 0x1a5   :  { %v397_v28 = vmax.f32 %v389_v26, %v392_v27  ;;  %848 = vmatpush.msra.mxu3 %v4072_v3  ;;  %v528_v26 = vld [vmem:[%s4093_s11] sm:$0xff] }
 0x1a6   :  { %v530_v27 = vld [vmem:[%s4099_s15] sm:$0xff] }
 0x1a7   :  { %v405_v32 = vmax.f32 %v397_v28, %v400_v15  ;;  %849 = vmatpush.msra.mxu3 %v611_v4  ;;  %v539_v15 = vsub.f32 1.0, %v527_v10 }
 0x1a9   :  { %1137 = vmatpush.msrb.mxu3 %v4062_v0  ;;  %v541_v20 = vperm.slane %v539_v15, 0 }
 0x1aa   :  { %v408_v34 = vpop.permute.xlu1 %407  ;;  %v410_v60 = vpop.permute.xlu2 %409 }
 0x1ab   :  { %v4040_v37 = vmax.f32 %v405_v32, %v408_v34  ;;  %v330_v38 = vpop.permute.xlu0 %329  ;;  %1138 = vmatpush.msrb.mxu3 %v4067_v1 }
 0x1ac   :  { %v334_v40 = vmax.f32 %v326_v36, %v330_v38 }
 0x1ad   :  { %3465 = vmatmul.msk.f32.vlgmr.msrb.gmra.mxu0 %vm158_vm0, %v4040_v37  ;;  %1139 = vmatpush.msrb.mxu3 %v4072_v3 }
 0x1ae   :  { %v342_v43 = vmax.f32 %v334_v40, %v338_v31  ;;  %696 = vmatpush.msrb.mxu0 %v4062_v0 }
 0x1af   :  { %1140 = vmatpush.msrb.mxu3 %v611_v4 }
 0x1b0   :  { %697 = vmatpush.msrb.mxu0 %v4067_v1 }
 0x1b2   :  { %v346_v44 = vpop.permute.xlu1 %345  ;;  %698 = vmatpush.msrb.mxu0 %v4072_v3 }
 0x1b3   :  { %v350_v46 = vmax.f32 %v342_v43, %v346_v44  ;;  %v354_v47 = vpop.permute.xlu0 %353 }
 0x1b4   :  { %699 = vmatpush.msrb.mxu0 %v611_v4 }
 0x1b5   :  { %v358_v48 = vmax.f32 %v350_v46, %v354_v47 }
 0x1b7   :  { %v366_v49 = vmax.f32 %v358_v48, %v362_v45 }
 0x1ba   :  { %v370_v50 = vpop.permute.xlu1 %369 }
 0x1bb   :  { %v374_v51 = vmax.f32 %v366_v49, %v370_v50  ;;  %v378_v52 = vpop.permute.xlu0 %377 }
 0x1bd   :  { %v382_v54 = vmax.f32 %v374_v51, %v378_v52 }
 0x1bf   :  { %v390_v55 = vmax.f32 %v382_v54, %v386_v53 }
 0x1c2   :  { %v402_v58 = vpop.permute.xlu1 %401 }
 0x1c3   :  { %v394_v56 = vpop.permute.xlu0 %393 }
 0x1c4   :  { %v398_v57 = vmax.f32 %v390_v55, %v394_v56 }
 0x1c6   :  { %v406_v59 = vmax.f32 %v398_v57, %v402_v58 }
 0x1c8   :  { %v4047_v61 = vmax.f32 %v406_v59, %v410_v60 }
 0x1ca   :  { %3466 = vmatmul.msk.f32.gmra.mxu0 %vm158_vm0, %v4047_v61 }
 0x1d2   :  { %3469 = vmatmul.msk.f32.vlgmr.msra.gmra.mxu0 %vm489_vm6, %v481_v62 }
 0x1d3   :  { %921 = vmatpush.msra.mxu0 %v4062_v0 }
 0x1d5   :  { %922 = vmatpush.msra.mxu0 %v4067_v1 }
 0x1d7   :  { %923 = vmatpush.msra.mxu0 %v4072_v3 }
 0x1d9   :  { %924 = vmatpush.msra.mxu0 %v611_v4 }
 0x1da   :  { %3470 = vmatmul.msk.f32.gmra.mxu0 %vm489_vm6, %v482_v63 }
 0x223   :  { %v635_v30 = vpop.f32.mrf.mxu3 }
 0x22a   :  { %v445_v2 = vpop.f32.mrf.mxu0 }
 0x22b   :  { %v476_v11 = vadd.f32 %v475_v7, %v445_v2 }
 0x247   :  { %v448_v6 = vpop.f32.mrf.mxu0 }
 0x248   :  { %v479_v12 = vadd.f32 %v478_v9, %v448_v6 }
 0x24f   :  { %v513_v8 = vpop.f32.mrf.mxu0 }
 0x250   :  { %v519_v13 = vadd.f32 %v513_v8, %v476_v11 }
 0x252   :  { %v525_v18 = vadd.f32 %v3640_v14, %v519_v13 }
 0x254   :  { %v543_v24 = vmul.f32 %v541_v20, %v525_v18  ;;  %v537_v25 = vmul.f32 %v3641_v21, %v525_v18 }
 0x257   :  { %v516_v16 = vpop.f32.mrf.mxu0 }
 0x258   :  { %v520_v17 = vadd.f32 %v516_v16, %v479_v12 }
 0x25a   :  { %v526_v19 = vadd.f32 %v3640_v14, %v520_v17 }
 0x25c   :  { %v544_v22 = vmul.f32 %v541_v20, %v526_v19  ;;  %v538_v23 = vmul.f32 %v3641_v21, %v526_v19  ;;  %v529_v19 = vld [vmem:[%s4093_s11 + $0x8] sm:$0xff] }
 0x25d   :  { %v531_v20 = vld [vmem:[%s4099_s15 + $0x8] sm:$0xff] }
 0x25e   :  { %566 = vmatpush.msra.mxu1 %v544_v22  ;;  %595 = vmatpush.msrb.mxu2 %v538_v23 }
 0x260   :  { %567 = vmatpush.msra.mxu1 %v543_v24  ;;  %596 = vmatpush.msrb.mxu2 %v537_v25 }
 0x261   :  { %3473 = vmatmul.msk.f32.vlgmr.msrb.gmra.mxu2 %vm545_vm7, %v528_v26  ;;  %3471 = vmatmul.msk.f32.vlgmr.msra.gmra.mxu1 %vm545_vm7, %v530_v27 }
 0x262   :  { %771 = vmatpush.msrb.mxu1 %v4062_v0  ;;  %1063 = vmatpush.msra.mxu2 %v4062_v0 }
 0x264   :  { %772 = vmatpush.msrb.mxu1 %v4067_v1  ;;  %1064 = vmatpush.msra.mxu2 %v4067_v1 }
 0x266   :  { %773 = vmatpush.msrb.mxu1 %v4072_v3  ;;  %1065 = vmatpush.msra.mxu2 %v4072_v3 }
 0x268   :  { %774 = vmatpush.msrb.mxu1 %v611_v4  ;;  %1066 = vmatpush.msra.mxu2 %v611_v4 }
 0x269   :  { %3474 = vmatmul.msk.f32.gmra.mxu2 %vm545_vm7, %v529_v19  ;;  %3472 = vmatmul.msk.f32.gmra.mxu1 %vm545_vm7, %v531_v20 }
 0x26a   :  { %989 = vmatpush.msra.mxu1 %v4062_v0 }
 0x26c   :  { %990 = vmatpush.msra.mxu1 %v4067_v1 }
 0x26e   :  { %991 = vmatpush.msra.mxu1 %v4072_v3 }
 0x270   :  { %992 = vmatpush.msra.mxu1 %v611_v4 }
 0x2de   :  { %v569_v28 = vpop.f32.mrf.mxu1 }
 0x2e4   :  { %v598_v29 = vpop.f32.mrf.mxu2 }
 0x2e5   :  { %v4114_v31 = vadd.f32 %v598_v29, %v569_v28 }
 0x2e6   :  { %v4136_v25 = vpop.f32.mrf.mxu1 }
 0x2e7   :  { %v638_v32 = vadd.f32 %v635_v30, %v4114_v31 }
 0x2e9   :  { %3650 = vtanh.f32 %v638_v32  ;;  %v3475_v34 = vmul.f32 -1.442695, %v638_v32 }
 0x2eb   :  { %3652 = vpow2.f32 %v3475_v34 }
 0x2ef   :  { %v3651_v33 = vpop.eup %3650 }
 0x2f0   :  { %661 = vrot.lane.b32.xlu0 %v3651_v33, %s3883_s25 }
 0x2f1   :  { %v3653_v35 = vpop.eup %3652 }
 0x2f2   :  { %v642_v36 = vadd.f32 1.0, %v3653_v35 }
 0x2f4   :  { %3654 = vrcp.f32 %v642_v36  ;;  %v654_v43 = vand.u32 2147483648, %v642_v36  ;;  %vm648_vm9 = vweird.f32 %v642_v36  ;;  %v652_v44 = vand.u32 2147483647, %v642_v36 }
 0x2f6   :  { %v655_v46 = vor.u32 1.1754944e-38, %v654_v43  ;;  %vm653_vm11 = vcmp.eq.f32.partialorder %v652_v44, 8.507059e+37 }
 0x2fa   :  { %v3655_v38 = vpop.eup %3654 }
 0x2fb   :  { %v644_v39 = vmul.f32 %v3655_v38, %v642_v36  ;;  %vm649_vm8 = vweird.f32 %v3655_v38 }
 0x2fc   :  { %vm650_vm10 = vmor %vm648_vm9, %vm649_vm8 }
 0x2fd   :  { %v645_v40 = vsub.f32 1.0, %v644_v39 }
 0x2ff   :  { %v646_v41 = vmul.f32 %v3655_v38, %v645_v40 }
 0x301   :  { %v647_v42 = vadd.f32 %v3655_v38, %v646_v41 }
 0x303   :  { %v651_v45 = vsel %vm650_vm10, %v3655_v38, %v647_v42 }
 0x304   :  { %v656_v48 = vsel %vm653_vm11, %v655_v46, %v651_v45 }
 0x305   :  { %v659_v50 = vmul.f32 0.0, %v656_v48 }
 0x362   :  { %v662_v47 = vpop.permute.xlu0 %661 }
 0x363   :  { %v664_v49 = vmul.f32 %v662_v47, %v656_v48 }
 0x365   :  { %666 = vrot.lane.b32.xlu1 %v664_v49, %s3891_s3 }
 0x3d7   :  { %v667_v51 = vpop.permute.xlu1 %666 }
 0x3d8   :  { %v669_v52 = vadd.f32 %v667_v51, %v659_v50 }
 0x3da   :  { %3656 = vtanh.f32 %v669_v52  ;;  %v729_v14 = vrot.slane %v669_v52, 6 }
 0x3e0   :  { %v3657_v53 = vpop.eup %3656 }
 0x3e1   :  { %672 = vrot.lane.b32.xlu2 %v3657_v53, %s3883_s25 }
 0x43b   :  { %v673_v54 = vpop.permute.xlu2 %672 }
 0x43c   :  { %v675_v55 = vmul.f32 %v673_v54, %v656_v48 }
 0x43e   :  { %677 = vrot.lane.b32.xlu0 %v675_v55, %s3891_s3 }
 0x4b0   :  { %v678_v56 = vpop.permute.xlu0 %677 }
 0x4b1   :  { %681 = vst.msk [vmem:[#allocation2] sm:$0x3] %vm680_vm12, %v678_v56  ;;  %3476 = vmatmul.msk.f32.vlgmr.msrb.gmra.mxu0 %vm451_vm5, %v678_v56 }
 0x52e   :  { %v701_v57 = vpop.f32.mrf.mxu0 }
 0x52f   :  { %v705_v58 = vrot.slane %v701_v57, 6 }
 0x531   :  { %v707_v59 = vadd.f32 %v705_v58, %v4114_v31 }
 0x533   :  { %3658 = vtanh.f32 %v707_v59  ;;  %v3477_v62 = vmul.f32 -1.442695, %v707_v59 }
 0x535   :  { %3660 = vpow2.f32 %v3477_v62 }
 0x539   :  { %v3659_v60 = vpop.eup %3658 }
 0x53a   :  { %733 = vrot.lane.b32.xlu1 %v3659_v60, %s3883_s25 }
 0x53b   :  { %v3661_v63 = vpop.eup %3660 }
 0x53c   :  { %v711_v0 = vadd.f32 1.0, %v3661_v63 }
 0x53e   :  { %3662 = vrcp.f32 %v711_v0  ;;  %v723_v7 = vand.u32 2147483648, %v711_v0  ;;  %vm717_vm14 = vweird.f32 %v711_v0  ;;  %v721_v8 = vand.u32 2147483647, %v711_v0 }
 0x540   :  { %v724_v10 = vor.u32 1.1754944e-38, %v723_v7  ;;  %vm722_vm1 = vcmp.eq.f32.partialorder %v721_v8, 8.507059e+37 }
 0x544   :  { %v3663_v1 = vpop.eup %3662 }
 0x545   :  { %v713_v2 = vmul.f32 %v3663_v1, %v711_v0  ;;  %vm718_vm13 = vweird.f32 %v3663_v1 }
 0x546   :  { %vm719_vm15 = vmor %vm717_vm14, %vm718_vm13 }
 0x547   :  { %v714_v3 = vsub.f32 1.0, %v713_v2 }
 0x549   :  { %v715_v4 = vmul.f32 %v3663_v1, %v714_v3 }
 0x54b   :  { %v716_v6 = vadd.f32 %v3663_v1, %v715_v4 }
 0x54d   :  { %v720_v9 = vsel %vm719_vm15, %v3663_v1, %v716_v6 }
 0x54e   :  { %v725_v12 = vsel %vm722_vm1, %v724_v10, %v720_v9 }
 0x54f   :  { %v731_v15 = vmul.f32 %v729_v14, %v725_v12 }
 0x5ac   :  { %v734_v11 = vpop.permute.xlu1 %733 }
 0x5ad   :  { %v736_v13 = vmul.f32 %v734_v11, %v725_v12 }
 0x5af   :  { %738 = vrot.lane.b32.xlu2 %v736_v13, %s3891_s3 }
 0x609   :  { %v739_v16 = vpop.permute.xlu2 %738 }
 0x60a   :  { %v741_v17 = vadd.f32 %v739_v16, %v731_v15 }
 0x60c   :  { %3664 = vtanh.f32 %v741_v17  ;;  %v804_v47 = vrot.slane %v741_v17, 6 }
 0x612   :  { %v3665_v18 = vpop.eup %3664 }
 0x613   :  { %744 = vrot.lane.b32.xlu0 %v3665_v18, %s3883_s25 }
 0x685   :  { %v745_v21 = vpop.permute.xlu0 %744 }
 0x686   :  { %v4131_v22 = vmul.f32 %v745_v21, %v725_v12  ;;  %v601_v21 = vpop.f32.mrf.mxu2 }
 0x688   :  { %v754_v23 = vrot.slane %v4131_v22, 2 }
 0x68a   :  { %755 = vrot.lane.b32.xlu1 %v754_v23, %s3891_s3  ;;  %v4157_v23 = vadd.f32 %v601_v21, %v4136_v25 }
 0x6fc   :  { %v756_v24 = vpop.permute.xlu1 %755 }
 0x6fd   :  { %3478 = vmatmul.msk.f32.vlgmr.msrb.gmra.mxu1 %vm451_vm5, %v756_v24 }
 0x77a   :  { %v776_v26 = vpop.f32.mrf.mxu1 }
 0x77b   :  { %v780_v27 = vrot.slane %v776_v26, 4 }
 0x77d   :  { %v782_v28 = vadd.f32 %v780_v27, %v4114_v31 }
 0x77f   :  { %3666 = vtanh.f32 %v782_v28  ;;  %v3479_v30 = vmul.f32 -1.442695, %v782_v28 }
 0x781   :  { %3668 = vpow2.f32 %v3479_v30 }
 0x785   :  { %v3667_v29 = vpop.eup %3666 }
 0x786   :  { %808 = vrot.lane.b32.xlu2 %v3667_v29, %s3883_s25 }
 0x787   :  { %v3669_v32 = vpop.eup %3668 }
 0x788   :  { %v786_v33 = vadd.f32 1.0, %v3669_v32 }
 0x78a   :  { %3670 = vrcp.f32 %v786_v33  ;;  %v798_v40 = vand.u32 2147483648, %v786_v33  ;;  %vm792_vm3 = vweird.f32 %v786_v33  ;;  %v796_v41 = vand.u32 2147483647, %v786_v33 }
 0x78c   :  { %v799_v43 = vor.u32 1.1754944e-38, %v798_v40  ;;  %vm797_vm6 = vcmp.eq.f32.partialorder %v796_v41, 8.507059e+37 }
 0x790   :  { %v3671_v34 = vpop.eup %3670 }
 0x791   :  { %v788_v35 = vmul.f32 %v3671_v34, %v786_v33  ;;  %vm793_vm2 = vweird.f32 %v3671_v34 }
 0x792   :  { %vm794_vm4 = vmor %vm792_vm3, %vm793_vm2 }
 0x793   :  { %v789_v36 = vsub.f32 1.0, %v788_v35 }
 0x795   :  { %v790_v38 = vmul.f32 %v3671_v34, %v789_v36 }
 0x797   :  { %v791_v39 = vadd.f32 %v3671_v34, %v790_v38 }
 0x799   :  { %v795_v42 = vsel %vm794_vm4, %v3671_v34, %v791_v39 }
 0x79a   :  { %v800_v45 = vsel %vm797_vm6, %v799_v43, %v795_v42 }
 0x79b   :  { %v806_v48 = vmul.f32 %v804_v47, %v800_v45 }
 0x7e0   :  { %v809_v44 = vpop.permute.xlu2 %808 }
 0x7e1   :  { %v811_v46 = vmul.f32 %v809_v44, %v800_v45 }
 0x7e3   :  { %813 = vrot.lane.b32.xlu0 %v811_v46, %s3891_s3 }
 0x855   :  { %v814_v49 = vpop.permute.xlu0 %813 }
 0x856   :  { %v816_v50 = vadd.f32 %v814_v49, %v806_v48 }
 0x858   :  { %3672 = vtanh.f32 %v816_v50  ;;  %v879_v12 = vrot.slane %v816_v50, 6 }
 0x85e   :  { %v3673_v51 = vpop.eup %3672 }
 0x85f   :  { %819 = vrot.lane.b32.xlu1 %v3673_v51, %s3883_s25 }
 0x8d1   :  { %v820_v52 = vpop.permute.xlu1 %819 }
 0x8d2   :  { %v4142_v53 = vmul.f32 %v820_v52, %v800_v45 }
 0x8d4   :  { %v829_v54 = vrot.slane %v4142_v53, 4 }
 0x8d6   :  { %830 = vrot.lane.b32.xlu2 %v829_v54, %s3891_s3 }
 0x930   :  { %v831_v55 = vpop.permute.xlu2 %830 }
 0x931   :  { %3480 = vmatmul.msk.f32.vlgmr.msra.gmra.mxu3 %vm451_vm5, %v831_v55 }
 0x9b4   :  { %v851_v56 = vpop.f32.mrf.mxu3 }
 0x9b5   :  { %v855_v57 = vrot.slane %v851_v56, 2 }
 0x9b7   :  { %v857_v58 = vadd.f32 %v855_v57, %v4114_v31 }
 0x9b9   :  { %3674 = vtanh.f32 %v857_v58  ;;  %v3481_v60 = vmul.f32 -1.442695, %v857_v58 }
 0x9bb   :  { %3676 = vpow2.f32 %v3481_v60 }
 0x9bf   :  { %v3675_v59 = vpop.eup %3674 }
 0x9c0   :  { %883 = vrot.lane.b32.xlu0 %v3675_v59, %s3883_s25 }
 0x9c1   :  { %v3677_v62 = vpop.eup %3676 }
 0x9c2   :  { %v861_v63 = vadd.f32 1.0, %v3677_v62 }
 0x9c4   :  { %3678 = vrcp.f32 %v861_v63  ;;  %v873_v6 = vand.u32 2147483648, %v861_v63  ;;  %vm867_vm9 = vweird.f32 %v861_v63  ;;  %v871_v7 = vand.u32 2147483647, %v861_v63 }
 0x9c6   :  { %v874_v8 = vor.u32 1.1754944e-38, %v873_v6  ;;  %vm872_vm11 = vcmp.eq.f32.partialorder %v871_v7, 8.507059e+37 }
 0x9ca   :  { %v3679_v0 = vpop.eup %3678 }
 0x9cb   :  { %v863_v1 = vmul.f32 %v3679_v0, %v861_v63  ;;  %vm868_vm8 = vweird.f32 %v3679_v0 }
 0x9cc   :  { %vm869_vm10 = vmor %vm867_vm9, %vm868_vm8 }
 0x9cd   :  { %v864_v2 = vsub.f32 1.0, %v863_v1 }
 0x9cf   :  { %v865_v3 = vmul.f32 %v3679_v0, %v864_v2 }
 0x9d1   :  { %v866_v4 = vadd.f32 %v3679_v0, %v865_v3 }
 0x9d3   :  { %v870_v31 = vsel %vm869_vm10, %v3679_v0, %v866_v4 }
 0x9d4   :  { %v875_v10 = vsel %vm872_vm11, %v874_v8, %v870_v31 }
 0x9d5   :  { %v881_v13 = vmul.f32 %v879_v12, %v875_v10 }
 0xa32   :  { %v884_v9 = vpop.permute.xlu0 %883 }
 0xa33   :  { %v886_v11 = vmul.f32 %v884_v9, %v875_v10 }
 0xa35   :  { %888 = vrot.lane.b32.xlu1 %v886_v11, %s3891_s3 }
 0xaa7   :  { %v889_v14 = vpop.permute.xlu1 %888 }
 0xaa8   :  { %v891_v15 = vadd.f32 %v889_v14, %v881_v13 }
 0xaaa   :  { %3680 = vtanh.f32 %v891_v15  ;;  %v951_v44 = vrot.slane %v891_v15, 6 }
 0xab0   :  { %v3681_v16 = vpop.eup %3680 }
 0xab1   :  { %894 = vrot.lane.b32.xlu2 %v3681_v16, %s3883_s25 }
 0xb0b   :  { %v895_v17 = vpop.permute.xlu2 %894 }
 0xb0c   :  { %v4151_v18 = vmul.f32 %v895_v17, %v875_v10 }
 0xb0e   :  { %v904_v19 = vrot.slane %v4151_v18, 6 }
 0xb10   :  { %905 = vrot.lane.b32.xlu0 %v904_v19, %s3891_s3 }
 0xb82   :  { %v906_v20 = vpop.permute.xlu0 %905 }
 0xb83   :  { %3482 = vmatmul.msk.f32.vlgmr.msra.gmra.mxu0 %vm451_vm5, %v906_v20 }
 0xc00   :  { %v926_v24 = vpop.f32.mrf.mxu0 }
 0xc01   :  { %v929_v26 = vadd.f32 %v926_v24, %v4157_v23 }
 0xc03   :  { %3682 = vtanh.f32 %v929_v26  ;;  %v3483_v28 = vmul.f32 -1.442695, %v929_v26 }
 0xc05   :  { %3684 = vpow2.f32 %v3483_v28 }
 0xc09   :  { %v3683_v27 = vpop.eup %3682 }
 0xc0a   :  { %955 = vrot.lane.b32.xlu1 %v3683_v27, %s3883_s25 }
 0xc0b   :  { %v3685_v29 = vpop.eup %3684 }
 0xc0c   :  { %v933_v30 = vadd.f32 1.0, %v3685_v29 }
 0xc0e   :  { %3686 = vrcp.f32 %v933_v30  ;;  %v945_v25 = vand.u32 2147483648, %v933_v30  ;;  %vm939_vm14 = vweird.f32 %v933_v30  ;;  %v943_v38 = vand.u32 2147483647, %v933_v30 }
 0xc10   :  { %v946_v40 = vor.u32 1.1754944e-38, %v945_v25  ;;  %vm944_vm1 = vcmp.eq.f32.partialorder %v943_v38, 8.507059e+37 }
 0xc14   :  { %v3687_v32 = vpop.eup %3686 }
 0xc15   :  { %v935_v33 = vmul.f32 %v3687_v32, %v933_v30  ;;  %vm940_vm13 = vweird.f32 %v3687_v32 }
 0xc16   :  { %vm941_vm15 = vmor %vm939_vm14, %vm940_vm13 }
 0xc17   :  { %v936_v34 = vsub.f32 1.0, %v935_v33 }
 0xc19   :  { %v937_v35 = vmul.f32 %v3687_v32, %v936_v34 }
 0xc1b   :  { %v938_v36 = vadd.f32 %v3687_v32, %v937_v35 }
 0xc1d   :  { %v942_v39 = vsel %vm941_vm15, %v3687_v32, %v938_v36 }
 0xc1e   :  { %v947_v42 = vsel %vm944_vm1, %v946_v40, %v942_v39 }
 0xc1f   :  { %v953_v45 = vmul.f32 %v951_v44, %v947_v42 }
 0xc7c   :  { %v956_v41 = vpop.permute.xlu1 %955 }
 0xc7d   :  { %v958_v43 = vmul.f32 %v956_v41, %v947_v42 }
 0xc7f   :  { %960 = vrot.lane.b32.xlu2 %v958_v43, %s3891_s3 }
 0xcd9   :  { %v961_v46 = vpop.permute.xlu2 %960 }
 0xcda   :  { %v963_v47 = vadd.f32 %v961_v46, %v953_v45 }
 0xcdc   :  { %3688 = vtanh.f32 %v963_v47  ;;  %v1022_v9 = vrot.slane %v963_v47, 6 }
 0xce2   :  { %v3689_v48 = vpop.eup %3688 }
 0xce3   :  { %966 = vrot.lane.b32.xlu0 %v3689_v48, %s3883_s25 }
 0xd55   :  { %v967_v49 = vpop.permute.xlu0 %966 }
 0xd56   :  { %v969_v50 = vmul.f32 %v967_v49, %v947_v42 }
 0xd58   :  { %971 = vrot.lane.b32.xlu1 %v969_v50, %s3891_s3 }
 0xdca   :  { %v972_v51 = vpop.permute.xlu1 %971 }
 0xdcb   :  { %974 = vst.msk [vmem:[#allocation2 + $0x8] sm:$0x3] %vm680_vm12, %v972_v51  ;;  %3484 = vmatmul.msk.f32.vlgmr.msra.gmra.mxu1 %vm451_vm5, %v972_v51 }
 0xe48   :  { %v994_v52 = vpop.f32.mrf.mxu1 }
 0xe49   :  { %v998_v54 = vrot.slane %v994_v52, 6 }
 0xe4b   :  { %v1000_v55 = vadd.f32 %v998_v54, %v4157_v23 }
 0xe4d   :  { %3690 = vtanh.f32 %v1000_v55  ;;  %v3485_v57 = vmul.f32 -1.442695, %v1000_v55 }
 0xe4f   :  { %3692 = vpow2.f32 %v3485_v57 }
 0xe53   :  { %v3691_v56 = vpop.eup %3690 }
 0xe54   :  { %1026 = vrot.lane.b32.xlu2 %v3691_v56, %s3883_s25 }
 0xe55   :  { %v3693_v58 = vpop.eup %3692 }
 0xe56   :  { %v1004_v59 = vadd.f32 1.0, %v3693_v58 }
 0xe58   :  { %3694 = vrcp.f32 %v1004_v59  ;;  %v1016_v2 = vand.u32 2147483648, %v1004_v59  ;;  %vm1010_vm3 = vweird.f32 %v1004_v59  ;;  %v1014_v3 = vand.u32 2147483647, %v1004_v59 }
 0xe5a   :  { %v1017_v6 = vor.u32 1.1754944e-38, %v1016_v2  ;;  %vm1015_vm6 = vcmp.eq.f32.partialorder %v1014_v3, 8.507059e+37 }
 0xe5e   :  { %v3695_v60 = vpop.eup %3694 }
 0xe5f   :  { %v1006_v62 = vmul.f32 %v3695_v60, %v1004_v59  ;;  %vm1011_vm2 = vweird.f32 %v3695_v60 }
 0xe60   :  { %vm1012_vm4 = vmor %vm1010_vm3, %vm1011_vm2  ;;  %vm752_vm2 = vcmask 257026   ;;  %vm827_vm3 = vcmask 259076  }
 0xe61   :  { %v1007_v63 = vsub.f32 1.0, %v1006_v62 }
 0xe63   :  { %v1008_v0 = vmul.f32 %v3695_v60, %v1007_v63 }
 0xe65   :  { %v1009_v1 = vadd.f32 %v3695_v60, %v1008_v0 }
 0xe67   :  { %v1013_v4 = vsel %vm1012_vm4, %v3695_v60, %v1009_v1  ;;  %vm902_vm4 = vcmask 261126  }
 0xe68   :  { %v1018_v31 = vsel %vm1015_vm6, %v1017_v6, %v1013_v4 }
 0xe69   :  { %v1024_v10 = vmul.f32 %v1022_v9, %v1018_v31 }
 0xeae   :  { %v1027_v7 = vpop.permute.xlu2 %1026 }
 0xeaf   :  { %v1029_v8 = vmul.f32 %v1027_v7, %v1018_v31 }
 0xeb1   :  { %1031 = vrot.lane.b32.xlu0 %v1029_v8, %s3891_s3 }
 0xf23   :  { %v1032_v11 = vpop.permute.xlu0 %1031 }
 0xf24   :  { %v1034_v12 = vadd.f32 %v1032_v11, %v1024_v10 }
 0xf26   :  { %3696 = vtanh.f32 %v1034_v12  ;;  %v1096_v42 = vrot.slane %v1034_v12, 6 }
 0xf2c   :  { %v3697_v13 = vpop.eup %3696 }
 0xf2d   :  { %1037 = vrot.lane.b32.xlu1 %v3697_v13, %s3883_s25 }
 0xf9f   :  { %v1038_v14 = vpop.permute.xlu1 %1037 }
 0xfa0   :  { %v1040_v15 = vmul.f32 %v1038_v14, %v1018_v31 }
 0xfa2   :  { %v1046_v16 = vrot.slane %v1040_v15, 2 }
 0xfa4   :  { %1047 = vrot.lane.b32.xlu2 %v1046_v16, %s3891_s3 }
 0xffe   :  { %v1048_v17 = vpop.permute.xlu2 %1047 }
 0xfff   :  { %3486 = vmatmul.msk.f32.vlgmr.msra.gmra.mxu2 %vm451_vm5, %v1048_v17  ;;  %v1253_v17 = vld [vmem:[%s4198_s19 + $0x10] sm:$0xff] }
0x1082   :  { %v1068_v19 = vpop.f32.mrf.mxu2 }
0x1083   :  { %v1072_v20 = vrot.slane %v1068_v19, 4  ;;  %v1252_v19 = vld [vmem:[%s4198_s19 + $0x8] sm:$0xff] }
0x1085   :  { %v1074_v21 = vadd.f32 %v1072_v20, %v4157_v23 }
0x1087   :  { %3698 = vtanh.f32 %v1074_v21  ;;  %v3487_v26 = vmul.f32 -1.442695, %v1074_v21 }
0x1089   :  { %3700 = vpow2.f32 %v3487_v26 }
0x108d   :  { %v3699_v24 = vpop.eup %3698 }
0x108e   :  { %1100 = vrot.lane.b32.xlu0 %v3699_v24, %s3883_s25  ;;  %v4211_v24 = vld [vmem:[%s4207_s23] sm:$0xff] }
0x108f   :  { %v3701_v27 = vpop.eup %3700 }
0x1090   :  { %v1078_v28 = vadd.f32 1.0, %v3701_v27  ;;  %v4216_v27 = vld [vmem:[%s4207_s23 + $0x8] sm:$0xff] }
0x1092   :  { %3702 = vrcp.f32 %v1078_v28  ;;  %v1090_v35 = vand.u32 2147483648, %v1078_v28  ;;  %vm1084_vm9 = vweird.f32 %v1078_v28  ;;  %v1088_v36 = vand.u32 2147483647, %v1078_v28 }
0x1094   :  { %v1091_v38 = vor.u32 1.1754944e-38, %v1090_v35  ;;  %vm1089_vm11 = vcmp.eq.f32.partialorder %v1088_v36, 8.507059e+37 }
0x1098   :  { %v3703_v29 = vpop.eup %3702 }
0x1099   :  { %v1080_v30 = vmul.f32 %v3703_v29, %v1078_v28  ;;  %vm1085_vm8 = vweird.f32 %v3703_v29  ;;  %v1251_v28 = vld [vmem:[%s4198_s19] sm:$0xff] }
0x109a   :  { %vm1086_vm10 = vmor %vm1084_vm9, %vm1085_vm8 }
0x109b   :  { %v1081_v32 = vsub.f32 1.0, %v1080_v30  ;;  %v604_v30 = vlaneseq }
0x109d   :  { %v1082_v33 = vmul.f32 %v3703_v29, %v1081_v32  ;;  %v4227_v32 = vand.u32 127, %v604_v30 }
0x109f   :  { %v1083_v34 = vadd.f32 %v3703_v29, %v1082_v33  ;;  %vm1225_vm6 = vcmp.lt.s32.totalorder %v4227_v32, 16 }
0x10a1   :  { %v1087_v25 = vsel %vm1086_vm10, %v3703_v29, %v1083_v34  ;;  %v1258_v29 = vld [vmem:[%s4224_s28 + $0x18] sm:$0xff] }
0x10a2   :  { %v1092_v40 = vsel %vm1089_vm11, %v1091_v38, %v1087_v25  ;;  %1277 = vmatpush.msrb.mxu2 %v1258_v29  ;;  %v1257_v25 = vld [vmem:[%s4224_s28 + $0x10] sm:$0xff]  ;;  %v1256_v38 = vld [vmem:[%s4224_s28 + $0x8] sm:$0xff] }
0x10a3   :  { %v1098_v43 = vmul.f32 %v1096_v42, %v1092_v40  ;;  %v3499_v42 = vld [vmem:[%s4059_s2 + $0x28] sm:$0xff] }
0x10a4   :  { %1278 = vmatpush.msrb.mxu2 %v1257_v25 }
0x10a6   :  { %1279 = vmatpush.msrb.mxu2 %v1256_v38 }
0x1100   :  { %v1101_v39 = vpop.permute.xlu0 %1100 }
0x1101   :  { %v1103_v41 = vmul.f32 %v1101_v39, %v1092_v40  ;;  %v1255_v39 = vld [vmem:[%s4224_s28] sm:$0xff] }
0x1102   :  { %1280 = vmatpush.msrb.mxu2 %v1255_v39 }
0x1103   :  { %1105 = vrot.lane.b32.xlu1 %v1103_v41, %s3891_s3  ;;  %v3500_v41 = vld [vmem:[%s4059_s2 + $0x30] sm:$0xff] }
0x1175   :  { %v1106_v44 = vpop.permute.xlu1 %1105 }
0x1176   :  { %v1108_v45 = vadd.f32 %v1106_v44, %v1098_v43  ;;  %v3498_v43 = vld [vmem:[%s4059_s2 + $0x20] sm:$0xff] }
0x1178   :  { %3704 = vtanh.f32 %v1108_v45  ;;  %v1170_v8 = vrot.slane %v1108_v45, 6 }
0x117e   :  { %v3705_v46 = vpop.eup %3704 }
0x117f   :  { %1111 = vrot.lane.b32.xlu2 %v3705_v46, %s3883_s25  ;;  %v4264_v46 = vld [vmem:[%s4249_s4] ss:$0 sm:$0xff] }
0x11d9   :  { %v1112_v47 = vpop.permute.xlu2 %1111 }
0x11da   :  { %v1114_v48 = vmul.f32 %v1112_v47, %v1092_v40  ;;  %v3501_v40 = vld [vmem:[%s4059_s2 + $0x38] sm:$0xff] }
0x11db   :  { %1479 = vmatpush.msra.mxu2 %v3501_v40 }
0x11dc   :  { %v1120_v49 = vrot.slane %v1114_v48, 4 }
0x11dd   :  { %1480 = vmatpush.msra.mxu2 %v3500_v41 }
0x11de   :  { %1121 = vrot.lane.b32.xlu0 %v1120_v49, %s3891_s3 }
0x11df   :  { %1481 = vmatpush.msra.mxu2 %v3499_v42 }
0x11e1   :  { %1482 = vmatpush.msra.mxu2 %v3498_v43 }
0x1250   :  { %v1122_v50 = vpop.permute.xlu0 %1121 }
0x1251   :  { %3488 = vmatmul.msk.f32.vlgmr.msrb.gmra.mxu3 %vm451_vm5, %v1122_v50 }
0x12d4   :  { %v1142_v51 = vpop.f32.mrf.mxu3 }
0x12d5   :  { %v1146_v52 = vrot.slane %v1142_v51, 2 }
0x12d7   :  { %v1148_v54 = vadd.f32 %v1146_v52, %v4157_v23 }
0x12d9   :  { %3706 = vtanh.f32 %v1148_v54  ;;  %v3489_v56 = vmul.f32 -1.442695, %v1148_v54 }
0x12db   :  { %3708 = vpow2.f32 %v3489_v56 }
0x12df   :  { %v3707_v55 = vpop.eup %3706 }
0x12e0   :  { %1174 = vrot.lane.b32.xlu1 %v3707_v55, %s3883_s25 }
0x12e1   :  { %v3709_v57 = vpop.eup %3708 }
0x12e2   :  { %v1152_v58 = vadd.f32 1.0, %v3709_v57 }
0x12e4   :  { %3710 = vrcp.f32 %v1152_v58  ;;  %v1164_v23 = vand.u32 2147483648, %v1152_v58  ;;  %vm1158_vm14 = vweird.f32 %v1152_v58  ;;  %v1162_v1 = vand.u32 2147483647, %v1152_v58 }
0x12e6   :  { %v1165_v3 = vor.u32 1.1754944e-38, %v1164_v23  ;;  %vm1163_vm1 = vcmp.eq.f32.partialorder %v1162_v1, 8.507059e+37 }
0x12e8   :  { %1042 = vrot.lane.b32.xlu1 %v1040_v15, %s3891_s3 }
0x12ea   :  { %v3711_v59 = vpop.eup %3710 }
0x12eb   :  { %v1154_v60 = vmul.f32 %v3711_v59, %v1152_v58  ;;  %vm1159_vm13 = vweird.f32 %v3711_v59 }
0x12ec   :  { %vm1160_vm15 = vmor %vm1158_vm14, %vm1159_vm13 }
0x12ed   :  { %v1155_v62 = vsub.f32 1.0, %v1154_v60 }
0x12ef   :  { %v1156_v63 = vmul.f32 %v3711_v59, %v1155_v62 }
0x12f0   :  { %749 = vrot.lane.b32.xlu1 %v4131_v22, %s3891_s3 }
0x12f1   :  { %v1157_v0 = vadd.f32 %v3711_v59, %v1156_v63 }
0x12f3   :  { %v1161_v2 = vsel %vm1160_vm15, %v3711_v59, %v1157_v0 }
0x12f4   :  { %v1166_v22 = vsel %vm1163_vm1, %v1165_v3, %v1161_v2 }
0x12f5   :  { %v1172_v9 = vmul.f32 %v1170_v8, %v1166_v22 }
0x1352   :  { %v1175_v4 = vpop.permute.xlu1 %1174 }
0x1353   :  { %v1177_v6 = vmul.f32 %v1175_v4, %v1166_v22 }
0x1355   :  { %1179 = vrot.lane.b32.xlu2 %v1177_v6, %s3891_s3 }
0x135a   :  { %v1043_v7 = vpop.permute.xlu1 %1042 }
0x135b   :  { %1045 = vst.msk [vmem:[#allocation2 + $0x8] sm:$0xc] %vm752_vm2, %v1043_v7 }
0x135d   :  { %1116 = vrot.lane.b32.xlu2 %v1114_v48, %s3891_s3 }
0x1362   :  { %v750_v31 = vpop.permute.xlu1 %749 }
0x1363   :  { %753 = vst.msk [vmem:[#allocation2] sm:$0xc] %vm752_vm2, %v750_v31 }
0x1365   :  { %824 = vrot.lane.b32.xlu2 %v4142_v53, %s3891_s3  ;;  %v1254_v53 = vld [vmem:[%s4198_s19 + $0x18] sm:$0xff] }
0x1366   :  { %1306 = vmatpush.msra.mxu3 %v1254_v53 }
0x1368   :  { %1307 = vmatpush.msra.mxu3 %v1253_v17 }
0x136a   :  { %1308 = vmatpush.msra.mxu3 %v1252_v19 }
0x136c   :  { %1309 = vmatpush.msra.mxu3 %v1251_v28 }
0x136e   :  { %1553 = vmatpush.msrb.mxu3 %v3501_v40 }
0x1370   :  { %1554 = vmatpush.msrb.mxu3 %v3500_v41 }
0x1372   :  { %1555 = vmatpush.msrb.mxu3 %v3499_v42 }
0x1374   :  { %1556 = vmatpush.msrb.mxu3 %v3498_v43 }
0x13af   :  { %v1180_v10 = vpop.permute.xlu2 %1179 }
0x13b0   :  { %v1182_v11 = vadd.f32 %v1180_v10, %v1172_v9 }
0x13b2   :  { %3712 = vtanh.f32 %v1182_v11 }
0x13b7   :  { %v1117_v12 = vpop.permute.xlu2 %1116 }
0x13b8   :  { %v3713_v13 = vpop.eup %3712  ;;  %1119 = vst.msk [vmem:[#allocation2 + $0x8] sm:$0x30] %vm827_vm3, %v1117_v12 }
0x13b9   :  { %1185 = vrot.lane.b32.xlu0 %v3713_v13, %s3883_s25 }
0x13bf   :  { %v825_v14 = vpop.permute.xlu2 %824 }
0x13c0   :  { %828 = vst.msk [vmem:[#allocation2] sm:$0x30] %vm827_vm3, %v825_v14 }
0x142b   :  { %v1186_v15 = vpop.permute.xlu0 %1185 }
0x142c   :  { %v1188_v16 = vmul.f32 %v1186_v15, %v1166_v22 }
0x142e   :  { %1190 = vrot.lane.b32.xlu0 %v1188_v16, %s3891_s3 }
0x1436   :  { %899 = vrot.lane.b32.xlu0 %v4151_v18, %s3891_s3 }
0x14a0   :  { %v1191_v20 = vpop.permute.xlu0 %1190 }
0x14a1   :  { %1193 = vst.msk [vmem:[#allocation2 + $0x8] sm:$0xc0] %vm902_vm4, %v1191_v20 }
0x14a8   :  { %v900_v18 = vpop.permute.xlu0 %899  ;;  %v1195_v21 = vld [vmem:[#allocation2 + $0x8] sm:$0xff] }
0x14a9   :  { %903 = vst.msk [vmem:[#allocation2] sm:$0xc0] %vm902_vm4, %v900_v18  ;;  %1216 = vmatpush.msrb.mxu0 %v1195_v21 }
0x14b0   :  { %v1194_v26 = vld [vmem:[#allocation2] sm:$0xff] }
0x14b1   :  { %1217 = vmatpush.msrb.mxu0 %v1194_v26 }
0x14b2   :  { %3490 = vmatmul.msk.f32.vlgmr.msrb.gmra.mxu0 %vm545_vm7, %v4211_v24 }
0x14b3   :  { %1340 = vmatpush.msra.mxu0 %v3501_v40 }
0x14b5   :  { %1341 = vmatpush.msra.mxu0 %v3500_v41 }
0x14b7   :  { %1342 = vmatpush.msra.mxu0 %v3499_v42 }
0x14b9   :  { %1343 = vmatpush.msra.mxu0 %v3498_v43 }
0x14ba   :  { %3491 = vmatmul.msk.f32.gmra.mxu0 %vm545_vm7, %v4216_v27 }
0x14bb   :  { %1627 = vmatpush.msrb.mxu0 %v3501_v40 }
0x14bd   :  { %1628 = vmatpush.msrb.mxu0 %v3500_v41 }
0x14bf   :  { %1629 = vmatpush.msrb.mxu0 %v3499_v42 }
0x14c1   :  { %1630 = vmatpush.msrb.mxu0 %v3498_v43 }
0x14c2   :  { %1344 = vmatmul.f32.vlgmr.msra.gmra.mxu0 %v3899_v5 }
0x152f   :  { %v1219_v33 = vpop.f32.mrf.mxu0 }
0x1530   :  { %v4232_v34 = vsel %vm1225_vm6, %v1194_v26, %v1219_v33 }
0x1531   :  { %3496 = vmatmul.msk.f32.vlgmr.msra.gmra.mxu3 %vm451_vm5, %v4232_v34 }
0x1532   :  { %1843 = vmatpush.msra.mxu3 %v3501_v40 }
0x1534   :  { %1844 = vmatpush.msra.mxu3 %v3500_v41 }
0x1536   :  { %1845 = vmatpush.msra.mxu3 %v3499_v42 }
0x1537   :  { %v1222_v35 = vpop.f32.mrf.mxu0 }
0x1538   :  { %v4238_v36 = vsel %vm1225_vm6, %v1195_v21, %v1222_v35  ;;  %1846 = vmatpush.msra.mxu3 %v3498_v43 }
0x1539   :  { %1242 = vmatpush.msrb.mxu1 %v4238_v36  ;;  %3497 = vmatmul.msk.f32.gmra.mxu3 %vm451_vm5, %v4238_v36 }
0x153b   :  { %1243 = vmatpush.msrb.mxu1 %v4232_v34 }
0x153c   :  { %3492 = vmatmul.msk.f32.vlgmr.msrb.gmra.mxu1 %vm545_vm7, %v4211_v24 }
0x153d   :  { %1405 = vmatpush.msra.mxu1 %v3501_v40 }
0x153f   :  { %1406 = vmatpush.msra.mxu1 %v3500_v41  ;;  %v1345_v50 = vpop.f32.mrf.mxu0 }
0x1541   :  { %1407 = vmatpush.msra.mxu1 %v3499_v42 }
0x1543   :  { %1408 = vmatpush.msra.mxu1 %v3498_v43 }
0x1544   :  { %3493 = vmatmul.msk.f32.gmra.mxu1 %vm545_vm7, %v4216_v27 }
0x1545   :  { %1695 = vmatpush.msrb.mxu1 %v3501_v40 }
0x1547   :  { %1696 = vmatpush.msrb.mxu1 %v3500_v41 }
0x1549   :  { %1697 = vmatpush.msrb.mxu1 %v3499_v42 }
0x154b   :  { %1698 = vmatpush.msrb.mxu1 %v3498_v43 }
0x15b4   :  { %v1311_v47 = vpop.f32.mrf.mxu3 }
0x15b9   :  { %v1245_v44 = vpop.f32.mrf.mxu1 }
0x15ba   :  { %3494 = vmatmul.msk.f32.vlgmr.msrb.gmra.mxu2 %vm451_vm5, %v1245_v44 }
0x15bb   :  { %1769 = vmatpush.msrb.mxu2 %v3501_v40 }
0x15bd   :  { %1770 = vmatpush.msrb.mxu2 %v3500_v41 }
0x15bf   :  { %1771 = vmatpush.msrb.mxu2 %v3499_v42 }
0x15c1   :  { %v1248_v45 = vpop.f32.mrf.mxu1  ;;  %1772 = vmatpush.msrb.mxu2 %v3498_v43 }
0x15c2   :  { %3495 = vmatmul.msk.f32.gmra.mxu2 %vm451_vm5, %v1248_v45 }
0x163d   :  { %v1282_v48 = vpop.f32.mrf.mxu2 }
0x163e   :  { %v1312_v49 = vadd.f32 %v1311_v47, %v1282_v48 }
0x1640   :  { %v4267_v51 = vadd.f32 %v4264_v46, %v1312_v49 }
0x1642   :  { %v1348_v52 = vadd.f32 %v1345_v50, %v4267_v51 }
0x1644   :  { %3714 = vtanh.f32 %v1348_v52  ;;  %v3502_v55 = vmul.f32 -1.442695, %v1348_v52 }
0x1645   :  { %v4285_v49 = vpop.f32.mrf.mxu2 }
0x1646   :  { %3716 = vpow2.f32 %v3502_v55 }
0x164a   :  { %v3715_v54 = vpop.eup %3714 }
0x164b   :  { %1371 = vrot.lane.b32.xlu1 %v3715_v54, %s3883_s25 }
0x164c   :  { %v3717_v56 = vpop.eup %3716 }
0x164d   :  { %v1352_v57 = vadd.f32 1.0, %v3717_v56 }
0x164f   :  { %3718 = vrcp.f32 %v1352_v57  ;;  %v1364_v0 = vand.u32 2147483648, %v1352_v57  ;;  %vm1358_vm9 = vweird.f32 %v1352_v57  ;;  %v1362_v23 = vand.u32 2147483647, %v1352_v57 }
0x1651   :  { %v1365_v2 = vor.u32 1.1754944e-38, %v1364_v0  ;;  %vm1363_vm11 = vcmp.eq.f32.partialorder %v1362_v23, 8.507059e+37 }
0x1655   :  { %v3719_v58 = vpop.eup %3718 }
0x1656   :  { %v1354_v59 = vmul.f32 %v3719_v58, %v1352_v57  ;;  %vm1359_vm8 = vweird.f32 %v3719_v58 }
0x1657   :  { %vm1360_vm10 = vmor %vm1358_vm9, %vm1359_vm8 }
0x1658   :  { %v1355_v60 = vsub.f32 1.0, %v1354_v59 }
0x165a   :  { %v1356_v62 = vmul.f32 %v3719_v58, %v1355_v60 }
0x165c   :  { %v1357_v63 = vadd.f32 %v3719_v58, %v1356_v62 }
0x165e   :  { %v1361_v1 = vsel %vm1360_vm10, %v3719_v58, %v1357_v63 }
0x165f   :  { %v1366_v4 = vsel %vm1363_vm11, %v1365_v2, %v1361_v1 }
0x1660   :  { %v1369_v6 = vmul.f32 0.0, %v1366_v4 }
0x16bd   :  { %v1372_v3 = vpop.permute.xlu1 %1371 }
0x16be   :  { %v1374_v22 = vmul.f32 %v1372_v3, %v1366_v4 }
0x16c0   :  { %1376 = vrot.lane.b32.xlu2 %v1374_v22, %s3891_s3 }
0x171a   :  { %v1377_v7 = vpop.permute.xlu2 %1376 }
0x171b   :  { %v1379_v31 = vadd.f32 %v1377_v7, %v1369_v6 }
0x171d   :  { %3720 = vtanh.f32 %v1379_v31  ;;  %v1438_v39 = vrot.slane %v1379_v31, 6 }
0x1723   :  { %v3721_v8 = vpop.eup %3720 }
0x1724   :  { %1382 = vrot.lane.b32.xlu0 %v3721_v8, %s3883_s25 }
0x1796   :  { %v1383_v9 = vpop.permute.xlu0 %1382 }
0x1797   :  { %v1385_v10 = vmul.f32 %v1383_v9, %v1366_v4 }
0x1799   :  { %1387 = vrot.lane.b32.xlu1 %v1385_v10, %s3891_s3 }
0x180b   :  { %v1388_v11 = vpop.permute.xlu1 %1387 }
0x180c   :  { %1390 = vst.msk [vmem:[#allocation2] sm:$0x3] %vm680_vm12, %v1388_v11  ;;  %3503 = vmatmul.msk.f32.vlgmr.msra.gmra.mxu1 %vm451_vm5, %v1388_v11 }
0x1889   :  { %v1410_v12 = vpop.f32.mrf.mxu1 }
0x188a   :  { %v1414_v13 = vrot.slane %v1410_v12, 6 }
0x188c   :  { %v1416_v14 = vadd.f32 %v1414_v13, %v4267_v51 }
0x188e   :  { %3722 = vtanh.f32 %v1416_v14  ;;  %v3504_v16 = vmul.f32 -1.442695, %v1416_v14 }
0x1890   :  { %3724 = vpow2.f32 %v3504_v16 }
0x1894   :  { %v3723_v15 = vpop.eup %3722 }
0x1895   :  { %1442 = vrot.lane.b32.xlu2 %v3723_v15, %s3883_s25  ;;  %v1314_v15 = vpop.f32.mrf.mxu3 }
0x1896   :  { %v3725_v53 = vpop.eup %3724 }
0x1897   :  { %v1420_v17 = vadd.f32 1.0, %v3725_v53 }
0x1899   :  { %3726 = vrcp.f32 %v1420_v17  ;;  %v1432_v28 = vand.u32 2147483648, %v1420_v17  ;;  %vm1426_vm14 = vweird.f32 %v1420_v17  ;;  %v1430_v29 = vand.u32 2147483647, %v1420_v17 }
0x189b   :  { %v1433_v33 = vor.u32 1.1754944e-38, %v1432_v28  ;;  %vm1431_vm1 = vcmp.eq.f32.partialorder %v1430_v29, 8.507059e+37 }
0x189f   :  { %v3727_v19 = vpop.eup %3726 }
0x18a0   :  { %v1422_v20 = vmul.f32 %v3727_v19, %v1420_v17  ;;  %vm1427_vm13 = vweird.f32 %v3727_v19 }
0x18a1   :  { %vm1428_vm15 = vmor %vm1426_vm14, %vm1427_vm13 }
0x18a2   :  { %v1423_v18 = vsub.f32 1.0, %v1422_v20 }
0x18a4   :  { %v1424_v21 = vmul.f32 %v3727_v19, %v1423_v18 }
0x18a6   :  { %v1425_v26 = vadd.f32 %v3727_v19, %v1424_v21 }
0x18a8   :  { %v1429_v30 = vsel %vm1428_vm15, %v3727_v19, %v1425_v26 }
0x18a9   :  { %v1434_v25 = vsel %vm1431_vm1, %v1433_v33, %v1429_v30 }
0x18aa   :  { %v1440_v40 = vmul.f32 %v1438_v39, %v1434_v25 }
0x18ef   :  { %v1443_v35 = vpop.permute.xlu2 %1442 }
0x18f0   :  { %v1445_v38 = vmul.f32 %v1443_v35, %v1434_v25 }
0x18f2   :  { %1447 = vrot.lane.b32.xlu0 %v1445_v38, %s3891_s3 }
0x1964   :  { %v1448_v41 = vpop.permute.xlu0 %1447 }
0x1965   :  { %v1450_v42 = vadd.f32 %v1448_v41, %v1440_v40 }
0x1967   :  { %3728 = vtanh.f32 %v1450_v42  ;;  %v1512_v7 = vrot.slane %v1450_v42, 6 }
0x196d   :  { %v3729_v43 = vpop.eup %3728 }
0x196e   :  { %1453 = vrot.lane.b32.xlu1 %v3729_v43, %s3883_s25 }
0x19e0   :  { %v1454_v44 = vpop.permute.xlu1 %1453 }
0x19e1   :  { %v4280_v45 = vmul.f32 %v1454_v44, %v1434_v25 }
0x19e3   :  { %v1462_v47 = vrot.slane %v4280_v45, 2 }
0x19e5   :  { %1463 = vrot.lane.b32.xlu2 %v1462_v47, %s3891_s3 }
0x1a3f   :  { %v1464_v48 = vpop.permute.xlu2 %1463 }
0x1a40   :  { %3505 = vmatmul.msk.f32.vlgmr.msra.gmra.mxu2 %vm451_vm5, %v1464_v48 }
0x1ac3   :  { %v1484_v50 = vpop.f32.mrf.mxu2 }
0x1ac4   :  { %v1488_v52 = vrot.slane %v1484_v50, 4 }
0x1ac6   :  { %v1490_v54 = vadd.f32 %v1488_v52, %v4267_v51 }
0x1ac8   :  { %3730 = vtanh.f32 %v1490_v54  ;;  %v3506_v56 = vmul.f32 -1.442695, %v1490_v54 }
0x1aca   :  { %3732 = vpow2.f32 %v3506_v56  ;;  %v1315_v56 = vadd.f32 %v1314_v15, %v4285_v49 }
0x1ace   :  { %v3731_v55 = vpop.eup %3730 }
0x1acf   :  { %1516 = vrot.lane.b32.xlu0 %v3731_v55, %s3883_s25 }
0x1ad0   :  { %v3733_v57 = vpop.eup %3732 }
0x1ad1   :  { %v1494_v58 = vadd.f32 1.0, %v3733_v57  ;;  %v4307_v57 = vadd.f32 %v4264_v46, %v1315_v56 }
0x1ad3   :  { %3734 = vrcp.f32 %v1494_v58  ;;  %v1506_v23 = vand.u32 2147483648, %v1494_v58  ;;  %vm1500_vm9 = vweird.f32 %v1494_v58  ;;  %v1504_v1 = vand.u32 2147483647, %v1494_v58 }
0x1ad5   :  { %v1507_v3 = vor.u32 1.1754944e-38, %v1506_v23  ;;  %vm1505_vm11 = vcmp.eq.f32.partialorder %v1504_v1, 8.507059e+37 }
0x1ad9   :  { %v3735_v59 = vpop.eup %3734 }
0x1ada   :  { %v1496_v60 = vmul.f32 %v3735_v59, %v1494_v58  ;;  %vm1501_vm8 = vweird.f32 %v3735_v59 }
0x1adb   :  { %vm1502_vm10 = vmor %vm1500_vm9, %vm1501_vm8 }
0x1adc   :  { %v1497_v62 = vsub.f32 1.0, %v1496_v60 }
0x1ade   :  { %v1498_v63 = vmul.f32 %v3735_v59, %v1497_v62 }
0x1ae0   :  { %v1499_v0 = vadd.f32 %v3735_v59, %v1498_v63 }
0x1ae2   :  { %v1503_v2 = vsel %vm1502_vm10, %v3735_v59, %v1499_v0 }
0x1ae3   :  { %v1508_v22 = vsel %vm1505_vm11, %v1507_v3, %v1503_v2 }
0x1ae4   :  { %v1514_v31 = vmul.f32 %v1512_v7, %v1508_v22 }
0x1b41   :  { %v1517_v4 = vpop.permute.xlu0 %1516 }
0x1b42   :  { %v1519_v6 = vmul.f32 %v1517_v4, %v1508_v22 }
0x1b44   :  { %1521 = vrot.lane.b32.xlu1 %v1519_v6, %s3891_s3 }
0x1bb6   :  { %v1522_v8 = vpop.permute.xlu1 %1521 }
0x1bb7   :  { %v1524_v9 = vadd.f32 %v1522_v8, %v1514_v31 }
0x1bb9   :  { %3736 = vtanh.f32 %v1524_v9  ;;  %v1586_v42 = vrot.slane %v1524_v9, 6 }
0x1bbf   :  { %v3737_v10 = vpop.eup %3736 }
0x1bc0   :  { %1527 = vrot.lane.b32.xlu2 %v3737_v10, %s3883_s25 }
0x1c1a   :  { %v1528_v11 = vpop.permute.xlu2 %1527 }
0x1c1b   :  { %v4291_v12 = vmul.f32 %v1528_v11, %v1508_v22 }
0x1c1d   :  { %v1536_v13 = vrot.slane %v4291_v12, 4 }
0x1c1f   :  { %1537 = vrot.lane.b32.xlu0 %v1536_v13, %s3891_s3 }
0x1c91   :  { %v1538_v14 = vpop.permute.xlu0 %1537 }
0x1c92   :  { %3507 = vmatmul.msk.f32.vlgmr.msrb.gmra.mxu3 %vm451_vm5, %v1538_v14 }
0x1d15   :  { %v1558_v16 = vpop.f32.mrf.mxu3 }
0x1d16   :  { %v1562_v53 = vrot.slane %v1558_v16, 2 }
0x1d18   :  { %v1564_v17 = vadd.f32 %v1562_v53, %v4267_v51 }
0x1d1a   :  { %3738 = vtanh.f32 %v1564_v17  ;;  %v3508_v20 = vmul.f32 -1.442695, %v1564_v17 }
0x1d1c   :  { %3740 = vpow2.f32 %v3508_v20 }
0x1d20   :  { %v3739_v19 = vpop.eup %3738 }
0x1d21   :  { %1590 = vrot.lane.b32.xlu1 %v3739_v19, %s3883_s25 }
0x1d22   :  { %v3741_v18 = vpop.eup %3740 }
0x1d23   :  { %v1568_v21 = vadd.f32 1.0, %v3741_v18 }
0x1d25   :  { %3742 = vrcp.f32 %v1568_v21  ;;  %v1580_v35 = vand.u32 2147483648, %v1568_v21  ;;  %vm1574_vm14 = vweird.f32 %v1568_v21  ;;  %v1578_v25 = vand.u32 2147483647, %v1568_v21 }
0x1d27   :  { %v1581_v38 = vor.u32 1.1754944e-38, %v1580_v35  ;;  %vm1579_vm1 = vcmp.eq.f32.partialorder %v1578_v25, 8.507059e+37 }
0x1d2b   :  { %v3743_v26 = vpop.eup %3742 }
0x1d2c   :  { %v1570_v28 = vmul.f32 %v3743_v26, %v1568_v21  ;;  %vm1575_vm13 = vweird.f32 %v3743_v26 }
0x1d2d   :  { %vm1576_vm15 = vmor %vm1574_vm14, %vm1575_vm13 }
0x1d2e   :  { %v1571_v29 = vsub.f32 1.0, %v1570_v28 }
0x1d30   :  { %v1572_v30 = vmul.f32 %v3743_v26, %v1571_v29 }
0x1d32   :  { %v1573_v33 = vadd.f32 %v3743_v26, %v1572_v30 }
0x1d34   :  { %v1577_v51 = vsel %vm1576_vm15, %v3743_v26, %v1573_v33 }
0x1d35   :  { %v1582_v40 = vsel %vm1579_vm1, %v1581_v38, %v1577_v51 }
0x1d36   :  { %v1588_v43 = vmul.f32 %v1586_v42, %v1582_v40 }
0x1d93   :  { %v1591_v39 = vpop.permute.xlu1 %1590 }
0x1d94   :  { %v1593_v41 = vmul.f32 %v1591_v39, %v1582_v40 }
0x1d96   :  { %1595 = vrot.lane.b32.xlu2 %v1593_v41, %s3891_s3 }
0x1df0   :  { %v1596_v44 = vpop.permute.xlu2 %1595 }
0x1df1   :  { %v1598_v47 = vadd.f32 %v1596_v44, %v1588_v43 }
0x1df3   :  { %3744 = vtanh.f32 %v1598_v47  ;;  %v1657_v9 = vrot.slane %v1598_v47, 6 }
0x1df9   :  { %v3745_v48 = vpop.eup %3744 }
0x1dfa   :  { %1601 = vrot.lane.b32.xlu0 %v3745_v48, %s3883_s25 }
0x1e6c   :  { %v1602_v50 = vpop.permute.xlu0 %1601 }
0x1e6d   :  { %v4300_v52 = vmul.f32 %v1602_v50, %v1582_v40 }
0x1e6f   :  { %v1610_v54 = vrot.slane %v4300_v52, 6 }
0x1e71   :  { %1611 = vrot.lane.b32.xlu1 %v1610_v54, %s3891_s3 }
0x1ee3   :  { %v1612_v55 = vpop.permute.xlu1 %1611 }
0x1ee4   :  { %3509 = vmatmul.msk.f32.vlgmr.msrb.gmra.mxu0 %vm451_vm5, %v1612_v55 }
0x1f61   :  { %v1632_v58 = vpop.f32.mrf.mxu0 }
0x1f62   :  { %v1635_v59 = vadd.f32 %v1632_v58, %v4307_v57 }
0x1f64   :  { %3746 = vtanh.f32 %v1635_v59  ;;  %v3510_v62 = vmul.f32 -1.442695, %v1635_v59 }
0x1f66   :  { %3748 = vpow2.f32 %v3510_v62 }
0x1f6a   :  { %v3747_v60 = vpop.eup %3746 }
0x1f6b   :  { %1661 = vrot.lane.b32.xlu2 %v3747_v60, %s3883_s25 }
0x1f6c   :  { %v3749_v63 = vpop.eup %3748 }
0x1f6d   :  { %v1639_v0 = vadd.f32 1.0, %v3749_v63 }
0x1f6f   :  { %3750 = vrcp.f32 %v1639_v0  ;;  %v1651_v46 = vand.u32 2147483648, %v1639_v0  ;;  %vm1645_vm9 = vweird.f32 %v1639_v0  ;;  %v1649_v4 = vand.u32 2147483647, %v1639_v0 }
0x1f71   :  { %v1652_v6 = vor.u32 1.1754944e-38, %v1651_v46  ;;  %vm1650_vm11 = vcmp.eq.f32.partialorder %v1649_v4, 8.507059e+37 }
0x1f75   :  { %v3751_v23 = vpop.eup %3750 }
0x1f76   :  { %v1641_v1 = vmul.f32 %v3751_v23, %v1639_v0  ;;  %vm1646_vm8 = vweird.f32 %v3751_v23 }
0x1f77   :  { %vm1647_vm10 = vmor %vm1645_vm9, %vm1646_vm8 }
0x1f78   :  { %v1642_v2 = vsub.f32 1.0, %v1641_v1 }
0x1f7a   :  { %v1643_v3 = vmul.f32 %v3751_v23, %v1642_v2 }
0x1f7c   :  { %v1644_v49 = vadd.f32 %v3751_v23, %v1643_v3 }
0x1f7e   :  { %v1648_v22 = vsel %vm1647_vm10, %v3751_v23, %v1644_v49 }
0x1f7f   :  { %v1653_v31 = vsel %vm1650_vm11, %v1652_v6, %v1648_v22 }
0x1f80   :  { %v1659_v10 = vmul.f32 %v1657_v9, %v1653_v31 }
0x1fc5   :  { %v1662_v7 = vpop.permute.xlu2 %1661 }
0x1fc6   :  { %v1664_v8 = vmul.f32 %v1662_v7, %v1653_v31 }
0x1fc8   :  { %1666 = vrot.lane.b32.xlu0 %v1664_v8, %s3891_s3 }
0x203a   :  { %v1667_v11 = vpop.permute.xlu0 %1666 }
0x203b   :  { %v1669_v13 = vadd.f32 %v1667_v11, %v1659_v10 }
0x203d   :  { %3752 = vtanh.f32 %v1669_v13  ;;  %v1728_v44 = vrot.slane %v1669_v13, 6 }
0x2043   :  { %v3753_v14 = vpop.eup %3752 }
0x2044   :  { %1672 = vrot.lane.b32.xlu1 %v3753_v14, %s3883_s25 }
0x20b6   :  { %v1673_v15 = vpop.permute.xlu1 %1672 }
0x20b7   :  { %v1675_v16 = vmul.f32 %v1673_v15, %v1653_v31 }
0x20b9   :  { %1677 = vrot.lane.b32.xlu2 %v1675_v16, %s3891_s3 }
0x2113   :  { %v1678_v53 = vpop.permute.xlu2 %1677 }
0x2114   :  { %1680 = vst.msk [vmem:[#allocation2 + $0x8] sm:$0x3] %vm680_vm12, %v1678_v53  ;;  %3511 = vmatmul.msk.f32.vlgmr.msrb.gmra.mxu1 %vm451_vm5, %v1678_v53 }
0x2191   :  { %v1700_v17 = vpop.f32.mrf.mxu1 }
0x2192   :  { %v1704_v19 = vrot.slane %v1700_v17, 6 }
0x2194   :  { %v1706_v20 = vadd.f32 %v1704_v19, %v4307_v57 }
0x2196   :  { %3754 = vtanh.f32 %v1706_v20  ;;  %v3512_v21 = vmul.f32 -1.442695, %v1706_v20 }
0x2198   :  { %3756 = vpow2.f32 %v3512_v21 }
0x219c   :  { %v3755_v18 = vpop.eup %3754 }
0x219d   :  { %1732 = vrot.lane.b32.xlu0 %v3755_v18, %s3883_s25 }
0x219e   :  { %v3757_v26 = vpop.eup %3756 }
0x219f   :  { %v1710_v28 = vadd.f32 1.0, %v3757_v26 }
0x21a1   :  { %3758 = vrcp.f32 %v1710_v28  ;;  %v1722_v51 = vand.u32 2147483648, %v1710_v28  ;;  %vm1716_vm14 = vweird.f32 %v1710_v28  ;;  %v1720_v38 = vand.u32 2147483647, %v1710_v28 }
0x21a3   :  { %v1723_v40 = vor.u32 1.1754944e-38, %v1722_v51  ;;  %vm1721_vm1 = vcmp.eq.f32.partialorder %v1720_v38, 8.507059e+37 }
0x21a7   :  { %v3759_v29 = vpop.eup %3758 }
0x21a8   :  { %v1712_v30 = vmul.f32 %v3759_v29, %v1710_v28  ;;  %vm1717_vm13 = vweird.f32 %v3759_v29 }
0x21a9   :  { %vm1718_vm15 = vmor %vm1716_vm14, %vm1717_vm13 }
0x21aa   :  { %v1713_v33 = vsub.f32 1.0, %v1712_v30 }
0x21ac   :  { %v1714_v35 = vmul.f32 %v3759_v29, %v1713_v33 }
0x21ae   :  { %v1715_v25 = vadd.f32 %v3759_v29, %v1714_v35 }
0x21b0   :  { %v1719_v39 = vsel %vm1718_vm15, %v3759_v29, %v1715_v25 }
0x21b1   :  { %v1724_v42 = vsel %vm1721_vm1, %v1723_v40, %v1719_v39 }
0x21b2   :  { %v1730_v47 = vmul.f32 %v1728_v44, %v1724_v42 }
0x220f   :  { %v1733_v41 = vpop.permute.xlu0 %1732 }
0x2210   :  { %v1735_v43 = vmul.f32 %v1733_v41, %v1724_v42 }
0x2212   :  { %1737 = vrot.lane.b32.xlu1 %v1735_v43, %s3891_s3 }
0x2284   :  { %v1738_v48 = vpop.permute.xlu1 %1737 }
0x2285   :  { %v1740_v50 = vadd.f32 %v1738_v48, %v1730_v47 }
0x2287   :  { %3760 = vtanh.f32 %v1740_v50  ;;  %v1802_v13 = vrot.slane %v1740_v50, 6 }
0x228d   :  { %v3761_v54 = vpop.eup %3760 }
0x228e   :  { %1743 = vrot.lane.b32.xlu2 %v3761_v54, %s3883_s25 }
0x22e8   :  { %v1744_v55 = vpop.permute.xlu2 %1743 }
0x22e9   :  { %v1746_v56 = vmul.f32 %v1744_v55, %v1724_v42 }
0x22eb   :  { %v1752_v58 = vrot.slane %v1746_v56, 2 }
0x22ed   :  { %1753 = vrot.lane.b32.xlu0 %v1752_v58, %s3891_s3 }
0x235f   :  { %v1754_v59 = vpop.permute.xlu0 %1753 }
0x2360   :  { %3513 = vmatmul.msk.f32.vlgmr.msrb.gmra.mxu2 %vm451_vm5, %v1754_v59 }
0x23e3   :  { %v1774_v60 = vpop.f32.mrf.mxu2 }
0x23e4   :  { %v1778_v62 = vrot.slane %v1774_v60, 4 }
0x23e6   :  { %v1780_v63 = vadd.f32 %v1778_v62, %v4307_v57 }
0x23e8   :  { %3762 = vtanh.f32 %v1780_v63  ;;  %v3514_v23 = vmul.f32 -1.442695, %v1780_v63 }
0x23ea   :  { %3764 = vpow2.f32 %v3514_v23  ;;  %v4350_v23 = vld [vmem:[%s3443_s8 + $0x10] sm:$0xff] }
0x23ee   :  { %v3763_v0 = vpop.eup %3762 }
0x23ef   :  { %1806 = vrot.lane.b32.xlu1 %v3763_v0, %s3883_s25 }
0x23f0   :  { %v3765_v1 = vpop.eup %3764 }
0x23f1   :  { %v1784_v2 = vadd.f32 1.0, %v3765_v1  ;;  %v4353_v1 = vld [vmem:[%s3443_s8 + $0x8] sm:$0xff] }
0x23f3   :  { %3766 = vrcp.f32 %v1784_v2  ;;  %v1796_v6 = vand.u32 2147483648, %v1784_v2  ;;  %vm1790_vm9 = vweird.f32 %v1784_v2  ;;  %v1794_v7 = vand.u32 2147483647, %v1784_v2 }
0x23f5   :  { %v1797_v8 = vor.u32 1.1754944e-38, %v1796_v6  ;;  %vm1795_vm11 = vcmp.eq.f32.partialorder %v1794_v7, 8.507059e+37  ;;  %v3643_v7 = vld [vmem:[%s4366_s12] ss:$0 sm:$0xff] }
0x23f9   :  { %v3767_v3 = vpop.eup %3766 }
0x23fa   :  { %v1786_v49 = vmul.f32 %v3767_v3, %v1784_v2  ;;  %vm1791_vm8 = vweird.f32 %v3767_v3 }
0x23fb   :  { %vm1792_vm10 = vmor %vm1790_vm9, %vm1791_vm8 }
0x23fc   :  { %v1787_v46 = vsub.f32 1.0, %v1786_v49 }
0x23fe   :  { %v1788_v4 = vmul.f32 %v3767_v3, %v1787_v46  ;;  %v4368_v46 = vld [vmem:[%s3443_s8] sm:$0xff] }
0x2400   :  { %v1789_v22 = vadd.f32 %v3767_v3, %v1788_v4 }
0x2402   :  { %v1793_v31 = vsel %vm1792_vm10, %v3767_v3, %v1789_v22 }
0x2403   :  { %v1798_v10 = vsel %vm1795_vm11, %v1797_v8, %v1793_v31  ;;  %v3528_v31 = vld [vmem:[%s4198_s19 + $0x38] sm:$0xff]  ;;  %v3527_v8 = vld [vmem:[%s4198_s19 + $0x30] sm:$0xff] }
0x2404   :  { %v1804_v14 = vmul.f32 %v1802_v13, %v1798_v10  ;;  %v3525_v13 = vld [vmem:[%s4198_s19 + $0x20] sm:$0xff] }
0x2461   :  { %v1807_v9 = vpop.permute.xlu1 %1806 }
0x2462   :  { %v1809_v11 = vmul.f32 %v1807_v9, %v1798_v10 }
0x2464   :  { %1811 = vrot.lane.b32.xlu2 %v1809_v11, %s3891_s3  ;;  %v3526_v11 = vld [vmem:[%s4198_s19 + $0x28] sm:$0xff]  ;;  %s3425_s19 = sld [smem:[%s4672_s0 + %s3911_s16]]  }
0x24be   :  { %v1812_v15 = vpop.permute.xlu2 %1811 }
0x24bf   :  { %v1814_v16 = vadd.f32 %v1812_v15, %v1804_v14 }
0x24c1   :  { %3768 = vtanh.f32 %v1814_v16  ;;  %v1876_v54 = vrot.slane %v1814_v16, 6 }
0x24c7   :  { %v3769_v53 = vpop.eup %3768 }
0x24c8   :  { %1817 = vrot.lane.b32.xlu0 %v3769_v53, %s3883_s25 }
0x253a   :  { %v1818_v17 = vpop.permute.xlu0 %1817 }
0x253b   :  { %v1820_v19 = vmul.f32 %v1818_v17, %v1798_v10 }
0x253d   :  { %v1826_v20 = vrot.slane %v1820_v19, 4 }
0x253f   :  { %1827 = vrot.lane.b32.xlu1 %v1826_v20, %s3891_s3 }
0x25b1   :  { %v1828_v18 = vpop.permute.xlu1 %1827 }
0x25b2   :  { %3515 = vmatmul.msk.f32.vlgmr.msra.gmra.mxu3 %vm451_vm5, %v1828_v18 }
0x2635   :  { %v1848_v21 = vpop.f32.mrf.mxu3 }
0x2636   :  { %v1852_v26 = vrot.slane %v1848_v21, 2 }
0x2638   :  { %v1854_v28 = vadd.f32 %v1852_v26, %v4307_v57 }
0x263a   :  { %3770 = vtanh.f32 %v1854_v28  ;;  %v3516_v30 = vmul.f32 -1.442695, %v1854_v28 }
0x263c   :  { %3772 = vpow2.f32 %v3516_v30 }
0x2640   :  { %v3771_v29 = vpop.eup %3770 }
0x2641   :  { %1880 = vrot.lane.b32.xlu2 %v3771_v29, %s3883_s25 }
0x2642   :  { %v3773_v33 = vpop.eup %3772 }
0x2643   :  { %v1858_v35 = vadd.f32 1.0, %v3773_v33 }
0x2645   :  { %3774 = vrcp.f32 %v1858_v35  ;;  %v1870_v57 = vand.u32 2147483648, %v1858_v35  ;;  %vm1864_vm14 = vweird.f32 %v1858_v35  ;;  %v1868_v41 = vand.u32 2147483647, %v1858_v35 }
0x2647   :  { %v1871_v43 = vor.u32 1.1754944e-38, %v1870_v57  ;;  %vm1869_vm1 = vcmp.eq.f32.partialorder %v1868_v41, 8.507059e+37 }
0x2649   :  { %1748 = vrot.lane.b32.xlu2 %v1746_v56, %s3891_s3 }
0x264b   :  { %v3775_v25 = vpop.eup %3774 }
0x264c   :  { %v1860_v51 = vmul.f32 %v3775_v25, %v1858_v35  ;;  %vm1865_vm13 = vweird.f32 %v3775_v25 }
0x264d   :  { %vm1866_vm15 = vmor %vm1864_vm14, %vm1865_vm13 }
0x264e   :  { %v1861_v38 = vsub.f32 1.0, %v1860_v51 }
0x2650   :  { %v1862_v39 = vmul.f32 %v3775_v25, %v1861_v38 }
0x2651   :  { %1458 = vrot.lane.b32.xlu2 %v4280_v45, %s3891_s3 }
0x2652   :  { %v1863_v40 = vadd.f32 %v3775_v25, %v1862_v39 }
0x2654   :  { %v1867_v42 = vsel %vm1866_vm15, %v3775_v25, %v1863_v40 }
0x2655   :  { %v1872_v45 = vsel %vm1869_vm1, %v1871_v43, %v1867_v42 }
0x2656   :  { %v1878_v55 = vmul.f32 %v1876_v54, %v1872_v45 }
0x269b   :  { %v1881_v44 = vpop.permute.xlu2 %1880 }
0x269c   :  { %v1883_v47 = vmul.f32 %v1881_v44, %v1872_v45 }
0x269e   :  { %1885 = vrot.lane.b32.xlu0 %v1883_v47, %s3891_s3 }
0x26a3   :  { %v1749_v48 = vpop.permute.xlu2 %1748 }
0x26a4   :  { %1751 = vst.msk [vmem:[#allocation2 + $0x8] sm:$0xc] %vm752_vm2, %v1749_v48 }
0x26a6   :  { %1822 = vrot.lane.b32.xlu0 %v1820_v19, %s3891_s3 }
0x26ab   :  { %v1459_v50 = vpop.permute.xlu2 %1458 }
0x26ac   :  { %1461 = vst.msk [vmem:[#allocation2] sm:$0xc] %vm752_vm2, %v1459_v50 }
0x26ae   :  { %1532 = vrot.lane.b32.xlu0 %v4291_v12, %s3891_s3  ;;  %v4348_v12 = vld [vmem:[%s3443_s8 + $0x18] sm:$0xff]  ;;  %s3916_s8 = smov 25  }
0x26af   :  { %1948 = vmatpush.msra.mxu1 %v4348_v12  ;;  %s3445_s11 = sld [smem:[%s4672_s0 + %s3916_s8]]  }
0x26b1   :  { %1949 = vmatpush.msra.mxu1 %v4350_v23 }
0x26b3   :  { %1950 = vmatpush.msra.mxu1 %v4353_v1 }
0x26b5   :  { %1951 = vmatpush.msra.mxu1 %v4368_v46 }
0x2710   :  { %v1886_v56 = vpop.permute.xlu0 %1885 }
0x2711   :  { %v1888_v58 = vadd.f32 %v1886_v56, %v1878_v55 }
0x2713   :  { %3776 = vtanh.f32 %v1888_v58 }
0x2718   :  { %v1823_v59 = vpop.permute.xlu0 %1822 }
0x2719   :  { %v3777_v60 = vpop.eup %3776  ;;  %1825 = vst.msk [vmem:[#allocation2 + $0x8] sm:$0x30] %vm827_vm3, %v1823_v59 }
0x271a   :  { %1891 = vrot.lane.b32.xlu1 %v3777_v60, %s3883_s25 }
0x2720   :  { %v1533_v62 = vpop.permute.xlu0 %1532 }
0x2721   :  { %1535 = vst.msk [vmem:[#allocation2] sm:$0x30] %vm827_vm3, %v1533_v62  ;;  %v4395_v62 = vld [vmem:[%s4207_s23] sm:$0xff] }
0x278c   :  { %v1892_v63 = vpop.permute.xlu1 %1891 }
0x278d   :  { %v1894_v0 = vmul.f32 %v1892_v63, %v1872_v45  ;;  %v3531_v63 = vld [vmem:[%s4224_s28 + $0x30] sm:$0xff] }
0x278f   :  { %1896 = vrot.lane.b32.xlu1 %v1894_v0, %s3891_s3  ;;  %v3530_v0 = vld [vmem:[%s4224_s28 + $0x28] sm:$0xff] }
0x2797   :  { %1606 = vrot.lane.b32.xlu1 %v4300_v52, %s3891_s3 }
0x2801   :  { %v1897_v2 = vpop.permute.xlu1 %1896 }
0x2802   :  { %1899 = vst.msk [vmem:[#allocation2 + $0x8] sm:$0xc0] %vm902_vm4, %v1897_v2  ;;  %v3529_v2 = vld [vmem:[%s4224_s28 + $0x20] sm:$0xff] }
0x2809   :  { %v1607_v52 = vpop.permute.xlu1 %1606  ;;  %v1901_v3 = vld [vmem:[#allocation2 + $0x8] sm:$0xff] }
0x280a   :  { %1609 = vst.msk [vmem:[#allocation2] sm:$0xc0] %vm902_vm4, %v1607_v52  ;;  %1916 = vmatpush.msra.mxu0 %v1901_v3  ;;  %v3541_v52 = vld [vmem:[%s4059_s2 + $0x58] sm:$0xff] }
0x280b   :  { %2120 = vmatpush.msrb.mxu1 %v3541_v52 }
0x2811   :  { %v1900_v49 = vld [vmem:[#allocation2] sm:$0xff] }
0x2812   :  { %1917 = vmatpush.msra.mxu0 %v1900_v49 }
0x2813   :  { %3517 = vmatmul.msk.f32.vlgmr.msra.gmra.mxu0 %vm545_vm7, %v4211_v24 }
0x2814   :  { %2085 = vmatpush.msrb.mxu0 %v3528_v31 }
0x2816   :  { %2086 = vmatpush.msrb.mxu0 %v3527_v8 }
0x2818   :  { %2087 = vmatpush.msrb.mxu0 %v3526_v11 }
0x281a   :  { %2088 = vmatpush.msrb.mxu0 %v3525_v13 }
0x281b   :  { %3518 = vmatmul.msk.f32.gmra.mxu0 %vm545_vm7, %v4216_v27 }
0x281c   :  { %2549 = vmatpush.msra.mxu0 %v3541_v52 }
0x2890   :  { %v1919_v4 = vpop.f32.mrf.mxu0 }
0x2891   :  { %v1925_v24 = vsel %vm1225_vm6, %v1900_v49, %v1919_v4  ;;  %v3538_v49 = vld [vmem:[%s4059_s2 + $0x40] sm:$0xff] }
0x2892   :  { %3519 = vmatmul.msk.f32.vlgmr.msra.gmra.mxu1 %vm451_vm5, %v1925_v24 }
0x2898   :  { %v1922_v22 = vpop.f32.mrf.mxu0 }
0x2899   :  { %v1926_v6 = vsel %vm1225_vm6, %v1901_v3, %v1922_v22  ;;  %v3540_v3 = vld [vmem:[%s4059_s2 + $0x50] sm:$0xff]  ;;  %v4413_v22 = vld [vmem:[%s4249_s4 + $0x1] ss:$0 sm:$0xff] }
0x289a   :  { %3520 = vmatmul.msk.f32.gmra.mxu1 %vm451_vm5, %v1926_v6  ;;  %2550 = vmatpush.msra.mxu0 %v3540_v3 }
0x289b   :  { %2121 = vmatpush.msrb.mxu1 %v3540_v3 }
0x290f   :  { %v1953_v9 = vpop.f32.mrf.mxu1 }
0x2910   :  { %v1954_v10 = vadd.f32 %v3643_v7, %v1953_v9 }
0x2912   :  { %v3521_v14 = vmul.f32 -1.442695, %v1954_v10 }
0x2914   :  { %3778 = vpow2.f32 %v3521_v14 }
0x2917   :  { %v1956_v15 = vpop.f32.mrf.mxu1 }
0x2918   :  { %v1957_v16 = vadd.f32 %v3643_v7, %v1956_v15 }
0x291a   :  { %v3779_v53 = vpop.eup %3778  ;;  %v3522_v17 = vmul.f32 -1.442695, %v1957_v16 }
0x291b   :  { %v1965_v19 = vadd.f32 1.0, %v3779_v53 }
0x291c   :  { %3780 = vpow2.f32 %v3522_v17 }
0x291d   :  { %3782 = vrcp.f32 %v1965_v19  ;;  %v1978_v29 = vand.u32 2147483648, %v1965_v19  ;;  %v1976_v33 = vand.u32 2147483647, %v1965_v19  ;;  %vm1972_vm9 = vweird.f32 %v1965_v19 }
0x291f   :  { %v1979_v51 = vor.u32 1.1754944e-38, %v1978_v29  ;;  %vm1977_vm11 = vcmp.eq.f32.partialorder %v1976_v33, 8.507059e+37 }
0x2922   :  { %v3781_v20 = vpop.eup %3780 }
0x2923   :  { %v3783_v18 = vpop.eup %3782  ;;  %v1966_v21 = vadd.f32 1.0, %v3781_v20 }
0x2924   :  { %v1968_v26 = vmul.f32 %v3783_v18, %v1965_v19  ;;  %vm1973_vm8 = vweird.f32 %v3783_v18 }
0x2925   :  { %3784 = vrcp.f32 %v1966_v21  ;;  %vm1974_vm10 = vmor %vm1972_vm9, %vm1973_vm8  ;;  %v1991_v42 = vand.u32 2147483647, %v1966_v21  ;;  %v1993_v43 = vand.u32 2147483648, %v1966_v21  ;;  %vm1987_vm14 = vweird.f32 %v1966_v21 }
0x2926   :  { %v1969_v28 = vsub.f32 1.0, %v1968_v26 }
0x2927   :  { %v1994_v54 = vor.u32 1.1754944e-38, %v1993_v43  ;;  %vm1992_vm1 = vcmp.eq.f32.partialorder %v1991_v42, 8.507059e+37 }
0x2928   :  { %v1970_v30 = vmul.f32 %v3783_v18, %v1969_v28 }
0x292a   :  { %v1971_v35 = vadd.f32 %v3783_v18, %v1970_v30 }
0x292b   :  { %v3785_v25 = vpop.eup %3784 }
0x292c   :  { %v1983_v38 = vmul.f32 %v3785_v25, %v1966_v21  ;;  %v1975_v39 = vsel %vm1974_vm10, %v3783_v18, %v1971_v35  ;;  %vm1988_vm13 = vweird.f32 %v3785_v25 }
0x292d   :  { %v1980_v40 = vsel %vm1977_vm11, %v1979_v51, %v1975_v39  ;;  %vm1989_vm15 = vmor %vm1987_vm14, %vm1988_vm13 }
0x292e   :  { %v1984_v57 = vsub.f32 1.0, %v1983_v38  ;;  %v1999_v41 = vsub.f32 1.0, %v1980_v40  ;;  %v1997_v45 = vmul.f32 %v1980_v40, %v1925_v24 }
0x2930   :  { %v1985_v44 = vmul.f32 %v3785_v25, %v1984_v57  ;;  %v2001_v47 = vmul.f32 %v1999_v41, %v4232_v34 }
0x2932   :  { %v4383_v48 = vadd.f32 %v2001_v47, %v1997_v45  ;;  %v1986_v50 = vadd.f32 %v3785_v25, %v1985_v44 }
0x2934   :  { %3535 = vmatmul.msk.f32.vlgmr.msrb.gmra.mxu0 %vm451_vm5, %v4383_v48  ;;  %v1990_v55 = vsel %vm1989_vm15, %v3785_v25, %v1986_v50 }
0x2935   :  { %v1995_v56 = vsel %vm1992_vm1, %v1994_v54, %v1990_v55 }
0x2936   :  { %v2000_v58 = vsub.f32 1.0, %v1995_v56  ;;  %v1998_v34 = vmul.f32 %v1995_v56, %v1926_v6 }
0x2938   :  { %v2002_v59 = vmul.f32 %v2000_v58, %v4238_v36  ;;  %v3532_v36 = vld [vmem:[%s4224_s28 + $0x38] sm:$0xff] }
0x2939   :  { %2056 = vmatpush.msrb.mxu3 %v3532_v36 }
0x293a   :  { %v4388_v60 = vadd.f32 %v2002_v59, %v1998_v34 }
0x293b   :  { %2057 = vmatpush.msrb.mxu3 %v3531_v63 }
0x293c   :  { %2019 = vmatpush.msra.mxu2 %v4388_v60  ;;  %3536 = vmatmul.msk.f32.gmra.mxu0 %vm451_vm5, %v4388_v60 }
0x293d   :  { %2058 = vmatpush.msrb.mxu3 %v3530_v0 }
0x293e   :  { %2020 = vmatpush.msra.mxu2 %v4383_v48 }
0x293f   :  { %3523 = vmatmul.msk.f32.vlgmr.msra.gmra.mxu2 %vm545_vm7, %v4395_v62  ;;  %2059 = vmatpush.msrb.mxu3 %v3529_v2 }
0x2940   :  { %2185 = vmatpush.msrb.mxu2 %v3541_v52 }
0x2941   :  { %2259 = vmatpush.msra.mxu3 %v3541_v52 }
0x2942   :  { %2186 = vmatpush.msrb.mxu2 %v3540_v3 }
0x2943   :  { %2260 = vmatpush.msra.mxu3 %v3540_v3 }
0x2947   :  { %3524 = vmatmul.msk.f32.gmra.mxu2 %vm545_vm7, %v4216_v27  ;;  %v3539_v27 = vld [vmem:[%s4059_s2 + $0x48] sm:$0xff]  ;;  %s3910_s2 = smov 4  }
0x2948   :  { %2122 = vmatpush.msrb.mxu1 %v3539_v27  ;;  %2187 = vmatpush.msrb.mxu2 %v3539_v27  ;;  %s3424_s15 = sld [smem:[%s4672_s0 + %s3910_s2]]   ;;  %s3924_s2 = smov 36  }
0x2949   :  { %2261 = vmatpush.msra.mxu3 %v3539_v27  ;;  %2551 = vmatpush.msra.mxu0 %v3539_v27 }
0x294a   :  { %2123 = vmatpush.msrb.mxu1 %v3538_v49  ;;  %2188 = vmatpush.msrb.mxu2 %v3538_v49 }
0x294b   :  { %2124 = vmatmul.f32.vlgmr.msrb.gmra.mxu1 %v3899_v5  ;;  %2262 = vmatpush.msra.mxu3 %v3538_v49 }
0x294c   :  { %2333 = vmatpush.msra.mxu1 %v3541_v52  ;;  %2407 = vmatpush.msra.mxu2 %v3541_v52 }
0x294d   :  { %2552 = vmatpush.msra.mxu0 %v3538_v49 }
0x294e   :  { %2334 = vmatpush.msra.mxu1 %v3540_v3  ;;  %2408 = vmatpush.msra.mxu2 %v3540_v3 }
0x2950   :  { %2335 = vmatpush.msra.mxu1 %v3539_v27  ;;  %2409 = vmatpush.msra.mxu2 %v3539_v27 }
0x2952   :  { %2336 = vmatpush.msra.mxu1 %v3538_v49  ;;  %2410 = vmatpush.msra.mxu2 %v3538_v49 }
0x2954   :  { %2623 = vmatpush.msrb.mxu1 %v3541_v52 }
0x2956   :  { %2624 = vmatpush.msrb.mxu1 %v3540_v3 }
0x2958   :  { %2625 = vmatpush.msrb.mxu1 %v3539_v27 }
0x295a   :  { %2626 = vmatpush.msrb.mxu1 %v3538_v49 }
0x29b1   :  { %v2090_v6 = vpop.f32.mrf.mxu0 }
0x29c2   :  { %v2022_v4 = vpop.f32.mrf.mxu2 }
0x29c3   :  { %3533 = vmatmul.msk.f32.vlgmr.msrb.gmra.mxu3 %vm451_vm5, %v2022_v4 }
0x29c4   :  { %2475 = vmatpush.msrb.mxu3 %v3541_v52 }
0x29c6   :  { %2476 = vmatpush.msrb.mxu3 %v3540_v3 }
0x29c8   :  { %2477 = vmatpush.msrb.mxu3 %v3539_v27  ;;  %v2125_v8 = vpop.f32.mrf.mxu1 }
0x29ca   :  { %v2025_v24 = vpop.f32.mrf.mxu2  ;;  %2478 = vmatpush.msrb.mxu3 %v3538_v49 }
0x29cb   :  { %3534 = vmatmul.msk.f32.gmra.mxu3 %vm451_vm5, %v2025_v24 }
0x2a46   :  { %v2061_v7 = vpop.f32.mrf.mxu3 }
0x2a47   :  { %v2091_v31 = vadd.f32 %v2090_v6, %v2061_v7 }
0x2a49   :  { %v4416_v9 = vadd.f32 %v4413_v22, %v2091_v31 }
0x2a4b   :  { %v2128_v10 = vadd.f32 %v2125_v8, %v4416_v9 }
0x2a4d   :  { %3786 = vtanh.f32 %v2128_v10  ;;  %v3542_v13 = vmul.f32 -1.442695, %v2128_v10 }
0x2a4f   :  { %3788 = vpow2.f32 %v3542_v13 }
0x2a53   :  { %v3787_v11 = vpop.eup %3786 }
0x2a54   :  { %2151 = vrot.lane.b32.xlu2 %v3787_v11, %s3883_s25  ;;  %v4438_v11 = vpop.f32.mrf.mxu3 }
0x2a55   :  { %v3789_v14 = vpop.eup %3788 }
0x2a56   :  { %v2132_v15 = vadd.f32 1.0, %v3789_v14 }
0x2a58   :  { %3790 = vrcp.f32 %v2132_v15  ;;  %v2144_v18 = vand.u32 2147483648, %v2132_v15  ;;  %vm2138_vm9 = vweird.f32 %v2132_v15  ;;  %v2142_v21 = vand.u32 2147483647, %v2132_v15 }
0x2a5a   :  { %v2145_v28 = vor.u32 1.1754944e-38, %v2144_v18  ;;  %vm2143_vm11 = vcmp.eq.f32.partialorder %v2142_v21, 8.507059e+37 }
0x2a5e   :  { %v3791_v16 = vpop.eup %3790 }
0x2a5f   :  { %v2134_v53 = vmul.f32 %v3791_v16, %v2132_v15  ;;  %vm2139_vm8 = vweird.f32 %v3791_v16 }
0x2a60   :  { %vm2140_vm10 = vmor %vm2138_vm9, %vm2139_vm8 }
0x2a61   :  { %v2135_v17 = vsub.f32 1.0, %v2134_v53 }
0x2a63   :  { %v2136_v19 = vmul.f32 %v3791_v16, %v2135_v17 }
0x2a65   :  { %v2137_v20 = vadd.f32 %v3791_v16, %v2136_v19 }
0x2a67   :  { %v2141_v26 = vsel %vm2140_vm10, %v3791_v16, %v2137_v20 }
0x2a68   :  { %v2146_v30 = vsel %vm2143_vm11, %v2145_v28, %v2141_v26 }
0x2a69   :  { %v2149_v35 = vmul.f32 0.0, %v2146_v30 }
0x2aae   :  { %v2152_v29 = vpop.permute.xlu2 %2151 }
0x2aaf   :  { %v2154_v33 = vmul.f32 %v2152_v29, %v2146_v30 }
0x2ab1   :  { %2156 = vrot.lane.b32.xlu0 %v2154_v33, %s3891_s3 }
0x2b23   :  { %v2157_v25 = vpop.permute.xlu0 %2156 }
0x2b24   :  { %v2159_v51 = vadd.f32 %v2157_v25, %v2149_v35 }
0x2b26   :  { %3792 = vtanh.f32 %v2159_v51  ;;  %v2218_v27 = vrot.slane %v2159_v51, 6 }
0x2b2c   :  { %v3793_v38 = vpop.eup %3792 }
0x2b2d   :  { %2162 = vrot.lane.b32.xlu1 %v3793_v38, %s3883_s25 }
0x2b9f   :  { %v2163_v39 = vpop.permute.xlu1 %2162 }
0x2ba0   :  { %v2165_v40 = vmul.f32 %v2163_v39, %v2146_v30 }
0x2ba2   :  { %2167 = vrot.lane.b32.xlu2 %v2165_v40, %s3891_s3 }
0x2bfc   :  { %v2168_v57 = vpop.permute.xlu2 %2167 }
0x2bfd   :  { %2170 = vst.msk [vmem:[#allocation2] sm:$0x3] %vm680_vm12, %v2168_v57  ;;  %3543 = vmatmul.msk.f32.vlgmr.msrb.gmra.mxu2 %vm451_vm5, %v2168_v57 }
0x2c80   :  { %v2190_v41 = vpop.f32.mrf.mxu2 }
0x2c81   :  { %v2194_v42 = vrot.slane %v2190_v41, 6 }
0x2c83   :  { %v2196_v43 = vadd.f32 %v2194_v42, %v4416_v9 }
0x2c85   :  { %3794 = vtanh.f32 %v2196_v43  ;;  %v3544_v45 = vmul.f32 -1.442695, %v2196_v43 }
0x2c87   :  { %3796 = vpow2.f32 %v3544_v45 }
0x2c8b   :  { %v3795_v44 = vpop.eup %3794 }
0x2c8c   :  { %2222 = vrot.lane.b32.xlu0 %v3795_v44, %s3883_s25 }
0x2c8d   :  { %v3797_v47 = vpop.eup %3796 }
0x2c8e   :  { %v2200_v50 = vadd.f32 1.0, %v3797_v47 }
0x2c90   :  { %3798 = vrcp.f32 %v2200_v50  ;;  %v2212_v59 = vand.u32 2147483648, %v2200_v50  ;;  %vm2206_vm14 = vweird.f32 %v2200_v50  ;;  %v2210_v36 = vand.u32 2147483647, %v2200_v50 }
0x2c92   :  { %v2213_v0 = vor.u32 1.1754944e-38, %v2212_v59  ;;  %vm2211_vm1 = vcmp.eq.f32.partialorder %v2210_v36, 8.507059e+37 }
0x2c96   :  { %v3799_v54 = vpop.eup %3798 }
0x2c97   :  { %v2202_v55 = vmul.f32 %v3799_v54, %v2200_v50  ;;  %vm2207_vm13 = vweird.f32 %v3799_v54 }
0x2c98   :  { %vm2208_vm15 = vmor %vm2206_vm14, %vm2207_vm13 }
0x2c99   :  { %v2203_v56 = vsub.f32 1.0, %v2202_v55 }
0x2c9b   :  { %v2204_v58 = vmul.f32 %v3799_v54, %v2203_v56 }
0x2c9d   :  { %v2205_v34 = vadd.f32 %v3799_v54, %v2204_v58 }
0x2c9f   :  { %v2209_v63 = vsel %vm2208_vm15, %v3799_v54, %v2205_v34 }
0x2ca0   :  { %v2214_v52 = vsel %vm2211_vm1, %v2213_v0, %v2209_v63 }
0x2ca1   :  { %v2220_v49 = vmul.f32 %v2218_v27, %v2214_v52 }
0x2cfe   :  { %v2223_v2 = vpop.permute.xlu0 %2222 }
0x2cff   :  { %v2225_v3 = vmul.f32 %v2223_v2, %v2214_v52 }
0x2d01   :  { %2227 = vrot.lane.b32.xlu1 %v2225_v3, %s3891_s3 }
0x2d73   :  { %v2228_v4 = vpop.permute.xlu1 %2227 }
0x2d74   :  { %v2230_v24 = vadd.f32 %v2228_v4, %v2220_v49 }
0x2d76   :  { %3800 = vtanh.f32 %v2230_v24  ;;  %v2292_v35 = vrot.slane %v2230_v24, 6 }
0x2d7c   :  { %v3801_v6 = vpop.eup %3800 }
0x2d7d   :  { %2233 = vrot.lane.b32.xlu2 %v3801_v6, %s3883_s25 }
0x2dd7   :  { %v2234_v7 = vpop.permute.xlu2 %2233 }
0x2dd8   :  { %v4429_v31 = vmul.f32 %v2234_v7, %v2214_v52 }
0x2dda   :  { %v2242_v8 = vrot.slane %v4429_v31, 2 }
0x2ddc   :  { %2243 = vrot.lane.b32.xlu0 %v2242_v8, %s3891_s3 }
0x2e4e   :  { %v2244_v10 = vpop.permute.xlu0 %2243 }
0x2e4f   :  { %3545 = vmatmul.msk.f32.vlgmr.msra.gmra.mxu3 %vm451_vm5, %v2244_v10 }
0x2e50   :  { %2725 = vmatpush.msra.mxu3 %v4348_v12 }
0x2e52   :  { %2726 = vmatpush.msra.mxu3 %v4350_v23 }
0x2e54   :  { %2727 = vmatpush.msra.mxu3 %v4353_v1 }
0x2e56   :  { %2728 = vmatpush.msra.mxu3 %v4368_v46 }
0x2ed2   :  { %v2264_v13 = vpop.f32.mrf.mxu3 }
0x2ed3   :  { %v2268_v14 = vrot.slane %v2264_v13, 4 }
0x2ed5   :  { %v2270_v15 = vadd.f32 %v2268_v14, %v4416_v9 }
0x2ed7   :  { %3802 = vtanh.f32 %v2270_v15  ;;  %v3546_v53 = vmul.f32 -1.442695, %v2270_v15  ;;  %v2093_v15 = vpop.f32.mrf.mxu0 }
0x2ed9   :  { %3804 = vpow2.f32 %v3546_v53 }
0x2edd   :  { %v3803_v16 = vpop.eup %3802 }
0x2ede   :  { %2296 = vrot.lane.b32.xlu1 %v3803_v16, %s3883_s25  ;;  %v2094_v16 = vadd.f32 %v2093_v15, %v4438_v11 }
0x2edf   :  { %v3805_v17 = vpop.eup %3804 }
0x2ee0   :  { %v2274_v12 = vadd.f32 1.0, %v3805_v17  ;;  %v4460_v53 = vadd.f32 %v4413_v22, %v2094_v16 }
0x2ee2   :  { %3806 = vrcp.f32 %v2274_v12  ;;  %v2286_v18 = vand.u32 2147483648, %v2274_v12  ;;  %vm2280_vm9 = vweird.f32 %v2274_v12  ;;  %v2284_v21 = vand.u32 2147483647, %v2274_v12 }
0x2ee4   :  { %v2287_v28 = vor.u32 1.1754944e-38, %v2286_v18  ;;  %vm2285_vm11 = vcmp.eq.f32.partialorder %v2284_v21, 8.507059e+37 }
0x2ee8   :  { %v3807_v23 = vpop.eup %3806 }
0x2ee9   :  { %v2276_v19 = vmul.f32 %v3807_v23, %v2274_v12  ;;  %vm2281_vm8 = vweird.f32 %v3807_v23 }
0x2eea   :  { %vm2282_vm10 = vmor %vm2280_vm9, %vm2281_vm8 }
0x2eeb   :  { %v2277_v1 = vsub.f32 1.0, %v2276_v19 }
0x2eed   :  { %v2278_v20 = vmul.f32 %v3807_v23, %v2277_v1 }
0x2eef   :  { %v2279_v46 = vadd.f32 %v3807_v23, %v2278_v20 }
0x2ef1   :  { %v2283_v26 = vsel %vm2282_vm10, %v3807_v23, %v2279_v46 }
0x2ef2   :  { %v2288_v30 = vsel %vm2285_vm11, %v2287_v28, %v2283_v26 }
0x2ef3   :  { %v2294_v25 = vmul.f32 %v2292_v35, %v2288_v30 }
0x2f50   :  { %v2297_v29 = vpop.permute.xlu1 %2296 }
0x2f51   :  { %v2299_v33 = vmul.f32 %v2297_v29, %v2288_v30 }
0x2f53   :  { %2301 = vrot.lane.b32.xlu2 %v2299_v33, %s3891_s3 }
0x2fad   :  { %v2302_v51 = vpop.permute.xlu2 %2301 }
0x2fae   :  { %v2304_v38 = vadd.f32 %v2302_v51, %v2294_v25 }
0x2fb0   :  { %3808 = vtanh.f32 %v2304_v38  ;;  %v2366_v49 = vrot.slane %v2304_v38, 6 }
0x2fb6   :  { %v3809_v39 = vpop.eup %3808 }
0x2fb7   :  { %2307 = vrot.lane.b32.xlu0 %v3809_v39, %s3883_s25 }
0x3029   :  { %v2308_v40 = vpop.permute.xlu0 %2307 }
0x302a   :  { %v4444_v57 = vmul.f32 %v2308_v40, %v2288_v30 }
0x302c   :  { %v2316_v41 = vrot.slane %v4444_v57, 4 }
0x302e   :  { %2317 = vrot.lane.b32.xlu1 %v2316_v41, %s3891_s3 }
0x30a0   :  { %v2318_v42 = vpop.permute.xlu1 %2317 }
0x30a1   :  { %3547 = vmatmul.msk.f32.vlgmr.msra.gmra.mxu1 %vm451_vm5, %v2318_v42 }
0x311e   :  { %v2338_v43 = vpop.f32.mrf.mxu1 }
0x311f   :  { %v2342_v44 = vrot.slane %v2338_v43, 2 }
0x3121   :  { %v2344_v45 = vadd.f32 %v2342_v44, %v4416_v9 }
0x3123   :  { %3810 = vtanh.f32 %v2344_v45  ;;  %v3548_v50 = vmul.f32 -1.442695, %v2344_v45 }
0x3125   :  { %3812 = vpow2.f32 %v3548_v50 }
0x3129   :  { %v3811_v47 = vpop.eup %3810 }
0x312a   :  { %2370 = vrot.lane.b32.xlu2 %v3811_v47, %s3883_s25 }
0x312b   :  { %v3813_v54 = vpop.eup %3812 }
0x312c   :  { %v2348_v55 = vadd.f32 1.0, %v3813_v54 }
0x312e   :  { %3814 = vrcp.f32 %v2348_v55  ;;  %v2360_v63 = vand.u32 2147483648, %v2348_v55  ;;  %vm2354_vm14 = vweird.f32 %v2348_v55  ;;  %v2358_v0 = vand.u32 2147483647, %v2348_v55 }
0x3130   :  { %v2361_v2 = vor.u32 1.1754944e-38, %v2360_v63  ;;  %vm2359_vm1 = vcmp.eq.f32.partialorder %v2358_v0, 8.507059e+37 }
0x3134   :  { %v3815_v56 = vpop.eup %3814 }
0x3135   :  { %v2350_v58 = vmul.f32 %v3815_v56, %v2348_v55  ;;  %vm2355_vm13 = vweird.f32 %v3815_v56 }
0x3136   :  { %vm2356_vm15 = vmor %vm2354_vm14, %vm2355_vm13 }
0x3137   :  { %v2351_v34 = vsub.f32 1.0, %v2350_v58 }
0x3139   :  { %v2352_v59 = vmul.f32 %v3815_v56, %v2351_v34 }
0x313b   :  { %v2353_v36 = vadd.f32 %v3815_v56, %v2352_v59 }
0x313d   :  { %v2357_v9 = vsel %vm2356_vm15, %v3815_v56, %v2353_v36 }
0x313e   :  { %v2362_v3 = vsel %vm2359_vm1, %v2361_v2, %v2357_v9 }
0x313f   :  { %v2368_v4 = vmul.f32 %v2366_v49, %v2362_v3 }
0x3184   :  { %v2371_v52 = vpop.permute.xlu2 %2370 }
0x3185   :  { %v2373_v27 = vmul.f32 %v2371_v52, %v2362_v3 }
0x3187   :  { %2375 = vrot.lane.b32.xlu0 %v2373_v27, %s3891_s3 }
0x31f9   :  { %v2376_v24 = vpop.permute.xlu0 %2375 }
0x31fa   :  { %v2378_v6 = vadd.f32 %v2376_v24, %v2368_v4 }
0x31fc   :  { %3816 = vtanh.f32 %v2378_v6  ;;  %v2437_v51 = vrot.slane %v2378_v6, 6 }
0x3202   :  { %v3817_v7 = vpop.eup %3816 }
0x3203   :  { %2381 = vrot.lane.b32.xlu1 %v3817_v7, %s3883_s25 }
0x3275   :  { %v2382_v8 = vpop.permute.xlu1 %2381 }
0x3276   :  { %v4453_v10 = vmul.f32 %v2382_v8, %v2362_v3 }
0x3278   :  { %v2390_v13 = vrot.slane %v4453_v10, 6 }
0x327a   :  { %2391 = vrot.lane.b32.xlu2 %v2390_v13, %s3891_s3 }
0x32d4   :  { %v2392_v14 = vpop.permute.xlu2 %2391 }
0x32d5   :  { %3549 = vmatmul.msk.f32.vlgmr.msra.gmra.mxu2 %vm451_vm5, %v2392_v14 }
0x3358   :  { %v2412_v17 = vpop.f32.mrf.mxu2 }
0x3359   :  { %v2415_v12 = vadd.f32 %v2412_v17, %v4460_v53 }
0x335b   :  { %3818 = vtanh.f32 %v2415_v12  ;;  %v3550_v19 = vmul.f32 -1.442695, %v2415_v12 }
0x335d   :  { %3820 = vpow2.f32 %v3550_v19 }
0x3361   :  { %v3819_v23 = vpop.eup %3818 }
0x3362   :  { %2441 = vrot.lane.b32.xlu0 %v3819_v23, %s3883_s25 }
0x3363   :  { %v3821_v1 = vpop.eup %3820 }
0x3364   :  { %v2419_v20 = vadd.f32 1.0, %v3821_v1 }
0x3366   :  { %3822 = vrcp.f32 %v2419_v20  ;;  %v2431_v22 = vand.u32 2147483648, %v2419_v20  ;;  %vm2425_vm9 = vweird.f32 %v2419_v20  ;;  %v2429_v28 = vand.u32 2147483647, %v2419_v20 }
0x3368   :  { %v2432_v30 = vor.u32 1.1754944e-38, %v2431_v22  ;;  %vm2430_vm11 = vcmp.eq.f32.partialorder %v2429_v28, 8.507059e+37 }
0x336c   :  { %v3823_v46 = vpop.eup %3822 }
0x336d   :  { %v2421_v18 = vmul.f32 %v3823_v46, %v2419_v20  ;;  %vm2426_vm8 = vweird.f32 %v3823_v46 }
0x336e   :  { %vm2427_vm10 = vmor %vm2425_vm9, %vm2426_vm8 }
0x336f   :  { %v2422_v21 = vsub.f32 1.0, %v2421_v18 }
0x3371   :  { %v2423_v26 = vmul.f32 %v3823_v46, %v2422_v21 }
0x3373   :  { %v2424_v11 = vadd.f32 %v3823_v46, %v2423_v26 }
0x3375   :  { %v2428_v29 = vsel %vm2427_vm10, %v3823_v46, %v2424_v11 }
0x3376   :  { %v2433_v35 = vsel %vm2430_vm11, %v2432_v30, %v2428_v29 }
0x3377   :  { %v2439_v38 = vmul.f32 %v2437_v51, %v2433_v35 }
0x33d4   :  { %v2442_v33 = vpop.permute.xlu0 %2441 }
0x33d5   :  { %v2444_v25 = vmul.f32 %v2442_v33, %v2433_v35 }
0x33d7   :  { %2446 = vrot.lane.b32.xlu1 %v2444_v25, %s3891_s3 }
0x3449   :  { %v2447_v39 = vpop.permute.xlu1 %2446 }
0x344a   :  { %v2449_v40 = vadd.f32 %v2447_v39, %v2439_v38 }
0x344c   :  { %3824 = vtanh.f32 %v2449_v40  ;;  %v2508_v24 = vrot.slane %v2449_v40, 6 }
0x3452   :  { %v3825_v41 = vpop.eup %3824 }
0x3453   :  { %2452 = vrot.lane.b32.xlu2 %v3825_v41, %s3883_s25 }
0x34ad   :  { %v2453_v42 = vpop.permute.xlu2 %2452 }
0x34ae   :  { %v2455_v43 = vmul.f32 %v2453_v42, %v2433_v35 }
0x34b0   :  { %2457 = vrot.lane.b32.xlu0 %v2455_v43, %s3891_s3 }
0x3522   :  { %v2458_v44 = vpop.permute.xlu0 %2457 }
0x3523   :  { %2460 = vst.msk [vmem:[#allocation2 + $0x8] sm:$0x3] %vm680_vm12, %v2458_v44  ;;  %3551 = vmatmul.msk.f32.vlgmr.msrb.gmra.mxu3 %vm451_vm5, %v2458_v44 }
0x35a6   :  { %v2480_v45 = vpop.f32.mrf.mxu3 }
0x35a7   :  { %v2484_v47 = vrot.slane %v2480_v45, 6 }
0x35a9   :  { %v2486_v50 = vadd.f32 %v2484_v47, %v4460_v53 }
0x35ab   :  { %3826 = vtanh.f32 %v2486_v50  ;;  %v3552_v55 = vmul.f32 -1.442695, %v2486_v50 }
0x35ad   :  { %3828 = vpow2.f32 %v3552_v55 }
0x35b1   :  { %v3827_v54 = vpop.eup %3826 }
0x35b2   :  { %2512 = vrot.lane.b32.xlu1 %v3827_v54, %s3883_s25  ;;  %v3909_v54 = vmov 0  }
0x35b3   :  { %v3829_v56 = vpop.eup %3828  ;;  %3636 = vset.pattern.permute.xlu0 %v3909_v54  ;;  %3637 = vset.pattern.permute.xlu1 %v3909_v54 }
0x35b4   :  { %v2490_v58 = vadd.f32 1.0, %v3829_v56  ;;  %3638 = vset.pattern.permute.xlu2 %v3909_v54 }
0x35b6   :  { %3830 = vrcp.f32 %v2490_v58  ;;  %v2502_v9 = vand.u32 2147483648, %v2490_v58  ;;  %vm2496_vm13 = vweird.f32 %v2490_v58  ;;  %v2500_v2 = vand.u32 2147483647, %v2490_v58 }
0x35b8   :  { %v2503_v3 = vor.u32 1.1754944e-38, %v2502_v9  ;;  %vm2501_vm15 = vcmp.eq.f32.partialorder %v2500_v2, 8.507059e+37 }
0x35bc   :  { %v3831_v34 = vpop.eup %3830 }
0x35bd   :  { %v2492_v59 = vmul.f32 %v3831_v34, %v2490_v58  ;;  %vm2497_vm12 = vweird.f32 %v3831_v34 }
0x35be   :  { %vm2498_vm14 = vmor %vm2496_vm13, %vm2497_vm12  ;;  %vm2844_vm13 = vcmask 1043456  }
0x35bf   :  { %v2493_v36 = vsub.f32 1.0, %v2492_v59  ;;  %v4493_v59 = vld [vmem:[%s3424_s15] sm:$0x1f]  ;;  %s3918_s15 = smov 28  }
0x35c0   :  { %s3448_s18 = sld [smem:[%s4672_s0 + %s3918_s15]]  }
0x35c1   :  { %v2494_v63 = vmul.f32 %v3831_v34, %v2493_v36  ;;  %v2814_v36 = vld [vmem:[%s3425_s19] sm:$0x1f]  ;;  %s3919_s19 = smov 6   ;;  %s3456_s15 = sld [smem:[%s4672_s0 + %s3924_s2]]  }
0x35c2   :  { %s3426_s22 = sld [smem:[%s4672_s0 + %s3919_s19]]  }
0x35c3   :  { %v2495_v0 = vadd.f32 %v3831_v34, %v2494_v63 }
0x35c5   :  { %v2499_v52 = vsel %vm2498_vm14, %v3831_v34, %v2495_v0 }
0x35c6   :  { %v2504_v49 = vsel %vm2501_vm15, %v2503_v3, %v2499_v52 }
0x35c7   :  { %v2510_v6 = vmul.f32 %v2508_v24, %v2504_v49 }
0x3624   :  { %v2513_v27 = vpop.permute.xlu1 %2512 }
0x3625   :  { %v2515_v4 = vmul.f32 %v2513_v27, %v2504_v49 }
0x3627   :  { %2517 = vrot.lane.b32.xlu2 %v2515_v4, %s3891_s3  ;;  %v2839_v4 = vld [vmem:[%s3449_s24] sm:$0xf]  ;;  %s3920_s24 = smov 31  }
0x3628   :  { %3565 = vmatpush.msk.msra.mxu1 %vm2844_vm13, %v2839_v4  ;;  %v2997_v4 = vadd.s32 1, %v4493_v59  ;;  %s3451_s28 = sld [smem:[%s4672_s0 + %s3920_s24]]  }
0x3681   :  { %v2518_v7 = vpop.permute.xlu2 %2517 }
0x3682   :  { %v2520_v8 = vadd.f32 %v2518_v7, %v2510_v6  ;;  %v2828_v7 = vld [vmem:[%s4508_s29 + $0x68] sm:$0xff] }
0x3684   :  { %3832 = vtanh.f32 %v2520_v8  ;;  %v2582_v39 = vrot.slane %v2520_v8, 6 }
0x368a   :  { %v3833_v13 = vpop.eup %3832 }
0x368b   :  { %2523 = vrot.lane.b32.xlu0 %v3833_v13, %s3883_s25 }
0x36fd   :  { %v2524_v14 = vpop.permute.xlu0 %2523 }
0x36fe   :  { %v2526_v15 = vmul.f32 %v2524_v14, %v2504_v49 }
0x3700   :  { %v2532_v16 = vrot.slane %v2526_v15, 2 }
0x3702   :  { %2533 = vrot.lane.b32.xlu1 %v2532_v16, %s3891_s3 }
0x3774   :  { %v2534_v17 = vpop.permute.xlu1 %2533 }
0x3775   :  { %3553 = vmatmul.msk.f32.vlgmr.msra.gmra.mxu0 %vm451_vm5, %v2534_v17 }
0x37f2   :  { %v2554_v12 = vpop.f32.mrf.mxu0 }
0x37f3   :  { %v2558_v23 = vrot.slane %v2554_v12, 4 }
0x37f5   :  { %v2560_v19 = vadd.f32 %v2558_v23, %v4460_v53 }
0x37f7   :  { %3834 = vtanh.f32 %v2560_v19  ;;  %v3554_v20 = vmul.f32 -1.442695, %v2560_v19 }
0x37f9   :  { %3836 = vpow2.f32 %v3554_v20 }
0x37fd   :  { %v3835_v1 = vpop.eup %3834 }
0x37fe   :  { %2586 = vrot.lane.b32.xlu2 %v3835_v1, %s3883_s25 }
0x37ff   :  { %v3837_v46 = vpop.eup %3836 }
0x3800   :  { %v2564_v18 = vadd.f32 1.0, %v3837_v46 }
0x3802   :  { %3838 = vrcp.f32 %v2564_v18  ;;  %v2576_v29 = vand.u32 2147483648, %v2564_v18  ;;  %vm2570_vm8 = vweird.f32 %v2564_v18  ;;  %v2574_v30 = vand.u32 2147483647, %v2564_v18 }
0x3804   :  { %v2577_v35 = vor.u32 1.1754944e-38, %v2576_v29  ;;  %vm2575_vm10 = vcmp.eq.f32.partialorder %v2574_v30, 8.507059e+37  ;;  %v2827_v30 = vld [vmem:[%s4508_s29 + $0x60] sm:$0xff] }
0x3808   :  { %v3839_v21 = vpop.eup %3838 }
0x3809   :  { %v2566_v26 = vmul.f32 %v3839_v21, %v2564_v18  ;;  %vm2571_vm1 = vweird.f32 %v3839_v21 }
0x380a   :  { %vm2572_vm9 = vmor %vm2570_vm8, %vm2571_vm1  ;;  %vm2840_vm8 = vcmask 31744  }
0x380b   :  { %v2567_v11 = vsub.f32 1.0, %v2566_v26 }
0x380d   :  { %v2568_v22 = vmul.f32 %v3839_v21, %v2567_v11 }
0x380f   :  { %v2569_v28 = vadd.f32 %v3839_v21, %v2568_v22 }
0x3811   :  { %v2573_v33 = vsel %vm2572_vm9, %v3839_v21, %v2569_v28 }
0x3812   :  { %v2578_v51 = vsel %vm2575_vm10, %v2577_v35, %v2573_v33  ;;  %v2826_v33 = vld [vmem:[%s4508_s29 + $0x58] sm:$0xff]  ;;  %v2825_v35 = vld [vmem:[%s4508_s29 + $0x50] sm:$0xff] }
0x3813   :  { %v2584_v40 = vmul.f32 %v2582_v39, %v2578_v51 }
0x3858   :  { %v2587_v25 = vpop.permute.xlu2 %2586 }
0x3859   :  { %v2589_v38 = vmul.f32 %v2587_v25, %v2578_v51  ;;  %v3873_v25 = vld [vmem:[%s4207_s23 + $0x8] sm:$0xff]  ;;  %s3915_s23 = smov 26  }
0x385a   :  { %s4564_s7 = sld [smem:[%s4672_s0 + %s3915_s23]]  }
0x385b   :  { %2591 = vrot.lane.b32.xlu0 %v2589_v38, %s3891_s3 }
0x38cd   :  { %v2592_v41 = vpop.permute.xlu0 %2591 }
0x38ce   :  { %v4478_v42 = vadd.f32 %v2592_v41, %v2584_v40 }
0x38d0   :  { %3840 = vtanh.f32 %v4478_v42  ;;  %v2656_v1 = vrot.slane %v4478_v42, 6 }
0x38d6   :  { %v3841_v43 = vpop.eup %3840 }
0x38d7   :  { %2597 = vrot.lane.b32.xlu1 %v3841_v43, %s3883_s25 }
0x3949   :  { %v2598_v44 = vpop.permute.xlu1 %2597 }
0x394a   :  { %v2600_v45 = vmul.f32 %v2598_v44, %v2578_v51 }
0x394c   :  { %v2606_v47 = vrot.slane %v2600_v45, 4 }
0x394e   :  { %2607 = vrot.lane.b32.xlu2 %v2606_v47, %s3891_s3 }
0x39a8   :  { %v2608_v50 = vpop.permute.xlu2 %2607 }
0x39a9   :  { %3555 = vmatmul.msk.f32.vlgmr.msrb.gmra.mxu1 %vm451_vm5, %v2608_v50 }
0x39aa   :  { %2887 = vmatpush.msrb.mxu1 %v2828_v7 }
0x3a26   :  { %v2628_v55 = vpop.f32.mrf.mxu1 }
0x3a27   :  { %v2632_v56 = vrot.slane %v2628_v55, 2 }
0x3a29   :  { %v2634_v58 = vadd.f32 %v2632_v56, %v4460_v53  ;;  %v4496_v53 = vsub.s32 %v2814_v36, %v4493_v59  ;;  %v3874_v56 = vld [vmem:[%s4366_s12] ss:$0 sm:$0xff]  ;;  %s3917_s12 = smov 27  }
0x3a2a   :  { %s4585_s14 = sld [smem:[%s4672_s0 + %s3917_s12]]  }
0x3a2b   :  { %3842 = vtanh.f32 %v2634_v58  ;;  %vm2832_vm11 = vcmp.lt.s32.totalorder %v4496_v53, 3  ;;  %v3556_v0 = vmul.f32 -1.442695, %v2634_v58 }
0x3a2c   :  { %v2833_v63 = vsel %vm2832_vm11, %v4496_v53, 3 }
0x3a2d   :  { %3844 = vpow2.f32 %v3556_v0 }
0x3a31   :  { %v3843_v34 = vpop.eup %3842 }
0x3a32   :  { %2660 = vrot.lane.b32.xlu0 %v3843_v34, %s3883_s25 }
0x3a33   :  { %v3845_v9 = vpop.eup %3844 }
0x3a34   :  { %v2638_v2 = vadd.f32 1.0, %v3845_v9 }
0x3a36   :  { %3846 = vrcp.f32 %v2638_v2  ;;  %v2650_v24 = vand.u32 2147483648, %v2638_v2  ;;  %vm2644_vm14 = vweird.f32 %v2638_v2  ;;  %v2648_v6 = vand.u32 2147483647, %v2638_v2 }
0x3a38   :  { %v2651_v13 = vor.u32 1.1754944e-38, %v2650_v24  ;;  %vm2649_vm1 = vcmp.eq.f32.partialorder %v2648_v6, 8.507059e+37  ;;  %v3069_v24 = vadd.s32 3, %v4493_v59  ;;  %v2924_v6 = vld [vmem:[%s4564_s7] sm:$0xff] }
0x3a3a   :  { %2528 = vrot.lane.b32.xlu0 %v2526_v15, %s3891_s3 }
0x3a3c   :  { %v3847_v52 = vpop.eup %3846 }
0x3a3d   :  { %v2640_v3 = vmul.f32 %v3847_v52, %v2638_v2  ;;  %vm2645_vm12 = vweird.f32 %v3847_v52 }
0x3a3e   :  { %vm2646_vm15 = vmor %vm2644_vm14, %vm2645_vm12 }
0x3a3f   :  { %v2641_v27 = vsub.f32 1.0, %v2640_v3 }
0x3a42   :  { %2238 = vrot.lane.b32.xlu0 %v4429_v31, %s3891_s3  ;;  %v2642_v31 = vmul.f32 %v3847_v52, %v2641_v27 }
0x3a44   :  { %v2643_v49 = vadd.f32 %v3847_v52, %v2642_v31 }
0x3a46   :  { %v2647_v8 = vsel %vm2646_vm15, %v3847_v52, %v2643_v49 }
0x3a47   :  { %v2652_v15 = vsel %vm2649_vm1, %v2651_v13, %v2647_v8 }
0x3a48   :  { %v2658_v20 = vmul.f32 %v2656_v1, %v2652_v15 }
0x3a4a   :  { %2835 = vperm.xlu0 %3636, %v2833_v63  }
0x3a52   :  { %3106 = vperm.xlu0 %3636, %v2814_v36  }
0x3aa4   :  { %v2661_v14 = vpop.permute.xlu0 %2660 }
0x3aa5   :  { %v2663_v16 = vmul.f32 %v2661_v14, %v2652_v15 }
0x3aa7   :  { %2665 = vrot.lane.b32.xlu1 %v2663_v16, %s3891_s3 }
0x3aac   :  { %v2529_v17 = vpop.permute.xlu0 %2528 }
0x3aad   :  { %2531 = vst.msk [vmem:[#allocation2 + $0x8] sm:$0xc] %vm752_vm2, %v2529_v17  ;;  %v3033_v17 = vadd.s32 2, %v4493_v59 }
0x3aaf   :  { %2602 = vrot.lane.b32.xlu1 %v2600_v45, %s3891_s3 }
0x3ab4   :  { %v2239_v12 = vpop.permute.xlu0 %2238 }
0x3ab5   :  { %2241 = vst.msk [vmem:[#allocation2] sm:$0xc] %vm752_vm2, %v2239_v12 }
0x3ab7   :  { %2312 = vrot.lane.b32.xlu1 %v4444_v57, %s3891_s3 }
0x3abc   :  { %v2836_v23 = vpop.permute.xlu0 %2835 }
0x3abd   :  { %vm2837_vm9 = vcmp.eq.s32.totalorder %v4227_v32, %v2836_v23 }
0x3abe   :  { %v2838_v19 = vsel %vm2837_vm9, 1.0, %v3899_v5 }
0x3abf   :  { %3566 = vmatmul.msk.f32.vlgmr.msra.gmra.mxu1 %vm2840_vm8, %v2838_v19  ;;  %2956 = vperm.xlu1 %3637, %v4493_v59  }
0x3ac7   :  { %3567 = vmatmul.msk.f32.vlgmr.msrb.gmra.mxu1 %vm158_vm0, %v4040_v37  ;;  %2999 = vperm.xlu1 %3637, %v2997_v4  }
0x3acf   :  { %3568 = vmatmul.msk.f32.gmra.mxu1 %vm158_vm0, %v4047_v61 }
0x3b19   :  { %v2666_v46 = vpop.permute.xlu1 %2665 }
0x3b1a   :  { %v2668_v57 = vadd.f32 %v2666_v46, %v2658_v20 }
0x3b1c   :  { %3848 = vtanh.f32 %v2668_v57 }
0x3b21   :  { %v2603_v18 = vpop.permute.xlu1 %2602 }
0x3b22   :  { %v3849_v21 = vpop.eup %3848  ;;  %2605 = vst.msk [vmem:[#allocation2 + $0x8] sm:$0x30] %vm827_vm3, %v2603_v18 }
0x3b23   :  { %2671 = vrot.lane.b32.xlu2 %v3849_v21, %s3883_s25  ;;  %s3914_s25 = smov 2  }
0x3b24   :  { %s3422_s4 = sld [smem:[%s4672_s0 + %s3914_s25]]  }
0x3b29   :  { %v2313_v26 = vpop.permute.xlu1 %2312 }
0x3b2a   :  { %2315 = vst.msk [vmem:[#allocation2] sm:$0x30] %vm827_vm3, %v2313_v26  ;;  %v2870_v51 = vld [vmem:[%s3422_s4] sm:$0xff]  ;;  %v2871_v38 = vld [vmem:[%s3422_s4 + $0x8] sm:$0xff] }
0x3b3c   :  { %v4552_v40 = vpop.f32.mrf.mxu1 }
0x3b44   :  { %v2889_v43 = vpop.f32.mrf.mxu1 }
0x3b4c   :  { %v2892_v45 = vpop.f32.mrf.mxu1 }
0x3b7d   :  { %v2672_v37 = vpop.permute.xlu2 %2671 }
0x3b7e   :  { %v2674_v61 = vmul.f32 %v2672_v37, %v2652_v15 }
0x3b80   :  { %2676 = vrot.lane.b32.xlu2 %v2674_v61, %s3891_s3 }
0x3b88   :  { %2386 = vrot.lane.b32.xlu2 %v4453_v10, %s3891_s3  ;;  %v2824_v10 = vld [vmem:[%s4508_s29 + $0x48] sm:$0xff]  ;;  %s3923_s3 = smov 35  }
0x3b89   :  { %s3455_s12 = sld [smem:[%s4672_s0 + %s3923_s3]]  }
0x3b90   :  { %3071 = vperm.xlu2 %3638, %v3069_v24  }
0x3b98   :  { %3035 = vperm.xlu2 %3638, %v3033_v17  }
0x3bda   :  { %v2677_v11 = vpop.permute.xlu2 %2676 }
0x3bdb   :  { %2679 = vst.msk [vmem:[#allocation2 + $0x8] sm:$0xc0] %vm902_vm4, %v2677_v11 }
0x3be2   :  { %v2387_v22 = vpop.permute.xlu2 %2386  ;;  %v2681_v28 = vld [vmem:[#allocation2 + $0x8] sm:$0xff] }
0x3be3   :  { %2389 = vst.msk [vmem:[#allocation2] sm:$0xc0] %vm902_vm4, %v2387_v22  ;;  %2696 = vmatpush.msrb.mxu2 %v2681_v28 }
0x3bea   :  { %v2680_v29 = vld [vmem:[#allocation2] sm:$0xff] }
0x3beb   :  { %2697 = vmatpush.msrb.mxu2 %v2680_v29 }
0x3bec   :  { %3557 = vmatmul.msk.f32.vlgmr.msrb.gmra.mxu2 %vm545_vm7, %v4395_v62 }
0x3bed   :  { %2913 = vmatpush.msra.mxu2 %v2827_v30 }
0x3bef   :  { %2914 = vmatpush.msra.mxu2 %v2826_v33 }
0x3bf1   :  { %2915 = vmatpush.msra.mxu2 %v2825_v35  ;;  %v2782_v35 = vld [vmem:[%s3445_s11] sm:$0xff] }
0x3bf3   :  { %2916 = vmatpush.msra.mxu2 %v2824_v10  ;;  %v2783_v10 = vld [vmem:[%s3445_s11 + $0x8] sm:$0xff] }
0x3bf4   :  { %3558 = vmatmul.msk.f32.gmra.mxu2 %vm545_vm7, %v3873_v25  ;;  %v2925_v25 = vld [vmem:[%s4564_s7 + $0x8] sm:$0xff] }
0x3bfc   :  { %3569 = vmatmul.msk.f32.vlgmr.msra.gmra.mxu2 %vm451_vm5, %v2870_v51  ;;  %v2957_v51 = vpop.permute.xlu1 %2956 }
0x3bfd   :  { %vm2958_vm14 = vcmp.eq.s32.totalorder %v4227_v32, %v2957_v51 }
0x3c04   :  { %3570 = vmatmul.msk.f32.gmra.mxu2 %vm451_vm5, %v2871_v38  ;;  %v3107_v38 = vpop.permute.xlu0 %3106 }
0x3c05   :  { %vm3108_vm1 = vcmp.eq.s32.totalorder %v4227_v32, %v3107_v38 }
0x3c6f   :  { %v2699_v62 = vpop.f32.mrf.mxu2 }
0x3c70   :  { %v4548_v39 = vsel %vm1225_vm6, %v2680_v29, %v2699_v62 }
0x3c71   :  { %3559 = vmatmul.msk.f32.vlgmr.msra.gmra.mxu3 %vm451_vm5, %v4548_v39 }
0x3c77   :  { %v2702_v41 = vpop.f32.mrf.mxu2 }
0x3c78   :  { %v4556_v42 = vsel %vm1225_vm6, %v2681_v28, %v2702_v41  ;;  %v4592_v41 = vsel %vm2958_vm14, 1.0, %v3899_v5  ;;  %vm3296_vm14 = vcmask 1045504  }
0x3c79   :  { %3560 = vmatmul.msk.f32.gmra.mxu3 %vm451_vm5, %v4556_v42 }
0x3c7f   :  { %v2918_v44 = vpop.f32.mrf.mxu2 }
0x3c80   :  { %v2919_v54 = vadd.f32 %v2918_v44, %v2889_v43  ;;  %v3109_v43 = vsel %vm3108_vm1, 1.0, %v3899_v5 }
0x3c87   :  { %v2921_v47 = vpop.f32.mrf.mxu2 }
0x3c88   :  { %v2922_v50 = vadd.f32 %v2921_v47, %v2892_v45  ;;  %v3000_v45 = vpop.permute.xlu1 %2999 }
0x3c89   :  { %vm3001_vm9 = vcmp.eq.s32.totalorder %v4227_v32, %v3000_v45 }
0x3c8a   :  { %2946 = vmatpush.msrb.mxu3 %v2922_v50  ;;  %v4610_v47 = vsel %vm3001_vm9, 1.0, %v3899_v5 }
0x3c8c   :  { %2947 = vmatpush.msrb.mxu3 %v2919_v54  ;;  %v2823_v54 = vld [vmem:[%s4508_s29 + $0x40] sm:$0xff] }
0x3c8d   :  { %3571 = vmatmul.msk.f32.vlgmr.msrb.gmra.mxu3 %vm545_vm7, %v2924_v6 }
0x3c95   :  { %3572 = vmatmul.msk.f32.gmra.mxu3 %vm545_vm7, %v2925_v25 }
0x3cf4   :  { %v2730_v55 = vpop.f32.mrf.mxu3 }
0x3cf5   :  { %v2731_v58 = vadd.f32 %v3874_v56, %v2730_v55 }
0x3cf7   :  { %v3561_v34 = vmul.f32 -1.442695, %v2731_v58  ;;  %v2822_v58 = vld [vmem:[%s4508_s29 + $0x38] sm:$0xff] }
0x3cf9   :  { %3850 = vpow2.f32 %v3561_v34  ;;  %v2815_v34 = vld [vmem:[%s4508_s29] sm:$0xff] }
0x3cfc   :  { %v2733_v36 = vpop.f32.mrf.mxu3 }
0x3cfd   :  { %v2734_v63 = vadd.f32 %v3874_v56, %v2733_v36  ;;  %v2818_v56 = vld [vmem:[%s4508_s29 + $0x18] sm:$0xff]  ;;  %v2821_v36 = vld [vmem:[%s4508_s29 + $0x30] sm:$0xff] }
0x3cff   :  { %v3851_v0 = vpop.eup %3850  ;;  %v3562_v9 = vmul.f32 -1.442695, %v2734_v63  ;;  %v2820_v63 = vld [vmem:[%s4508_s29 + $0x28] sm:$0xff] }
0x3d00   :  { %v2742_v2 = vadd.f32 1.0, %v3851_v0  ;;  %v78_v0 = vstv %s3448_s18 }
0x3d01   :  { %3852 = vpow2.f32 %v3562_v9  ;;  %79 = vst [vmem:[#allocation3] sm:$0x1] %v78_v0  ;;  %v3645_v9 = vld [vmem:[%s4585_s14] ss:$0 sm:$0xff] }
0x3d02   :  { %3854 = vrcp.f32 %v2742_v2  ;;  %v2755_v14 = vand.u32 2147483648, %v2742_v2  ;;  %vm2749_vm3 = vweird.f32 %v2742_v2  ;;  %v2753_v16 = vand.u32 2147483647, %v2742_v2 }
0x3d04   :  { %v2756_v1 = vor.u32 1.1754944e-38, %v2755_v14  ;;  %vm2754_vm10 = vcmp.eq.f32.partialorder %v2753_v16, 8.507059e+37  ;;  %v2831_v16 = vadd.s32 1, %v4496_v53 }
0x3d07   :  { %v3853_v52 = vpop.eup %3852 }
0x3d08   :  { %v3855_v3 = vpop.eup %3854  ;;  %v2743_v27 = vadd.f32 1.0, %v3853_v52 }
0x3d09   :  { %v2745_v31 = vmul.f32 %v3855_v3, %v2742_v2  ;;  %vm2750_vm2 = vweird.f32 %v3855_v3 }
0x3d0a   :  { %3856 = vrcp.f32 %v2743_v27  ;;  %vm2751_vm4 = vmor %vm2749_vm3, %vm2750_vm2  ;;  %v2770_v19 = vand.u32 2147483648, %v2743_v27  ;;  %v2768_v46 = vand.u32 2147483647, %v2743_v27  ;;  %vm2764_vm11 = vweird.f32 %v2743_v27 }
0x3d0b   :  { %v2746_v49 = vsub.f32 1.0, %v2745_v31  ;;  %vm3031_vm2 = vcmp.gt.s32.totalorder %v2831_v16, 1  ;;  %vm2995_vm3 = vcmp.gt.s32.totalorder %v2831_v16, 0 }
0x3d0c   :  { %v2771_v21 = vor.u32 1.1754944e-38, %v2770_v19  ;;  %vm2769_vm13 = vcmp.eq.f32.partialorder %v2768_v46, 8.507059e+37 }
0x3d0d   :  { %v2747_v7 = vmul.f32 %v3855_v3, %v2746_v49 }
0x3d0f   :  { %v2748_v8 = vadd.f32 %v3855_v3, %v2747_v7 }
0x3d10   :  { %v3857_v13 = vpop.eup %3856  ;;  %v2949_v50 = vpop.f32.mrf.mxu3 }
0x3d11   :  { %v2760_v15 = vmul.f32 %v3857_v13, %v2743_v27  ;;  %v2752_v23 = vsel %vm2751_vm4, %v3855_v3, %v2748_v8  ;;  %vm2765_vm6 = vweird.f32 %v3857_v13  ;;  %vm3067_vm4 = vcmp.gt.s32.totalorder %v2831_v16, 2 }
0x3d12   :  { %v2757_v57 = vsel %vm2754_vm10, %v2756_v1, %v2752_v23  ;;  %vm2766_vm12 = vmor %vm2764_vm11, %vm2765_vm6  ;;  %vm3103_vm6 = vcmp.gt.s32.totalorder %v2831_v16, 3 }
0x3d13   :  { %v2761_v12 = vsub.f32 1.0, %v2760_v15  ;;  %v2776_v37 = vsub.f32 1.0, %v2757_v57  ;;  %v2774_v30 = vmul.f32 %v2757_v57, %v4548_v39  ;;  %v3646_v15 = vld [vmem:[#allocation3] ss:$0 sm:$0xff] }
0x3d15   :  { %v2762_v20 = vmul.f32 %v3857_v13, %v2761_v12  ;;  %v2778_v28 = vmul.f32 %v2776_v37, %v4383_v48  ;;  %v3072_v48 = vpop.permute.xlu2 %3071 }
0x3d16   :  { %vm3073_vm15 = vcmp.eq.s32.totalorder %v4227_v32, %v3072_v48 }
0x3d17   :  { %v2763_v18 = vadd.f32 %v3857_v13, %v2762_v20  ;;  %v2780_v33 = vadd.f32 %v2778_v28, %v2774_v30 }
0x3d18   :  { %v2952_v55 = vpop.f32.mrf.mxu3 }
0x3d19   :  { %v2767_v26 = vsel %vm2766_vm12, %v3857_v13, %v2763_v18 }
0x3d1a   :  { %v2772_v59 = vsel %vm2769_vm13, %v2771_v21, %v2767_v26 }
0x3d1b   :  { %v2777_v61 = vsub.f32 1.0, %v2772_v59  ;;  %v2775_v11 = vmul.f32 %v2772_v59, %v4556_v42  ;;  %v4595_v42 = vsel %vm3073_vm15, 1.0, %v3899_v5  ;;  %vm3292_vm15 = vcmask 48128  }
0x3d1d   :  { %v2779_v22 = vmul.f32 %v2777_v61, %v4388_v60  ;;  %v3036_v62 = vpop.permute.xlu2 %3035 }
0x3d1e   :  { %vm3037_vm8 = vcmp.eq.s32.totalorder %v4227_v32, %v3036_v62  ;;  %v2817_v32 = vld [vmem:[%s4508_s29 + $0x10] sm:$0xff] }
0x3d1f   :  { %v2781_v29 = vadd.f32 %v2779_v22, %v2775_v11  ;;  %v4599_v44 = vsel %vm3037_vm8, 1.0, %v3899_v5  ;;  %v2816_v5 = vld [vmem:[%s4508_s29 + $0x8] sm:$0xff] }
0x3d21   :  { %2804 = vmatpush.msrb.mxu0 %v2781_v29 }
0x3d23   :  { %2805 = vmatpush.msrb.mxu0 %v2780_v33 }
0x3d24   :  { %3563 = vmatmul.msk.f32.vlgmr.msrb.gmra.mxu0 %vm545_vm7, %v2782_v35 }
0x3d2c   :  { %3564 = vmatmul.msk.f32.gmra.mxu0 %vm545_vm7, %v2783_v10 }
0x3da1   :  { %v2807_v60 = vpop.f32.mrf.mxu0 }
0x3da9   :  { %v2810_v39 = vpop.f32.mrf.mxu0 }
0x3daa   :  { %2977 = vmatpush.msra.mxu0 %v2810_v39  ;;  %3056 = vmatpush.msra.mxu1 %v2810_v39 }
0x3dab   :  { %3092 = vmatpush.msrb.mxu2 %v2810_v39  ;;  %3127 = vmatpush.msra.mxu3 %v2810_v39 }
0x3dac   :  { %2978 = vmatpush.msra.mxu0 %v2807_v60  ;;  %3057 = vmatpush.msra.mxu1 %v2807_v60 }
0x3dad   :  { %3093 = vmatpush.msrb.mxu2 %v2807_v60  ;;  %3128 = vmatpush.msra.mxu3 %v2807_v60 }
0x3dae   :  { %3573 = vmatmul.msk.f32.vlgmr.msra.gmra.mxu0 %vm545_vm7, %v4592_v41  ;;  %3577 = vmatmul.msk.f32.vlgmr.msra.gmra.mxu3 %vm545_vm7, %v3109_v43 }
0x3daf   :  { %3020 = vmatpush.msrb.mxu0 %v2810_v39  ;;  %3576 = vmatmul.msk.f32.vlgmr.msrb.gmra.mxu2 %vm545_vm7, %v4595_v42 }
0x3db0   :  { %3575 = vmatmul.msk.f32.vlgmr.msra.gmra.mxu1 %vm545_vm7, %v4599_v44  ;;  %3261 = vmatpush.msra.mxu2 %v2823_v54 }
0x3db1   :  { %3021 = vmatpush.msrb.mxu0 %v2807_v60  ;;  %3235 = vmatpush.msrb.mxu1 %v2818_v56 }
0x3db2   :  { %3284 = vmatpush.msrb.mxu3 %v2952_v55 }
0x3db3   :  { %3236 = vmatpush.msrb.mxu1 %v2817_v32  ;;  %3212 = vmatpush.msra.mxu0 %v2822_v58 }
0x3db4   :  { %3285 = vmatpush.msrb.mxu3 %v2949_v50 }
0x3db5   :  { %3237 = vmatpush.msrb.mxu1 %v2816_v5  ;;  %3213 = vmatpush.msra.mxu0 %v2821_v36 }
0x3db6   :  { %3574 = vmatmul.msk.f32.vlgmr.msrb.gmra.mxu0 %vm545_vm7, %v4610_v47 }
0x3db7   :  { %3580 = vmatmul.msk.f32.vlgmr.msra.gmra.mxu2 %vm158_vm0, %v4552_v40  ;;  %3238 = vmatpush.msrb.mxu1 %v2815_v34  ;;  %v2819_v40 = vld [vmem:[%s4508_s29 + $0x20] sm:$0xff]  ;;  %vm2987_vm0 = vcmask 258048  }
0x3db8   :  { %3214 = vmatpush.msra.mxu0 %v2820_v63 }
0x3dba   :  { %3215 = vmatpush.msra.mxu0 %v2819_v40 }
0x3e2b   :  { %v2980_v2 = vpop.f32.mrf.mxu0 }
0x3e2c   :  { %v2986_v52 = vmul.f32 %v3645_v9, %v2980_v2  ;;  %3579 = vmatmul.msk.f32.vlgmr.msrb.gmra.mxu1 %vm451_vm5, %v2980_v2  ;;  %v3291_v2 = vld [vmem:[%s3426_s22] sm:$0x1f] }
0x3e2d   :  { %v3059_v3 = vpop.f32.mrf.mxu1 }
0x3e2e   :  { %v3062_v27 = vmul.f32 %v3645_v9, %v3059_v3  ;;  %v2988_v31 = vsel %vm2987_vm0, %v2986_v52, 0.0 }
0x3e2f   :  { %2989 = vadd.xlane.f32.xlu1 %v2988_v31 }
0x3e30   :  { %v3063_v49 = vsel %vm2987_vm0, %v3062_v27, 0.0 }
0x3e31   :  { %v3130_v4 = vpop.f32.mrf.mxu3  ;;  %3064 = vadd.xlane.f32.xlu0 %v3063_v49 }
0x3e32   :  { %3578 = vmatmul.msk.f32.vlgmr.msra.gmra.mxu0 %vm451_vm5, %v3130_v4  ;;  %v3095_v8 = vpop.f32.mrf.mxu2 }
0x3e33   :  { %v3023_v24 = vpop.f32.mrf.mxu0  ;;  %v3098_v13 = vmul.f32 %v3645_v9, %v3095_v8 }
0x3e34   :  { %v3026_v6 = vmul.f32 %v3645_v9, %v3023_v24  ;;  %v2829_v9 = vld [vmem:[%s4508_s29 + $0x70] sm:$0x3f]  ;;  %s3921_s29 = smov 33  }
0x3e35   :  { %v3099_v14 = vsel %vm2987_vm0, %v3098_v13, 0.0  ;;  %3582 = vmatpush.msk.msrb.mxu0 %vm3296_vm14, %v2829_v9  ;;  %s4651_s1 = sld [smem:[%s4672_s0 + %s3921_s29]]  }
0x3e36   :  { %v3027_v7 = vsel %vm2987_vm0, %v3026_v6, 0.0 }
0x3e37   :  { %3028 = vadd.xlane.f32.xlu2 %v3027_v7 }
0x3e3a   :  { %3583 = vmatmul.msk.f32.vlgmr.msrb.gmra.mxu0 %vm3292_vm15, %v3291_v2 }
0x3e3f   :  { %3100 = vadd.xlane.f32.xlu2 %v3099_v14  ;;  %v3362_v14 = vld [vmem:[%s3454_s9 + $0x18] sm:$0xff] }
0x3e40   :  { %3382 = vmatpush.msrb.mxu2 %v3362_v14 }
0x3ea2   :  { %v2990_v17 = vpop.xlane.xlu1 %2989 }
0x3ea3   :  { %v2994_v19 = vadd.f32 %v3646_v15, %v2990_v17 }
0x3ea4   :  { %v3065_v1 = vpop.xlane.xlu0 %3064 }
0x3ea5   :  { %v2996_v46 = vsel %vm2995_vm3, %v2994_v19, -1e+30  ;;  %v3066_v57 = vadd.f32 %v3646_v15, %v3065_v1 }
0x3ea7   :  { %v3068_v26 = vsel %vm3067_vm4, %v3066_v57, -1e+30 }
0x3ea9   :  { %v3240_v16 = vpop.f32.mrf.mxu1 }
0x3eaa   :  { %v3029_v12 = vpop.xlane.xlu2 %3028 }
0x3eab   :  { %v3030_v23 = vadd.f32 %v3646_v15, %v3029_v12  ;;  %v3263_v12 = vpop.f32.mrf.mxu2 }
0x3ead   :  { %v3032_v20 = vsel %vm3031_vm2, %v3030_v23, -1e+30 }
0x3eae   :  { %v3133_v18 = vmax.f32 %v2996_v46, %v3032_v20 }
0x3eb0   :  { %v3134_v59 = vmax.f32 %v3133_v18, %v3068_v26 }
0x3eb2   :  { %v3101_v21 = vpop.xlane.xlu2 %3100 }
0x3eb3   :  { %v3102_v37 = vadd.f32 %v3646_v15, %v3101_v21  ;;  %v3217_v15 = vpop.f32.mrf.mxu0 }
0x3eb4   :  { %v3241_v17 = vadd.f32 %v3240_v16, %v3217_v15 }
0x3eb5   :  { %v3104_v61 = vsel %vm3103_vm6, %v3102_v37, -1e+30  ;;  %v3360_v37 = vld [vmem:[%s3454_s9 + $0x8] sm:$0xff] }
0x3eb6   :  { %v3135_v11 = vmax.f32 %v3134_v59, %v3104_v61  ;;  %v3266_v23 = vadd.f32 %v3263_v12, %v3241_v17  ;;  %v3359_v59 = vld [vmem:[%s3454_s9] sm:$0xff] }
0x3eb8   :  { %v3136_v53 = vsub.f32 %v2996_v46, %v3135_v11  ;;  %v3139_v22 = vsub.f32 %v3032_v20, %v3135_v11  ;;  %v3142_v28 = vsub.f32 %v3068_v26, %v3135_v11  ;;  %v3145_v29 = vsub.f32 %v3104_v61, %v3135_v11  ;;  %v3647_v46 = vld [vmem:[%s3451_s28] ss:$0 sm:$0xff]  ;;  %v3361_v26 = vld [vmem:[%s3454_s9 + $0x10] sm:$0xff] }
0x3eb9   :  { %3383 = vmatpush.msrb.mxu2 %v3361_v26  ;;  %v3648_v61 = vld [vmem:[%s4651_s1] ss:$0 sm:$0xff] }
0x3eba   :  { %v3137_v30 = vmul.f32 1.442695, %v3136_v53  ;;  %v3140_v33 = vmul.f32 1.442695, %v3139_v22  ;;  %v3143_v35 = vmul.f32 1.442695, %v3142_v28 }
0x3ebb   :  { %v3146_v10 = vmul.f32 1.442695, %v3145_v29  ;;  %v3317_v1 = vpop.f32.mrf.mxu0  ;;  %3384 = vmatpush.msrb.mxu2 %v3360_v37  ;;  %v3649_v28 = vld [vmem:[%s3455_s12] ss:$0 sm:$0xff] }
0x3ebc   :  { %3858 = vpow2.f32 %v3137_v30 }
0x3ebd   :  { %3860 = vpow2.f32 %v3140_v33  ;;  %3385 = vmatpush.msrb.mxu2 %v3359_v59 }
0x3ebe   :  { %3862 = vpow2.f32 %v3143_v35 }
0x3ebf   :  { %3864 = vpow2.f32 %v3146_v10 }
0x3ec2   :  { %v3859_v25 = vpop.eup %3858 }
0x3ec3   :  { %v3861_v48 = vpop.eup %3860 }
0x3ec4   :  { %v3148_v60 = vadd.f32 %v3861_v48, %v3859_v25  ;;  %v3863_v51 = vpop.eup %3862 }
0x3ec5   :  { %v3865_v62 = vpop.eup %3864 }
0x3ec6   :  { %v3149_v38 = vadd.f32 %v3863_v51, %v3148_v60 }
0x3ec8   :  { %v3150_v39 = vadd.f32 %v3865_v62, %v3149_v38 }
0x3eca   :  { %3866 = vrcp.f32 %v3150_v39  ;;  %v3162_v54 = vand.u32 2147483648, %v3150_v39  ;;  %v3160_v56 = vand.u32 2147483647, %v3150_v39  ;;  %vm3156_vm11 = vweird.f32 %v3150_v39 }
0x3ecc   :  { %v3163_v5 = vor.u32 1.1754944e-38, %v3162_v54  ;;  %vm3161_vm13 = vcmp.eq.f32.partialorder %v3160_v56, 8.507059e+37 }
0x3ed0   :  { %v3867_v43 = vpop.eup %3866 }
0x3ed1   :  { %v3152_v45 = vmul.f32 %v3867_v43, %v3150_v39  ;;  %vm3157_vm10 = vweird.f32 %v3867_v43 }
0x3ed2   :  { %vm3158_vm12 = vmor %vm3156_vm11, %vm3157_vm10 }
0x3ed3   :  { %v3153_v50 = vsub.f32 1.0, %v3152_v45 }
0x3ed5   :  { %v3154_v55 = vmul.f32 %v3867_v43, %v3153_v50 }
0x3ed7   :  { %v3155_v32 = vadd.f32 %v3867_v43, %v3154_v55 }
0x3ed9   :  { %v3159_v58 = vsel %vm3158_vm12, %v3867_v43, %v3155_v32 }
0x3eda   :  { %v3164_v34 = vsel %vm3161_vm13, %v3163_v5, %v3159_v58 }
0x3edb   :  { %v3181_v36 = vmul.f32 %v3863_v51, %v3164_v34  ;;  %v3173_v63 = vmul.f32 %v3861_v48, %v3164_v34  ;;  %v3166_v40 = vmul.f32 %v3859_v25, %v3164_v34  ;;  %v3189_v0 = vmul.f32 %v3865_v62, %v3164_v34 }
0x3edd   :  { %3184 = vperm.xlu0 %3636, %v3181_v36   ;;  %3176 = vperm.xlu2 %3638, %v3173_v63  }
0x3ede   :  { %3169 = vperm.xlu1 %3637, %v3166_v40  }
0x3ee6   :  { %3192 = vperm.xlu1 %3637, %v3189_v0  }
0x3f37   :  { %v3177_v52 = vpop.permute.xlu2 %3176 }
0x3f38   :  { %v3179_v31 = vmul.f32 %v3177_v52, %v4610_v47  ;;  %v3327_v47 = vld [vmem:[%s3452_s5] sm:$0xff] }
0x3f4f   :  { %v3185_v49 = vpop.permute.xlu0 %3184 }
0x3f50   :  { %v3170_v3 = vpop.permute.xlu1 %3169  ;;  %v3187_v24 = vmul.f32 %v3185_v49, %v4599_v44  ;;  %v3328_v44 = vld [vmem:[%s3452_s5 + $0x8] sm:$0xff] }
0x3f51   :  { %v3172_v27 = vmul.f32 %v3170_v3, %v4592_v41  ;;  %v3330_v41 = vld [vmem:[%s3452_s5 + $0x18] sm:$0xff] }
0x3f52   :  { %3350 = vmatpush.msra.mxu1 %v3330_v41 }
0x3f53   :  { %v3180_v4 = vadd.f32 %v3179_v31, %v3172_v27 }
0x3f55   :  { %v3188_v7 = vadd.f32 %v3187_v24, %v3180_v4 }
0x3f58   :  { %v3193_v6 = vpop.permute.xlu1 %3192 }
0x3f59   :  { %v3195_v8 = vmul.f32 %v3193_v6, %v4595_v42  ;;  %v3329_v42 = vld [vmem:[%s3452_s5 + $0x10] sm:$0xff] }
0x3f5a   :  { %3351 = vmatpush.msra.mxu1 %v3329_v42 }
0x3f5b   :  { %v3196_v13 = vadd.f32 %v3195_v8, %v3188_v7 }
0x3f5c   :  { %3352 = vmatpush.msra.mxu1 %v3328_v44 }
0x3f5d   :  { %3581 = vmatmul.msk.f32.vlgmr.msrb.gmra.mxu3 %vm545_vm7, %v3196_v13  ;;  %vm3390_vm7 = vcmask 28672  }
0x3f5e   :  { %3353 = vmatpush.msra.mxu1 %v3327_v47 }
0x3fe0   :  { %v3287_v19 = vpop.f32.mrf.mxu3 }
0x3fe1   :  { %v3290_v20 = vadd.f32 %v3287_v19, %v3266_v23 }
0x3fe3   :  { %v3320_v57 = vadd.f32 %v3317_v1, %v3290_v20 }
0x3fe5   :  { %v3325_v18 = vadd.f32 %v3647_v46, %v3320_v57 }
0x3fe7   :  { %v3326_v21 = vmax.f32 %v3325_v18, 0.0 }
0x3fe9   :  { %3584 = vmatmul.msk.f32.vlgmr.msra.gmra.mxu1 %vm451_vm5, %v3326_v21 }
0x4066   :  { %v3355_v11 = vpop.f32.mrf.mxu1 }
0x4067   :  { %v3356_v53 = vadd.f32 %v3648_v61, %v3355_v11 }
0x4069   :  { %v3358_v22 = vmax.f32 %v3356_v53, 0.0 }
0x406b   :  { %3585 = vmatmul.msk.f32.vlgmr.msrb.gmra.mxu2 %vm451_vm5, %v3358_v22 }
0x40ee   :  { %v3387_v29 = vpop.f32.mrf.mxu2 }
0x40ef   :  { %v3388_v30 = vadd.f32 %v3649_v28, %v3387_v29 }
0x40f1   :  { %v3391_v33 = vsel %vm3390_vm7, %v3388_v30, -inf }
0x40f2   :  { %3392 = vmax.xlane.f32.xlu0 %v3391_v33 }
0x4165   :  { %v3393_v35 = vpop.xlane.xlu0 %3392 }
0x4166   :  { %v3394_v10 = vsub.f32 %v3388_v30, %v3393_v35 }
0x4168   :  { %v3395_v25 = vmul.f32 1.442695, %v3394_v10 }
0x416a   :  { %3868 = vpow2.f32 %v3395_v25 }
0x4170   :  { %v3869_v48 = vpop.eup %3868 }
0x4171   :  { %v3397_v60 = vsel %vm3390_vm7, %v3869_v48, 0.0 }
0x4172   :  { %3398 = vadd.xlane.f32.xlu2 %v3397_v60 }
0x41e5   :  { %v3399_v51 = vpop.xlane.xlu2 %3398 }
0x41e6   :  { %3870 = vrcp.f32 %v3399_v51  ;;  %v3411_v43 = vand.u32 2147483648, %v3399_v51  ;;  %v3409_v50 = vand.u32 2147483647, %v3399_v51  ;;  %vm3405_vm1 = vweird.f32 %v3399_v51 }
0x41e8   :  { %v3412_v55 = vor.u32 1.1754944e-38, %v3411_v43  ;;  %vm3410_vm9 = vcmp.eq.f32.partialorder %v3409_v50, 8.507059e+37 }
0x41ec   :  { %v3871_v38 = vpop.eup %3870 }
0x41ed   :  { %v3401_v62 = vmul.f32 %v3871_v38, %v3399_v51  ;;  %vm3406_vm5 = vweird.f32 %v3871_v38 }
0x41ee   :  { %vm3407_vm8 = vmor %vm3405_vm1, %vm3406_vm5 }
0x41ef   :  { %v3402_v39 = vsub.f32 1.0, %v3401_v62 }
0x41f1   :  { %v3403_v45 = vmul.f32 %v3871_v38, %v3402_v39 }
0x41f3   :  { %v3404_v54 = vadd.f32 %v3871_v38, %v3403_v45 }
0x41f5   :  { %v3408_v56 = vsel %vm3407_vm8, %v3871_v38, %v3404_v54 }
0x41f6   :  { %v3413_v32 = vsel %vm3410_vm9, %v3412_v55, %v3408_v56 }
0x41f7   :  { %v3414_v5 = vmul.f32 %v3869_v48, %v3413_v32 }
0x41f9   :  { %v3415_v58 = vadd.f32 1e-08, %v3414_v5 }
0x41fb   :  { %3416 = vst.msk [vmem:[%s3456_s15] sm:$0x1f] %vm3390_vm7, %v3415_v58 }

</bundles_post_ra>
